<compile_context>
chip_gen: v5e
topology: v5e:2x2
jax: 0.10.0
libtpu: 0.0.40
codegen_flags: <defaults>
</compile_context>

<pallas_src>
import jax
import jax.numpy as jnp
from jax.experimental import pallas as pl
from jax.experimental.pallas import tpu as pltpu


# --------------------------- fused forward kernel ---------------------------

def _make_kernel(B, C, T, D1, D2, F, cin_pad):
    L = B * T
    # dilations of the two dilated convs inside ConvBlock k (k = 1..5)
    dils = [(2 ** ((2 * k) % 5), 2 ** ((2 * k + 1) % 5)) for k in range(1, 6)]
    f32, bf16 = jnp.float32, jnp.bfloat16

    def kernel(x_ref, ws_ref, bias_ref, conv_ref, wf1_ref, wf2_ref, out_ref):
        # ---- hoisted lane bookkeeping: one iota, one mask pair per dilation
        t_loc = jax.lax.broadcasted_iota(jnp.int32, (1, L), 1) % T
        mask_cache = {}

        def masks(dil):
            if dil not in mask_cache:
                mask_cache[dil] = (t_loc >= dil, t_loc < (T - dil))
            return mask_cache[dil]

        # ---- static-offset unpackers for the two packed weight slabs -------
        bias_off = [0]

        def next_bias(n):                       # (n, 1) f32 column
            o, bias_off[0] = bias_off[0], bias_off[0] + n
            return bias_ref[o:o + n, :]

        conv_off = [0]

        def next_convw(n):                      # (n, 3*cin_pad) bf16 rows
            o, conv_off[0] = conv_off[0], conv_off[0] + n
            return conv_ref[o:o + n, :]

        def gelu(x):
            # TODO(synk): PyTorch nn.GELU() defaults to exact erf; the cheaper
            # sigmoid form is used here (elementwise math kept f32 for v5e).
            return x * (1.0 / (1.0 + jnp.exp(-1.702 * x)))

        def conv3(x, w3, b, dil):
            """'same' dilated conv (k=3) as ONE stacked bf16 MXU matmul.

            x: (Cin, L); w3: (Cout, 3*cin_pad), tap order [t-dil, t, t+dil].
            Taps built with static lane slices + zero pads; (lane % T) masks
            stop taps leaking across the fused batch boundary.
            """
            cin = x.shape[0]
            if cin < cin_pad:                    # no-op when D1 == D2
                x = jnp.concatenate(
                    [x, jnp.zeros((cin_pad - cin, L), x.dtype)], axis=0)
            zpad = jnp.zeros((cin_pad, dil), x.dtype)
            m_l, m_r = masks(dil)
            xm = jnp.concatenate([zpad, x[:, :L - dil]], axis=1)     # x[:, t-dil]
            xp = jnp.concatenate([x[:, dil:], zpad], axis=1)         # x[:, t+dil]
            xm = jnp.where(m_l, xm, 0.0)
            xp = jnp.where(m_r, xp, 0.0)
            x3 = jnp.concatenate([xm, x, xp], axis=0).astype(bf16)   # (3*cin_pad, L)
            return jnp.dot(w3, x3, preferred_element_type=f32) + b

        # -------- SubjectBlock (softmax + 1x1 convs folded offline) ----------
        # TODO(synk): SpatialDropout(d_drop) is identity in eval mode; omitted.
        segs = []
        for b in range(B):
            s = jnp.dot(ws_ref[b], x_ref[b].astype(bf16),
                        preferred_element_type=f32)                  # (D1, T)
            segs.append(s + next_bias(D1))
        h = jnp.concatenate(segs, axis=1)                            # (D1, B*T)

        # ----------------------------- 5 ConvBlocks ---------------------------
        for blk, (d0, d1) in enumerate(dils):
            in_ch = D1 if blk == 0 else D2
            w0, w1, w2 = next_convw(D2), next_convw(D2), next_convw(2 * D2)
            b0, s0, t0 = next_bias(D2), next_bias(D2), next_bias(D2)
            b1, s1, t1 = next_bias(D2), next_bias(D2), next_bias(D2)
            b2 = next_bias(2 * D2)

            y = conv3(h, w0, b0, d0)
            if in_ch == D2:                  # residual whenever channels match
                y = y + h
            y = gelu(y * s0 + t0)            # eval-mode BN folded to scale/shift

            y2 = conv3(y, w1, b1, d1) + y
            y2 = gelu(y2 * s1 + t1)

            y3 = conv3(y2, w2, b2, 1)        # -> (2*D2, L)
            h = y3[:D2, :] * (1.0 / (1.0 + jnp.exp(-y3[D2:, :])))    # GLU

        # ----------------------- final 1x1 convs + GELU -----------------------
        bf1, bf2 = next_bias(2 * D2), next_bias(F)
        h = gelu(jnp.dot(wf1_ref[...], h.astype(bf16),
                         preferred_element_type=f32) + bf1)
        h = gelu(jnp.dot(wf2_ref[...], h.astype(bf16),
                         preferred_element_type=f32) + bf2)

        for b in range(B):                   # un-fuse batch from the lane axis
            out_ref[b, :, :] = h[:, b * T:(b + 1) * T].astype(out_ref.dtype)

    return kernel


# ------------------------------- model glue ---------------------------------

def brain_encoder_forward(params, X, subject_idxs):
    B, C, T = X.shape
    D1 = params["sb_w"].shape[0]
    D2 = params["conv1"]["w1"].shape[0]
    F = params["wf2"].shape[0]
    cin_pad = max(D1, D2)
    assert T > 16, "tap construction assumes T > max dilation (16)"

    f32, bf16 = jnp.float32, jnp.bfloat16

    # --- fold the batch-independent SubjectBlock offline ---------------------
    att = params["z_re"] @ params["cos"] + params["z_im"] @ params["sin"]   # (D1, C)
    sa = jax.nn.softmax(att, axis=-1)                                       # (D1, C)
    w_mix = params["sb_w"] @ sa                                             # (D1, C)
    W_s = jnp.einsum("sij,jc->sic", params["subj_w"], w_mix)                # (S, D1, C)
    b_s = jnp.einsum("sij,j->si", params["subj_w"], params["sb_b"])         # (S, D1)
    ws_b = W_s[subject_idxs].astype(bf16)                                   # (B, D1, C)
    bias_subj = b_s[subject_idxs].reshape(B * D1, 1)                        # (B*D1, 1)

    # --- pack all remaining weights into two slabs ----------------------------
    def stack_w(w):   # (Cout, Cin, 3) -> (Cout, 3*cin_pad), taps [t-d, t, t+d]
        co, ci, kk = w.shape
        w = jnp.transpose(w, (0, 2, 1))                 # (Cout, 3, Cin)
        if ci < cin_pad:
            w = jnp.pad(w, ((0, 0), (0, 0), (0, cin_pad - ci)))
        return w.reshape(co, kk * cin_pad)

    col = lambda v: v.reshape(-1, 1)
    conv_rows, bias_rows = [], [bias_subj]
    for k in range(1, 6):
        p = params[f"conv{k}"]
        conv_rows += [stack_w(p["w0"]), stack_w(p["w1"]), stack_w(p["w2"])]
        bias_rows += [col(p["b0"]), col(p["bn0_scale"]), col(p["bn0_shift"]),
                      col(p["b1"]), col(p["bn1_scale"]), col(p["bn1_shift"]),
                      col(p["b2"])]
    bias_rows += [col(params["bf1"]), col(params["bf2"])]
    conv_slab = jnp.concatenate(conv_rows, axis=0).astype(bf16)   # (20*D2, 3*cin_pad)
    bias_slab = jnp.concatenate(bias_rows, axis=0).astype(f32)    # (rows, 1)
    wf1 = params["wf1"].astype(bf16)
    wf2 = params["wf2"].astype(bf16)

    operands = [X, ws_b, bias_slab, conv_slab, wf1, wf2]

    # advisory cost hint (kernel is DMA/overhead bound at these shapes)
    L = B * T
    flops = (2 * B * D1 * C * T
             + 5 * 2 * L * 3 * cin_pad * 4 * D2
             + 2 * L * (2 * D2 * D2 + F * 2 * D2))
    transcendentals = L * (5 * 3 * D2 + 2 * D2 + F)
    bytes_accessed = (sum(int(o.size) * o.dtype.itemsize for o in operands)
                      + B * F * T * 4)

    full_spec = lambda a: pl.BlockSpec(a.shape, lambda i, _n=a.ndim: (0,) * _n)

    return pl.pallas_call(
        _make_kernel(B, C, T, D1, D2, F, cin_pad),
        grid=(1,),                              # batch fused into the lane axis
        in_specs=[full_spec(a) for a in operands],
        out_specs=pl.BlockSpec((B, F, T), lambda i: (0, 0, 0)),
        out_shape=jax.ShapeDtypeStruct((B, F, T), jnp.float32),
        compiler_params=pltpu.CompilerParams(dimension_semantics=("arbitrary",)),
        cost_estimate=pl.CostEstimate(flops=int(flops),
                                      transcendentals=int(transcendentals),
                                      bytes_accessed=int(bytes_accessed)),
    )(*operands)


# --------------------------- deterministic init ------------------------------

def init_params(key, cfg):
    C, D1, D2, F, K, S = (cfg["C"], cfg["D1"], cfg["D2"], cfg["F"], cfg["K"],
                          cfg["num_subjects"])
    keys = iter(jax.random.split(key, 128))

    def nrm(shape, scale=0.05):
        return scale * jax.random.normal(next(keys), shape, jnp.float32)

    params = {}
    # spatial attention: complex z ~ U[0,1), precomputed cos/sin of 2*pi*(k x + l y)
    params["z_re"] = jax.random.uniform(next(keys), (D1, K * K), jnp.float32)
    params["z_im"] = jax.random.uniform(next(keys), (D1, K * K), jnp.float32)
    loc = jax.random.uniform(next(keys), (C, 2), jnp.float32)    # sensor 2D positions
    kk, ll = jnp.meshgrid(jnp.arange(K, dtype=jnp.float32),
                          jnp.arange(K, dtype=jnp.float32), indexing="ij")
    kk, ll = kk.reshape(-1), ll.reshape(-1)                       # (K^2,)
    phi = 2.0 * jnp.pi * (jnp.outer(kk, loc[:, 0]) + jnp.outer(ll, loc[:, 1]))
    params["cos"], params["sin"] = jnp.cos(phi), jnp.sin(phi)
    # subject block convs
    params["sb_w"] = nrm((D1, D1))
    params["sb_b"] = nrm((D1,))
    params["subj_w"] = nrm((S, D1, D1))

    def bn_fold():
        gamma = 1.0 + 0.1 * jax.random.normal(next(keys), (D2,), jnp.float32)
        beta = 0.1 * jax.random.normal(next(keys), (D2,), jnp.float32)
        mean = 0.05 * jax.random.normal(next(keys), (D2,), jnp.float32)
        var = 1.0 + 0.1 * jnp.abs(jax.random.normal(next(keys), (D2,), jnp.float32))
        scale = gamma / jnp.sqrt(var + 1e-5)
        shift = beta - mean * scale
        return scale, shift

    for k in range(1, 6):
        in_ch = D1 if k == 1 else D2
        bn0s, bn0h = bn_fold()
        bn1s, bn1h = bn_fold()
        params[f"conv{k}"] = {
            "w0": nrm((D2, in_ch, 3)), "b0": nrm((D2,)),
            "bn0_scale": bn0s, "bn0_shift": bn0h,
            "w1": nrm((D2, D2, 3)), "b1": nrm((D2,)),
            "bn1_scale": bn1s, "bn1_shift": bn1h,
            "w2": nrm((2 * D2, D2, 3)), "b2": nrm((2 * D2,)),
        }
    params["wf1"] = nrm((2 * D2, D2))
    params["bf1"] = nrm((2 * D2,))
    params["wf2"] = nrm((F, 2 * D2))
    params["bf2"] = nrm((F,))
    return params


# ----------------------------------- main ------------------------------------

if __name__ == "__main__":
    cfg = dict(num_subjects=2, C=16, D1=16, D2=16, F=32, K=4)
    B, T = 2, 128

    kp, kx = jax.random.split(jax.random.PRNGKey(0))
    params = init_params(kp, cfg)
    X = jax.random.normal(kx, (B, cfg["C"], T), jnp.float32)      # (B, sensors, time)
    subject_idxs = jnp.array([0, 1], dtype=jnp.int32)

    fwd = jax.jit(brain_encoder_forward)
    out = jax.block_until_ready(fwd(params, X, subject_idxs))

    assert out.shape == (B, cfg["F"], T), out.shape
    assert bool(jnp.all(jnp.isfinite(out)))
    print("KERNEL_OK")
</pallas_src>

<mosaic_0001>
module attributes {stable_mosaic.version = 11 : i64} {
  func.func @kernel(%arg0: i32, %arg1: memref<2x16x128xf32, #tpu.memory_space<vmem>>, %arg2: memref<2x16x16xbf16, #tpu.memory_space<vmem>>, %arg3: memref<736x1xf32, #tpu.memory_space<vmem>>, %arg4: memref<320x48xbf16, #tpu.memory_space<vmem>>, %arg5: memref<32x16xbf16, #tpu.memory_space<vmem>>, %arg6: memref<32x32xbf16, #tpu.memory_space<vmem>>, %arg7: memref<2x32x128xf32, #tpu.memory_space<vmem>>) attributes {dimension_semantics = [#tpu.dimension_semantics<arbitrary>], iteration_bounds = array<i64: 1>, scalar_prefetch = 0 : i64, scratch_operands = 0 : i64, tpu.core_type = #tpu.core_type<tc>, window_params = [{pipeline_mode = #tpu.pipeline_mode<synchronous>, transform_indices = @transform_0, window_bounds = array<i64: 2, 16, 128>}, {pipeline_mode = #tpu.pipeline_mode<synchronous>, transform_indices = @transform_1, window_bounds = array<i64: 2, 16, 16>}, {pipeline_mode = #tpu.pipeline_mode<synchronous>, transform_indices = @transform_2, window_bounds = array<i64: 736, 1>}, {pipeline_mode = #tpu.pipeline_mode<synchronous>, transform_indices = @transform_3, window_bounds = array<i64: 320, 48>}, {pipeline_mode = #tpu.pipeline_mode<synchronous>, transform_indices = @transform_4, window_bounds = array<i64: 32, 16>}, {pipeline_mode = #tpu.pipeline_mode<synchronous>, transform_indices = @transform_5, window_bounds = array<i64: 32, 32>}, {pipeline_mode = #tpu.pipeline_mode<synchronous>, transform_indices = @transform_6, window_bounds = array<i64: 2, 32, 128>}]} {
    %0 = tpu.iota {dimensions = array<i32: 1>} : vector<1x256xi32>
    %c128_i32 = arith.constant 128 : i32
    %c0_i32 = arith.constant 0 : i32
    %1 = arith.cmpi eq, %c128_i32, %c0_i32 : i32
    %c1_i32 = arith.constant 1 : i32
    %2 = arith.select %1, %c1_i32, %c128_i32 : i32
    %3 = vector.broadcast %2 : i32 to vector<1x256xi32>
    %4 = arith.remsi %0, %3 : vector<1x256xi32>
    %c0_i32_0 = arith.constant 0 : i32
    %5 = vector.broadcast %c0_i32_0 : i32 to vector<1x256xi32>
    %6 = arith.cmpi ne, %4, %5 : vector<1x256xi32>
    %c0_i32_1 = arith.constant 0 : i32
    %7 = vector.broadcast %c0_i32_1 : i32 to vector<1x256xi32>
    %8 = arith.cmpi slt, %4, %7 : vector<1x256xi32>
    %c0_i32_2 = arith.constant 0 : i32
    %9 = arith.cmpi slt, %2, %c0_i32_2 : i32
    %10 = vector.broadcast %9 : i1 to vector<1x256xi1>
    %11 = vector.broadcast %10 : vector<1x256xi1> to vector<1x256xi1>
    %12 = arith.xori %8, %11 : vector<1x256xi1>
    %13 = arith.andi %12, %6 : vector<1x256xi1>
    %14 = vector.broadcast %2 : i32 to vector<1x256xi32>
    %15 = arith.addi %4, %14 : vector<1x256xi32>
    %16 = arith.select %13, %15, %4 : vector<1x256xi1>, vector<1x256xi32>
    %c0 = arith.constant 0 : index
    %c0_3 = arith.constant 0 : index
    %c0_4 = arith.constant 0 : index
    %17 = vector.load %arg2[%c0, %c0_3, %c0_4] : memref<2x16x16xbf16, #tpu.memory_space<vmem>>, vector<1x16x16xbf16>
    %18 = vector.shape_cast %17 : vector<1x16x16xbf16> to vector<16x16xbf16>
    %c0_5 = arith.constant 0 : index
    %c0_6 = arith.constant 0 : index
    %c0_7 = arith.constant 0 : index
    %19 = vector.load %arg1[%c0_5, %c0_6, %c0_7] : memref<2x16x128xf32, #tpu.memory_space<vmem>>, vector<1x16x128xf32>
    %20 = vector.shape_cast %19 : vector<1x16x128xf32> to vector<16x128xf32>
    %21 = arith.truncf %20 : vector<16x128xf32> to vector<16x128xbf16>
    %cst = arith.constant dense<0.000000e+00> : vector<16x128xf32>
    %22 = tpu.matmul %18, %21, %cst {dimension_numbers = #tpu.dot_dimension_numbers<[1], [0], [0], [1], [0, 0, 1, 1], [], []>} : vector<16x16xbf16>, vector<16x128xbf16>, vector<16x128xf32> -> vector<16x128xf32>
    %c0_8 = arith.constant 0 : index
    %c0_9 = arith.constant 0 : index
    %23 = vector.load %arg3[%c0_8, %c0_9] : memref<736x1xf32, #tpu.memory_space<vmem>>, vector<16x1xf32>
    %24 = vector.broadcast %23 : vector<16x1xf32> to vector<16x128xf32>
    %25 = arith.addf %22, %24 : vector<16x128xf32>
    %c1 = arith.constant 1 : index
    %c0_10 = arith.constant 0 : index
    %c0_11 = arith.constant 0 : index
    %26 = vector.load %arg2[%c1, %c0_10, %c0_11] : memref<2x16x16xbf16, #tpu.memory_space<vmem>>, vector<1x16x16xbf16>
    %27 = vector.shape_cast %26 : vector<1x16x16xbf16> to vector<16x16xbf16>
    %c1_12 = arith.constant 1 : index
    %c0_13 = arith.constant 0 : index
    %c0_14 = arith.constant 0 : index
    %28 = vector.load %arg1[%c1_12, %c0_13, %c0_14] : memref<2x16x128xf32, #tpu.memory_space<vmem>>, vector<1x16x128xf32>
    %29 = vector.shape_cast %28 : vector<1x16x128xf32> to vector<16x128xf32>
    %30 = arith.truncf %29 : vector<16x128xf32> to vector<16x128xbf16>
    %cst_15 = arith.constant dense<0.000000e+00> : vector<16x128xf32>
    %31 = tpu.matmul %27, %30, %cst_15 {dimension_numbers = #tpu.dot_dimension_numbers<[1], [0], [0], [1], [0, 0, 1, 1], [], []>} : vector<16x16xbf16>, vector<16x128xbf16>, vector<16x128xf32> -> vector<16x128xf32>
    %c16 = arith.constant 16 : index
    %c0_16 = arith.constant 0 : index
    %32 = vector.load %arg3[%c16, %c0_16] : memref<736x1xf32, #tpu.memory_space<vmem>>, vector<16x1xf32>
    %33 = vector.broadcast %32 : vector<16x1xf32> to vector<16x128xf32>
    %34 = arith.addf %31, %33 : vector<16x128xf32>
    %35 = tpu.concatenate %25, %34 in 1 : vector<16x128xf32>, vector<16x128xf32> -> vector<16x256xf32>
    %c0_17 = arith.constant 0 : index
    %c0_18 = arith.constant 0 : index
    %36 = vector.load %arg4[%c0_17, %c0_18] : memref<320x48xbf16, #tpu.memory_space<vmem>>, vector<16x48xbf16>
    %c16_19 = arith.constant 16 : index
    %c0_20 = arith.constant 0 : index
    %37 = vector.load %arg4[%c16_19, %c0_20] : memref<320x48xbf16, #tpu.memory_space<vmem>>, vector<16x48xbf16>
    %c32 = arith.constant 32 : index
    %c0_21 = arith.constant 0 : index
    %38 = vector.load %arg4[%c32, %c0_21] : memref<320x48xbf16, #tpu.memory_space<vmem>>, vector<32x48xbf16>
    %c32_22 = arith.constant 32 : index
    %c0_23 = arith.constant 0 : index
    %39 = vector.load %arg3[%c32_22, %c0_23] : memref<736x1xf32, #tpu.memory_space<vmem>>, vector<16x1xf32>
    %c48 = arith.constant 48 : index
    %c0_24 = arith.constant 0 : index
    %40 = vector.load %arg3[%c48, %c0_24] : memref<736x1xf32, #tpu.memory_space<vmem>>, vector<16x1xf32>
    %c64 = arith.constant 64 : index
    %c0_25 = arith.constant 0 : index
    %41 = vector.load %arg3[%c64, %c0_25] : memref<736x1xf32, #tpu.memory_space<vmem>>, vector<16x1xf32>
    %c80 = arith.constant 80 : index
    %c0_26 = arith.constant 0 : index
    %42 = vector.load %arg3[%c80, %c0_26] : memref<736x1xf32, #tpu.memory_space<vmem>>, vector<16x1xf32>
    %c96 = arith.constant 96 : index
    %c0_27 = arith.constant 0 : index
    %43 = vector.load %arg3[%c96, %c0_27] : memref<736x1xf32, #tpu.memory_space<vmem>>, vector<16x1xf32>
    %c112 = arith.constant 112 : index
    %c0_28 = arith.constant 0 : index
    %44 = vector.load %arg3[%c112, %c0_28] : memref<736x1xf32, #tpu.memory_space<vmem>>, vector<16x1xf32>
    %c128 = arith.constant 128 : index
    %c0_29 = arith.constant 0 : index
    %45 = vector.load %arg3[%c128, %c0_29] : memref<736x1xf32, #tpu.memory_space<vmem>>, vector<32x1xf32>
    %cst_30 = arith.constant 0.000000e+00 : f32
    %46 = vector.broadcast %cst_30 : f32 to vector<16x4xf32>
    %c4_i32 = arith.constant 4 : i32
    %47 = vector.broadcast %c4_i32 : i32 to vector<1x256xi32>
    %48 = arith.cmpi sge, %16, %47 : vector<1x256xi32>
    %c124_i32 = arith.constant 124 : i32
    %49 = vector.broadcast %c124_i32 : i32 to vector<1x256xi32>
    %50 = arith.cmpi slt, %16, %49 : vector<1x256xi32>
    %51 = vector.extract_strided_slice %35 {offsets = [0, 0], sizes = [16, 252], strides = [1, 1]} : vector<16x256xf32> to vector<16x252xf32>
    %52 = tpu.concatenate %46, %51 in 1 : vector<16x4xf32>, vector<16x252xf32> -> vector<16x256xf32>
    %53 = vector.extract_strided_slice %35 {offsets = [0, 4], sizes = [16, 252], strides = [1, 1]} : vector<16x256xf32> to vector<16x252xf32>
    %54 = tpu.concatenate %53, %46 in 1 : vector<16x252xf32>, vector<16x4xf32> -> vector<16x256xf32>
    %cst_31 = arith.constant 0.000000e+00 : f32
    %55 = vector.shape_cast %48 : vector<1x256xi1> to vector<1x256xi1>
    %56 = vector.broadcast %55 : vector<1x256xi1> to vector<16x256xi1>
    %57 = vector.broadcast %cst_31 : f32 to vector<16x256xf32>
    %58 = arith.select %56, %52, %57 : vector<16x256xi1>, vector<16x256xf32>
    %cst_32 = arith.constant 0.000000e+00 : f32
    %59 = vector.shape_cast %50 : vector<1x256xi1> to vector<1x256xi1>
    %60 = vector.broadcast %59 : vector<1x256xi1> to vector<16x256xi1>
    %61 = vector.broadcast %cst_32 : f32 to vector<16x256xf32>
    %62 = arith.select %60, %54, %61 : vector<16x256xi1>, vector<16x256xf32>
    %63 = tpu.concatenate %58, %35, %62 in 0 : vector<16x256xf32>, vector<16x256xf32>, vector<16x256xf32> -> vector<48x256xf32>
    %64 = arith.truncf %63 : vector<48x256xf32> to vector<48x256xbf16>
    %cst_33 = arith.constant dense<0.000000e+00> : vector<16x256xf32>
    %65 = tpu.matmul %36, %64, %cst_33 {dimension_numbers = #tpu.dot_dimension_numbers<[1], [0], [0], [1], [0, 0, 1, 1], [], []>} : vector<16x48xbf16>, vector<48x256xbf16>, vector<16x256xf32> -> vector<16x256xf32>
    %66 = vector.broadcast %39 : vector<16x1xf32> to vector<16x256xf32>
    %67 = arith.addf %65, %66 : vector<16x256xf32>
    %68 = arith.addf %67, %35 : vector<16x256xf32>
    %69 = vector.broadcast %40 : vector<16x1xf32> to vector<16x256xf32>
    %70 = arith.mulf %68, %69 : vector<16x256xf32>
    %71 = vector.broadcast %41 : vector<16x1xf32> to vector<16x256xf32>
    %72 = arith.addf %70, %71 : vector<16x256xf32>
    %cst_34 = arith.constant -1.702000e+00 : f32
    %73 = vector.broadcast %cst_34 : f32 to vector<16x256xf32>
    %74 = arith.mulf %73, %72 : vector<16x256xf32>
    %75 = math.exp %74 : vector<16x256xf32>
    %cst_35 = arith.constant 1.000000e+00 : f32
    %76 = vector.broadcast %cst_35 : f32 to vector<16x256xf32>
    %77 = arith.addf %76, %75 : vector<16x256xf32>
    %cst_36 = arith.constant 1.000000e+00 : f32
    %78 = vector.broadcast %cst_36 : f32 to vector<16x256xf32>
    %79 = arith.divf %78, %77 : vector<16x256xf32>
    %80 = arith.mulf %72, %79 : vector<16x256xf32>
    %cst_37 = arith.constant 0.000000e+00 : f32
    %81 = vector.broadcast %cst_37 : f32 to vector<16x8xf32>
    %c8_i32 = arith.constant 8 : i32
    %82 = vector.broadcast %c8_i32 : i32 to vector<1x256xi32>
    %83 = arith.cmpi sge, %16, %82 : vector<1x256xi32>
    %c120_i32 = arith.constant 120 : i32
    %84 = vector.broadcast %c120_i32 : i32 to vector<1x256xi32>
    %85 = arith.cmpi slt, %16, %84 : vector<1x256xi32>
    %86 = vector.extract_strided_slice %80 {offsets = [0, 0], sizes = [16, 248], strides = [1, 1]} : vector<16x256xf32> to vector<16x248xf32>
    %87 = tpu.concatenate %81, %86 in 1 : vector<16x8xf32>, vector<16x248xf32> -> vector<16x256xf32>
    %88 = vector.extract_strided_slice %80 {offsets = [0, 8], sizes = [16, 248], strides = [1, 1]} : vector<16x256xf32> to vector<16x248xf32>
    %89 = tpu.concatenate %88, %81 in 1 : vector<16x248xf32>, vector<16x8xf32> -> vector<16x256xf32>
    %cst_38 = arith.constant 0.000000e+00 : f32
    %90 = vector.shape_cast %83 : vector<1x256xi1> to vector<1x256xi1>
    %91 = vector.broadcast %90 : vector<1x256xi1> to vector<16x256xi1>
    %92 = vector.broadcast %cst_38 : f32 to vector<16x256xf32>
    %93 = arith.select %91, %87, %92 : vector<16x256xi1>, vector<16x256xf32>
    %cst_39 = arith.constant 0.000000e+00 : f32
    %94 = vector.shape_cast %85 : vector<1x256xi1> to vector<1x256xi1>
    %95 = vector.broadcast %94 : vector<1x256xi1> to vector<16x256xi1>
    %96 = vector.broadcast %cst_39 : f32 to vector<16x256xf32>
    %97 = arith.select %95, %89, %96 : vector<16x256xi1>, vector<16x256xf32>
    %98 = tpu.concatenate %93, %80, %97 in 0 : vector<16x256xf32>, vector<16x256xf32>, vector<16x256xf32> -> vector<48x256xf32>
    %99 = arith.truncf %98 : vector<48x256xf32> to vector<48x256xbf16>
    %cst_40 = arith.constant dense<0.000000e+00> : vector<16x256xf32>
    %100 = tpu.matmul %37, %99, %cst_40 {dimension_numbers = #tpu.dot_dimension_numbers<[1], [0], [0], [1], [0, 0, 1, 1], [], []>} : vector<16x48xbf16>, vector<48x256xbf16>, vector<16x256xf32> -> vector<16x256xf32>
    %101 = vector.broadcast %42 : vector<16x1xf32> to vector<16x256xf32>
    %102 = arith.addf %100, %101 : vector<16x256xf32>
    %103 = arith.addf %102, %80 : vector<16x256xf32>
    %104 = vector.broadcast %43 : vector<16x1xf32> to vector<16x256xf32>
    %105 = arith.mulf %103, %104 : vector<16x256xf32>
    %106 = vector.broadcast %44 : vector<16x1xf32> to vector<16x256xf32>
    %107 = arith.addf %105, %106 : vector<16x256xf32>
    %cst_41 = arith.constant -1.702000e+00 : f32
    %108 = vector.broadcast %cst_41 : f32 to vector<16x256xf32>
    %109 = arith.mulf %108, %107 : vector<16x256xf32>
    %110 = math.exp %109 : vector<16x256xf32>
    %cst_42 = arith.constant 1.000000e+00 : f32
    %111 = vector.broadcast %cst_42 : f32 to vector<16x256xf32>
    %112 = arith.addf %111, %110 : vector<16x256xf32>
    %cst_43 = arith.constant 1.000000e+00 : f32
    %113 = vector.broadcast %cst_43 : f32 to vector<16x256xf32>
    %114 = arith.divf %113, %112 : vector<16x256xf32>
    %115 = arith.mulf %107, %114 : vector<16x256xf32>
    %cst_44 = arith.constant 0.000000e+00 : f32
    %116 = vector.broadcast %cst_44 : f32 to vector<16x1xf32>
    %c1_i32_45 = arith.constant 1 : i32
    %117 = vector.broadcast %c1_i32_45 : i32 to vector<1x256xi32>
    %118 = arith.cmpi sge, %16, %117 : vector<1x256xi32>
    %c127_i32 = arith.constant 127 : i32
    %119 = vector.broadcast %c127_i32 : i32 to vector<1x256xi32>
    %120 = arith.cmpi slt, %16, %119 : vector<1x256xi32>
    %121 = vector.extract_strided_slice %115 {offsets = [0, 0], sizes = [16, 255], strides = [1, 1]} : vector<16x256xf32> to vector<16x255xf32>
    %122 = tpu.concatenate %116, %121 in 1 : vector<16x1xf32>, vector<16x255xf32> -> vector<16x256xf32>
    %123 = vector.extract_strided_slice %115 {offsets = [0, 1], sizes = [16, 255], strides = [1, 1]} : vector<16x256xf32> to vector<16x255xf32>
    %124 = tpu.concatenate %123, %116 in 1 : vector<16x255xf32>, vector<16x1xf32> -> vector<16x256xf32>
    %cst_46 = arith.constant 0.000000e+00 : f32
    %125 = vector.shape_cast %118 : vector<1x256xi1> to vector<1x256xi1>
    %126 = vector.broadcast %125 : vector<1x256xi1> to vector<16x256xi1>
    %127 = vector.broadcast %cst_46 : f32 to vector<16x256xf32>
    %128 = arith.select %126, %122, %127 : vector<16x256xi1>, vector<16x256xf32>
    %cst_47 = arith.constant 0.000000e+00 : f32
    %129 = vector.shape_cast %120 : vector<1x256xi1> to vector<1x256xi1>
    %130 = vector.broadcast %129 : vector<1x256xi1> to vector<16x256xi1>
    %131 = vector.broadcast %cst_47 : f32 to vector<16x256xf32>
    %132 = arith.select %130, %124, %131 : vector<16x256xi1>, vector<16x256xf32>
    %133 = tpu.concatenate %128, %115, %132 in 0 : vector<16x256xf32>, vector<16x256xf32>, vector<16x256xf32> -> vector<48x256xf32>
    %134 = arith.truncf %133 : vector<48x256xf32> to vector<48x256xbf16>
    %cst_48 = arith.constant dense<0.000000e+00> : vector<32x256xf32>
    %135 = tpu.matmul %38, %134, %cst_48 {dimension_numbers = #tpu.dot_dimension_numbers<[1], [0], [0], [1], [0, 0, 1, 1], [], []>} : vector<32x48xbf16>, vector<48x256xbf16>, vector<32x256xf32> -> vector<32x256xf32>
    %136 = vector.broadcast %45 : vector<32x1xf32> to vector<32x256xf32>
    %137 = arith.addf %135, %136 : vector<32x256xf32>
    %138 = vector.extract_strided_slice %137 {offsets = [0, 0], sizes = [16, 256], strides = [1, 1]} : vector<32x256xf32> to vector<16x256xf32>
    %139 = vector.extract_strided_slice %137 {offsets = [16, 0], sizes = [16, 256], strides = [1, 1]} : vector<32x256xf32> to vector<16x256xf32>
    %cst_49 = arith.constant 0.000000e+00 : f32
    %140 = vector.broadcast %cst_49 : f32 to vector<16x256xf32>
    %141 = arith.subf %140, %139 : vector<16x256xf32>
    %142 = math.exp %141 : vector<16x256xf32>
    %cst_50 = arith.constant 1.000000e+00 : f32
    %143 = vector.broadcast %cst_50 : f32 to vector<16x256xf32>
    %144 = arith.addf %143, %142 : vector<16x256xf32>
    %cst_51 = arith.constant 1.000000e+00 : f32
    %145 = vector.broadcast %cst_51 : f32 to vector<16x256xf32>
    %146 = arith.divf %145, %144 : vector<16x256xf32>
    %147 = arith.mulf %138, %146 : vector<16x256xf32>
    %c64_52 = arith.constant 64 : index
    %c0_53 = arith.constant 0 : index
    %148 = vector.load %arg4[%c64_52, %c0_53] : memref<320x48xbf16, #tpu.memory_space<vmem>>, vector<16x48xbf16>
    %c80_54 = arith.constant 80 : index
    %c0_55 = arith.constant 0 : index
    %149 = vector.load %arg4[%c80_54, %c0_55] : memref<320x48xbf16, #tpu.memory_space<vmem>>, vector<16x48xbf16>
    %c96_56 = arith.constant 96 : index
    %c0_57 = arith.constant 0 : index
    %150 = vector.load %arg4[%c96_56, %c0_57] : memref<320x48xbf16, #tpu.memory_space<vmem>>, vector<32x48xbf16>
    %c160 = arith.constant 160 : index
    %c0_58 = arith.constant 0 : index
    %151 = vector.load %arg3[%c160, %c0_58] : memref<736x1xf32, #tpu.memory_space<vmem>>, vector<16x1xf32>
    %c176 = arith.constant 176 : index
    %c0_59 = arith.constant 0 : index
    %152 = vector.load %arg3[%c176, %c0_59] : memref<736x1xf32, #tpu.memory_space<vmem>>, vector<16x1xf32>
    %c192 = arith.constant 192 : index
    %c0_60 = arith.constant 0 : index
    %153 = vector.load %arg3[%c192, %c0_60] : memref<736x1xf32, #tpu.memory_space<vmem>>, vector<16x1xf32>
    %c208 = arith.constant 208 : index
    %c0_61 = arith.constant 0 : index
    %154 = vector.load %arg3[%c208, %c0_61] : memref<736x1xf32, #tpu.memory_space<vmem>>, vector<16x1xf32>
    %c224 = arith.constant 224 : index
    %c0_62 = arith.constant 0 : index
    %155 = vector.load %arg3[%c224, %c0_62] : memref<736x1xf32, #tpu.memory_space<vmem>>, vector<16x1xf32>
    %c240 = arith.constant 240 : index
    %c0_63 = arith.constant 0 : index
    %156 = vector.load %arg3[%c240, %c0_63] : memref<736x1xf32, #tpu.memory_space<vmem>>, vector<16x1xf32>
    %c256 = arith.constant 256 : index
    %c0_64 = arith.constant 0 : index
    %157 = vector.load %arg3[%c256, %c0_64] : memref<736x1xf32, #tpu.memory_space<vmem>>, vector<32x1xf32>
    %cst_65 = arith.constant 0.000000e+00 : f32
    %158 = vector.broadcast %cst_65 : f32 to vector<16x16xf32>
    %c16_i32 = arith.constant 16 : i32
    %159 = vector.broadcast %c16_i32 : i32 to vector<1x256xi32>
    %160 = arith.cmpi sge, %16, %159 : vector<1x256xi32>
    %c112_i32 = arith.constant 112 : i32
    %161 = vector.broadcast %c112_i32 : i32 to vector<1x256xi32>
    %162 = arith.cmpi slt, %16, %161 : vector<1x256xi32>
    %163 = vector.extract_strided_slice %147 {offsets = [0, 0], sizes = [16, 240], strides = [1, 1]} : vector<16x256xf32> to vector<16x240xf32>
    %164 = tpu.concatenate %158, %163 in 1 : vector<16x16xf32>, vector<16x240xf32> -> vector<16x256xf32>
    %165 = vector.extract_strided_slice %147 {offsets = [0, 16], sizes = [16, 240], strides = [1, 1]} : vector<16x256xf32> to vector<16x240xf32>
    %166 = tpu.concatenate %165, %158 in 1 : vector<16x240xf32>, vector<16x16xf32> -> vector<16x256xf32>
    %cst_66 = arith.constant 0.000000e+00 : f32
    %167 = vector.shape_cast %160 : vector<1x256xi1> to vector<1x256xi1>
    %168 = vector.broadcast %167 : vector<1x256xi1> to vector<16x256xi1>
    %169 = vector.broadcast %cst_66 : f32 to vector<16x256xf32>
    %170 = arith.select %168, %164, %169 : vector<16x256xi1>, vector<16x256xf32>
    %cst_67 = arith.constant 0.000000e+00 : f32
    %171 = vector.shape_cast %162 : vector<1x256xi1> to vector<1x256xi1>
    %172 = vector.broadcast %171 : vector<1x256xi1> to vector<16x256xi1>
    %173 = vector.broadcast %cst_67 : f32 to vector<16x256xf32>
    %174 = arith.select %172, %166, %173 : vector<16x256xi1>, vector<16x256xf32>
    %175 = tpu.concatenate %170, %147, %174 in 0 : vector<16x256xf32>, vector<16x256xf32>, vector<16x256xf32> -> vector<48x256xf32>
    %176 = arith.truncf %175 : vector<48x256xf32> to vector<48x256xbf16>
    %cst_68 = arith.constant dense<0.000000e+00> : vector<16x256xf32>
    %177 = tpu.matmul %148, %176, %cst_68 {dimension_numbers = #tpu.dot_dimension_numbers<[1], [0], [0], [1], [0, 0, 1, 1], [], []>} : vector<16x48xbf16>, vector<48x256xbf16>, vector<16x256xf32> -> vector<16x256xf32>
    %178 = vector.broadcast %151 : vector<16x1xf32> to vector<16x256xf32>
    %179 = arith.addf %177, %178 : vector<16x256xf32>
    %180 = arith.addf %179, %147 : vector<16x256xf32>
    %181 = vector.broadcast %152 : vector<16x1xf32> to vector<16x256xf32>
    %182 = arith.mulf %180, %181 : vector<16x256xf32>
    %183 = vector.broadcast %153 : vector<16x1xf32> to vector<16x256xf32>
    %184 = arith.addf %182, %183 : vector<16x256xf32>
    %cst_69 = arith.constant -1.702000e+00 : f32
    %185 = vector.broadcast %cst_69 : f32 to vector<16x256xf32>
    %186 = arith.mulf %185, %184 : vector<16x256xf32>
    %187 = math.exp %186 : vector<16x256xf32>
    %cst_70 = arith.constant 1.000000e+00 : f32
    %188 = vector.broadcast %cst_70 : f32 to vector<16x256xf32>
    %189 = arith.addf %188, %187 : vector<16x256xf32>
    %cst_71 = arith.constant 1.000000e+00 : f32
    %190 = vector.broadcast %cst_71 : f32 to vector<16x256xf32>
    %191 = arith.divf %190, %189 : vector<16x256xf32>
    %192 = arith.mulf %184, %191 : vector<16x256xf32>
    %cst_72 = arith.constant 0.000000e+00 : f32
    %193 = vector.broadcast %cst_72 : f32 to vector<16x1xf32>
    %194 = vector.extract_strided_slice %192 {offsets = [0, 0], sizes = [16, 255], strides = [1, 1]} : vector<16x256xf32> to vector<16x255xf32>
    %195 = tpu.concatenate %193, %194 in 1 : vector<16x1xf32>, vector<16x255xf32> -> vector<16x256xf32>
    %196 = vector.extract_strided_slice %192 {offsets = [0, 1], sizes = [16, 255], strides = [1, 1]} : vector<16x256xf32> to vector<16x255xf32>
    %197 = tpu.concatenate %196, %193 in 1 : vector<16x255xf32>, vector<16x1xf32> -> vector<16x256xf32>
    %cst_73 = arith.constant 0.000000e+00 : f32
    %198 = vector.shape_cast %118 : vector<1x256xi1> to vector<1x256xi1>
    %199 = vector.broadcast %198 : vector<1x256xi1> to vector<16x256xi1>
    %200 = vector.broadcast %cst_73 : f32 to vector<16x256xf32>
    %201 = arith.select %199, %195, %200 : vector<16x256xi1>, vector<16x256xf32>
    %cst_74 = arith.constant 0.000000e+00 : f32
    %202 = vector.shape_cast %120 : vector<1x256xi1> to vector<1x256xi1>
    %203 = vector.broadcast %202 : vector<1x256xi1> to vector<16x256xi1>
    %204 = vector.broadcast %cst_74 : f32 to vector<16x256xf32>
    %205 = arith.select %203, %197, %204 : vector<16x256xi1>, vector<16x256xf32>
    %206 = tpu.concatenate %201, %192, %205 in 0 : vector<16x256xf32>, vector<16x256xf32>, vector<16x256xf32> -> vector<48x256xf32>
    %207 = arith.truncf %206 : vector<48x256xf32> to vector<48x256xbf16>
    %cst_75 = arith.constant dense<0.000000e+00> : vector<16x256xf32>
    %208 = tpu.matmul %149, %207, %cst_75 {dimension_numbers = #tpu.dot_dimension_numbers<[1], [0], [0], [1], [0, 0, 1, 1], [], []>} : vector<16x48xbf16>, vector<48x256xbf16>, vector<16x256xf32> -> vector<16x256xf32>
    %209 = vector.broadcast %154 : vector<16x1xf32> to vector<16x256xf32>
    %210 = arith.addf %208, %209 : vector<16x256xf32>
    %211 = arith.addf %210, %192 : vector<16x256xf32>
    %212 = vector.broadcast %155 : vector<16x1xf32> to vector<16x256xf32>
    %213 = arith.mulf %211, %212 : vector<16x256xf32>
    %214 = vector.broadcast %156 : vector<16x1xf32> to vector<16x256xf32>
    %215 = arith.addf %213, %214 : vector<16x256xf32>
    %cst_76 = arith.constant -1.702000e+00 : f32
    %216 = vector.broadcast %cst_76 : f32 to vector<16x256xf32>
    %217 = arith.mulf %216, %215 : vector<16x256xf32>
    %218 = math.exp %217 : vector<16x256xf32>
    %cst_77 = arith.constant 1.000000e+00 : f32
    %219 = vector.broadcast %cst_77 : f32 to vector<16x256xf32>
    %220 = arith.addf %219, %218 : vector<16x256xf32>
    %cst_78 = arith.constant 1.000000e+00 : f32
    %221 = vector.broadcast %cst_78 : f32 to vector<16x256xf32>
    %222 = arith.divf %221, %220 : vector<16x256xf32>
    %223 = arith.mulf %215, %222 : vector<16x256xf32>
    %cst_79 = arith.constant 0.000000e+00 : f32
    %224 = vector.broadcast %cst_79 : f32 to vector<16x1xf32>
    %225 = vector.extract_strided_slice %223 {offsets = [0, 0], sizes = [16, 255], strides = [1, 1]} : vector<16x256xf32> to vector<16x255xf32>
    %226 = tpu.concatenate %224, %225 in 1 : vector<16x1xf32>, vector<16x255xf32> -> vector<16x256xf32>
    %227 = vector.extract_strided_slice %223 {offsets = [0, 1], sizes = [16, 255], strides = [1, 1]} : vector<16x256xf32> to vector<16x255xf32>
    %228 = tpu.concatenate %227, %224 in 1 : vector<16x255xf32>, vector<16x1xf32> -> vector<16x256xf32>
    %cst_80 = arith.constant 0.000000e+00 : f32
    %229 = vector.shape_cast %118 : vector<1x256xi1> to vector<1x256xi1>
    %230 = vector.broadcast %229 : vector<1x256xi1> to vector<16x256xi1>
    %231 = vector.broadcast %cst_80 : f32 to vector<16x256xf32>
    %232 = arith.select %230, %226, %231 : vector<16x256xi1>, vector<16x256xf32>
    %cst_81 = arith.constant 0.000000e+00 : f32
    %233 = vector.shape_cast %120 : vector<1x256xi1> to vector<1x256xi1>
    %234 = vector.broadcast %233 : vector<1x256xi1> to vector<16x256xi1>
    %235 = vector.broadcast %cst_81 : f32 to vector<16x256xf32>
    %236 = arith.select %234, %228, %235 : vector<16x256xi1>, vector<16x256xf32>
    %237 = tpu.concatenate %232, %223, %236 in 0 : vector<16x256xf32>, vector<16x256xf32>, vector<16x256xf32> -> vector<48x256xf32>
    %238 = arith.truncf %237 : vector<48x256xf32> to vector<48x256xbf16>
    %cst_82 = arith.constant dense<0.000000e+00> : vector<32x256xf32>
    %239 = tpu.matmul %150, %238, %cst_82 {dimension_numbers = #tpu.dot_dimension_numbers<[1], [0], [0], [1], [0, 0, 1, 1], [], []>} : vector<32x48xbf16>, vector<48x256xbf16>, vector<32x256xf32> -> vector<32x256xf32>
    %240 = vector.broadcast %157 : vector<32x1xf32> to vector<32x256xf32>
    %241 = arith.addf %239, %240 : vector<32x256xf32>
    %242 = vector.extract_strided_slice %241 {offsets = [0, 0], sizes = [16, 256], strides = [1, 1]} : vector<32x256xf32> to vector<16x256xf32>
    %243 = vector.extract_strided_slice %241 {offsets = [16, 0], sizes = [16, 256], strides = [1, 1]} : vector<32x256xf32> to vector<16x256xf32>
    %cst_83 = arith.constant 0.000000e+00 : f32
    %244 = vector.broadcast %cst_83 : f32 to vector<16x256xf32>
    %245 = arith.subf %244, %243 : vector<16x256xf32>
    %246 = math.exp %245 : vector<16x256xf32>
    %cst_84 = arith.constant 1.000000e+00 : f32
    %247 = vector.broadcast %cst_84 : f32 to vector<16x256xf32>
    %248 = arith.addf %247, %246 : vector<16x256xf32>
    %cst_85 = arith.constant 1.000000e+00 : f32
    %249 = vector.broadcast %cst_85 : f32 to vector<16x256xf32>
    %250 = arith.divf %249, %248 : vector<16x256xf32>
    %251 = arith.mulf %242, %250 : vector<16x256xf32>
    %c128_86 = arith.constant 128 : index
    %c0_87 = arith.constant 0 : index
    %252 = vector.load %arg4[%c128_86, %c0_87] : memref<320x48xbf16, #tpu.memory_space<vmem>>, vector<16x48xbf16>
    %c144 = arith.constant 144 : index
    %c0_88 = arith.constant 0 : index
    %253 = vector.load %arg4[%c144, %c0_88] : memref<320x48xbf16, #tpu.memory_space<vmem>>, vector<16x48xbf16>
    %c160_89 = arith.constant 160 : index
    %c0_90 = arith.constant 0 : index
    %254 = vector.load %arg4[%c160_89, %c0_90] : memref<320x48xbf16, #tpu.memory_space<vmem>>, vector<32x48xbf16>
    %c288 = arith.constant 288 : index
    %c0_91 = arith.constant 0 : index
    %255 = vector.load %arg3[%c288, %c0_91] : memref<736x1xf32, #tpu.memory_space<vmem>>, vector<16x1xf32>
    %c304 = arith.constant 304 : index
    %c0_92 = arith.constant 0 : index
    %256 = vector.load %arg3[%c304, %c0_92] : memref<736x1xf32, #tpu.memory_space<vmem>>, vector<16x1xf32>
    %c320 = arith.constant 320 : index
    %c0_93 = arith.constant 0 : index
    %257 = vector.load %arg3[%c320, %c0_93] : memref<736x1xf32, #tpu.memory_space<vmem>>, vector<16x1xf32>
    %c336 = arith.constant 336 : index
    %c0_94 = arith.constant 0 : index
    %258 = vector.load %arg3[%c336, %c0_94] : memref<736x1xf32, #tpu.memory_space<vmem>>, vector<16x1xf32>
    %c352 = arith.constant 352 : index
    %c0_95 = arith.constant 0 : index
    %259 = vector.load %arg3[%c352, %c0_95] : memref<736x1xf32, #tpu.memory_space<vmem>>, vector<16x1xf32>
    %c368 = arith.constant 368 : index
    %c0_96 = arith.constant 0 : index
    %260 = vector.load %arg3[%c368, %c0_96] : memref<736x1xf32, #tpu.memory_space<vmem>>, vector<16x1xf32>
    %c384 = arith.constant 384 : index
    %c0_97 = arith.constant 0 : index
    %261 = vector.load %arg3[%c384, %c0_97] : memref<736x1xf32, #tpu.memory_space<vmem>>, vector<32x1xf32>
    %cst_98 = arith.constant 0.000000e+00 : f32
    %262 = vector.broadcast %cst_98 : f32 to vector<16x2xf32>
    %c2_i32 = arith.constant 2 : i32
    %263 = vector.broadcast %c2_i32 : i32 to vector<1x256xi32>
    %264 = arith.cmpi sge, %16, %263 : vector<1x256xi32>
    %c126_i32 = arith.constant 126 : i32
    %265 = vector.broadcast %c126_i32 : i32 to vector<1x256xi32>
    %266 = arith.cmpi slt, %16, %265 : vector<1x256xi32>
    %267 = vector.extract_strided_slice %251 {offsets = [0, 0], sizes = [16, 254], strides = [1, 1]} : vector<16x256xf32> to vector<16x254xf32>
    %268 = tpu.concatenate %262, %267 in 1 : vector<16x2xf32>, vector<16x254xf32> -> vector<16x256xf32>
    %269 = vector.extract_strided_slice %251 {offsets = [0, 2], sizes = [16, 254], strides = [1, 1]} : vector<16x256xf32> to vector<16x254xf32>
    %270 = tpu.concatenate %269, %262 in 1 : vector<16x254xf32>, vector<16x2xf32> -> vector<16x256xf32>
    %cst_99 = arith.constant 0.000000e+00 : f32
    %271 = vector.shape_cast %264 : vector<1x256xi1> to vector<1x256xi1>
    %272 = vector.broadcast %271 : vector<1x256xi1> to vector<16x256xi1>
    %273 = vector.broadcast %cst_99 : f32 to vector<16x256xf32>
    %274 = arith.select %272, %268, %273 : vector<16x256xi1>, vector<16x256xf32>
    %cst_100 = arith.constant 0.000000e+00 : f32
    %275 = vector.shape_cast %266 : vector<1x256xi1> to vector<1x256xi1>
    %276 = vector.broadcast %275 : vector<1x256xi1> to vector<16x256xi1>
    %277 = vector.broadcast %cst_100 : f32 to vector<16x256xf32>
    %278 = arith.select %276, %270, %277 : vector<16x256xi1>, vector<16x256xf32>
    %279 = tpu.concatenate %274, %251, %278 in 0 : vector<16x256xf32>, vector<16x256xf32>, vector<16x256xf32> -> vector<48x256xf32>
    %280 = arith.truncf %279 : vector<48x256xf32> to vector<48x256xbf16>
    %cst_101 = arith.constant dense<0.000000e+00> : vector<16x256xf32>
    %281 = tpu.matmul %252, %280, %cst_101 {dimension_numbers = #tpu.dot_dimension_numbers<[1], [0], [0], [1], [0, 0, 1, 1], [], []>} : vector<16x48xbf16>, vector<48x256xbf16>, vector<16x256xf32> -> vector<16x256xf32>
    %282 = vector.broadcast %255 : vector<16x1xf32> to vector<16x256xf32>
    %283 = arith.addf %281, %282 : vector<16x256xf32>
    %284 = arith.addf %283, %251 : vector<16x256xf32>
    %285 = vector.broadcast %256 : vector<16x1xf32> to vector<16x256xf32>
    %286 = arith.mulf %284, %285 : vector<16x256xf32>
    %287 = vector.broadcast %257 : vector<16x1xf32> to vector<16x256xf32>
    %288 = arith.addf %286, %287 : vector<16x256xf32>
    %cst_102 = arith.constant -1.702000e+00 : f32
    %289 = vector.broadcast %cst_102 : f32 to vector<16x256xf32>
    %290 = arith.mulf %289, %288 : vector<16x256xf32>
    %291 = math.exp %290 : vector<16x256xf32>
    %cst_103 = arith.constant 1.000000e+00 : f32
    %292 = vector.broadcast %cst_103 : f32 to vector<16x256xf32>
    %293 = arith.addf %292, %291 : vector<16x256xf32>
    %cst_104 = arith.constant 1.000000e+00 : f32
    %294 = vector.broadcast %cst_104 : f32 to vector<16x256xf32>
    %295 = arith.divf %294, %293 : vector<16x256xf32>
    %296 = arith.mulf %288, %295 : vector<16x256xf32>
    %cst_105 = arith.constant 0.000000e+00 : f32
    %297 = vector.broadcast %cst_105 : f32 to vector<16x4xf32>
    %298 = vector.extract_strided_slice %296 {offsets = [0, 0], sizes = [16, 252], strides = [1, 1]} : vector<16x256xf32> to vector<16x252xf32>
    %299 = tpu.concatenate %297, %298 in 1 : vector<16x4xf32>, vector<16x252xf32> -> vector<16x256xf32>
    %300 = vector.extract_strided_slice %296 {offsets = [0, 4], sizes = [16, 252], strides = [1, 1]} : vector<16x256xf32> to vector<16x252xf32>
    %301 = tpu.concatenate %300, %297 in 1 : vector<16x252xf32>, vector<16x4xf32> -> vector<16x256xf32>
    %cst_106 = arith.constant 0.000000e+00 : f32
    %302 = vector.shape_cast %48 : vector<1x256xi1> to vector<1x256xi1>
    %303 = vector.broadcast %302 : vector<1x256xi1> to vector<16x256xi1>
    %304 = vector.broadcast %cst_106 : f32 to vector<16x256xf32>
    %305 = arith.select %303, %299, %304 : vector<16x256xi1>, vector<16x256xf32>
    %cst_107 = arith.constant 0.000000e+00 : f32
    %306 = vector.shape_cast %50 : vector<1x256xi1> to vector<1x256xi1>
    %307 = vector.broadcast %306 : vector<1x256xi1> to vector<16x256xi1>
    %308 = vector.broadcast %cst_107 : f32 to vector<16x256xf32>
    %309 = arith.select %307, %301, %308 : vector<16x256xi1>, vector<16x256xf32>
    %310 = tpu.concatenate %305, %296, %309 in 0 : vector<16x256xf32>, vector<16x256xf32>, vector<16x256xf32> -> vector<48x256xf32>
    %311 = arith.truncf %310 : vector<48x256xf32> to vector<48x256xbf16>
    %cst_108 = arith.constant dense<0.000000e+00> : vector<16x256xf32>
    %312 = tpu.matmul %253, %311, %cst_108 {dimension_numbers = #tpu.dot_dimension_numbers<[1], [0], [0], [1], [0, 0, 1, 1], [], []>} : vector<16x48xbf16>, vector<48x256xbf16>, vector<16x256xf32> -> vector<16x256xf32>
    %313 = vector.broadcast %258 : vector<16x1xf32> to vector<16x256xf32>
    %314 = arith.addf %312, %313 : vector<16x256xf32>
    %315 = arith.addf %314, %296 : vector<16x256xf32>
    %316 = vector.broadcast %259 : vector<16x1xf32> to vector<16x256xf32>
    %317 = arith.mulf %315, %316 : vector<16x256xf32>
    %318 = vector.broadcast %260 : vector<16x1xf32> to vector<16x256xf32>
    %319 = arith.addf %317, %318 : vector<16x256xf32>
    %cst_109 = arith.constant -1.702000e+00 : f32
    %320 = vector.broadcast %cst_109 : f32 to vector<16x256xf32>
    %321 = arith.mulf %320, %319 : vector<16x256xf32>
    %322 = math.exp %321 : vector<16x256xf32>
    %cst_110 = arith.constant 1.000000e+00 : f32
    %323 = vector.broadcast %cst_110 : f32 to vector<16x256xf32>
    %324 = arith.addf %323, %322 : vector<16x256xf32>
    %cst_111 = arith.constant 1.000000e+00 : f32
    %325 = vector.broadcast %cst_111 : f32 to vector<16x256xf32>
    %326 = arith.divf %325, %324 : vector<16x256xf32>
    %327 = arith.mulf %319, %326 : vector<16x256xf32>
    %cst_112 = arith.constant 0.000000e+00 : f32
    %328 = vector.broadcast %cst_112 : f32 to vector<16x1xf32>
    %329 = vector.extract_strided_slice %327 {offsets = [0, 0], sizes = [16, 255], strides = [1, 1]} : vector<16x256xf32> to vector<16x255xf32>
    %330 = tpu.concatenate %328, %329 in 1 : vector<16x1xf32>, vector<16x255xf32> -> vector<16x256xf32>
    %331 = vector.extract_strided_slice %327 {offsets = [0, 1], sizes = [16, 255], strides = [1, 1]} : vector<16x256xf32> to vector<16x255xf32>
    %332 = tpu.concatenate %331, %328 in 1 : vector<16x255xf32>, vector<16x1xf32> -> vector<16x256xf32>
    %cst_113 = arith.constant 0.000000e+00 : f32
    %333 = vector.shape_cast %118 : vector<1x256xi1> to vector<1x256xi1>
    %334 = vector.broadcast %333 : vector<1x256xi1> to vector<16x256xi1>
    %335 = vector.broadcast %cst_113 : f32 to vector<16x256xf32>
    %336 = arith.select %334, %330, %335 : vector<16x256xi1>, vector<16x256xf32>
    %cst_114 = arith.constant 0.000000e+00 : f32
    %337 = vector.shape_cast %120 : vector<1x256xi1> to vector<1x256xi1>
    %338 = vector.broadcast %337 : vector<1x256xi1> to vector<16x256xi1>
    %339 = vector.broadcast %cst_114 : f32 to vector<16x256xf32>
    %340 = arith.select %338, %332, %339 : vector<16x256xi1>, vector<16x256xf32>
    %341 = tpu.concatenate %336, %327, %340 in 0 : vector<16x256xf32>, vector<16x256xf32>, vector<16x256xf32> -> vector<48x256xf32>
    %342 = arith.truncf %341 : vector<48x256xf32> to vector<48x256xbf16>
    %cst_115 = arith.constant dense<0.000000e+00> : vector<32x256xf32>
    %343 = tpu.matmul %254, %342, %cst_115 {dimension_numbers = #tpu.dot_dimension_numbers<[1], [0], [0], [1], [0, 0, 1, 1], [], []>} : vector<32x48xbf16>, vector<48x256xbf16>, vector<32x256xf32> -> vector<32x256xf32>
    %344 = vector.broadcast %261 : vector<32x1xf32> to vector<32x256xf32>
    %345 = arith.addf %343, %344 : vector<32x256xf32>
    %346 = vector.extract_strided_slice %345 {offsets = [0, 0], sizes = [16, 256], strides = [1, 1]} : vector<32x256xf32> to vector<16x256xf32>
    %347 = vector.extract_strided_slice %345 {offsets = [16, 0], sizes = [16, 256], strides = [1, 1]} : vector<32x256xf32> to vector<16x256xf32>
    %cst_116 = arith.constant 0.000000e+00 : f32
    %348 = vector.broadcast %cst_116 : f32 to vector<16x256xf32>
    %349 = arith.subf %348, %347 : vector<16x256xf32>
    %350 = math.exp %349 : vector<16x256xf32>
    %cst_117 = arith.constant 1.000000e+00 : f32
    %351 = vector.broadcast %cst_117 : f32 to vector<16x256xf32>
    %352 = arith.addf %351, %350 : vector<16x256xf32>
    %cst_118 = arith.constant 1.000000e+00 : f32
    %353 = vector.broadcast %cst_118 : f32 to vector<16x256xf32>
    %354 = arith.divf %353, %352 : vector<16x256xf32>
    %355 = arith.mulf %346, %354 : vector<16x256xf32>
    %c192_119 = arith.constant 192 : index
    %c0_120 = arith.constant 0 : index
    %356 = vector.load %arg4[%c192_119, %c0_120] : memref<320x48xbf16, #tpu.memory_space<vmem>>, vector<16x48xbf16>
    %c208_121 = arith.constant 208 : index
    %c0_122 = arith.constant 0 : index
    %357 = vector.load %arg4[%c208_121, %c0_122] : memref<320x48xbf16, #tpu.memory_space<vmem>>, vector<16x48xbf16>
    %c224_123 = arith.constant 224 : index
    %c0_124 = arith.constant 0 : index
    %358 = vector.load %arg4[%c224_123, %c0_124] : memref<320x48xbf16, #tpu.memory_space<vmem>>, vector<32x48xbf16>
    %c416 = arith.constant 416 : index
    %c0_125 = arith.constant 0 : index
    %359 = vector.load %arg3[%c416, %c0_125] : memref<736x1xf32, #tpu.memory_space<vmem>>, vector<16x1xf32>
    %c432 = arith.constant 432 : index
    %c0_126 = arith.constant 0 : index
    %360 = vector.load %arg3[%c432, %c0_126] : memref<736x1xf32, #tpu.memory_space<vmem>>, vector<16x1xf32>
    %c448 = arith.constant 448 : index
    %c0_127 = arith.constant 0 : index
    %361 = vector.load %arg3[%c448, %c0_127] : memref<736x1xf32, #tpu.memory_space<vmem>>, vector<16x1xf32>
    %c464 = arith.constant 464 : index
    %c0_128 = arith.constant 0 : index
    %362 = vector.load %arg3[%c464, %c0_128] : memref<736x1xf32, #tpu.memory_space<vmem>>, vector<16x1xf32>
    %c480 = arith.constant 480 : index
    %c0_129 = arith.constant 0 : index
    %363 = vector.load %arg3[%c480, %c0_129] : memref<736x1xf32, #tpu.memory_space<vmem>>, vector<16x1xf32>
    %c496 = arith.constant 496 : index
    %c0_130 = arith.constant 0 : index
    %364 = vector.load %arg3[%c496, %c0_130] : memref<736x1xf32, #tpu.memory_space<vmem>>, vector<16x1xf32>
    %c512 = arith.constant 512 : index
    %c0_131 = arith.constant 0 : index
    %365 = vector.load %arg3[%c512, %c0_131] : memref<736x1xf32, #tpu.memory_space<vmem>>, vector<32x1xf32>
    %cst_132 = arith.constant 0.000000e+00 : f32
    %366 = vector.broadcast %cst_132 : f32 to vector<16x8xf32>
    %367 = vector.extract_strided_slice %355 {offsets = [0, 0], sizes = [16, 248], strides = [1, 1]} : vector<16x256xf32> to vector<16x248xf32>
    %368 = tpu.concatenate %366, %367 in 1 : vector<16x8xf32>, vector<16x248xf32> -> vector<16x256xf32>
    %369 = vector.extract_strided_slice %355 {offsets = [0, 8], sizes = [16, 248], strides = [1, 1]} : vector<16x256xf32> to vector<16x248xf32>
    %370 = tpu.concatenate %369, %366 in 1 : vector<16x248xf32>, vector<16x8xf32> -> vector<16x256xf32>
    %cst_133 = arith.constant 0.000000e+00 : f32
    %371 = vector.shape_cast %83 : vector<1x256xi1> to vector<1x256xi1>
    %372 = vector.broadcast %371 : vector<1x256xi1> to vector<16x256xi1>
    %373 = vector.broadcast %cst_133 : f32 to vector<16x256xf32>
    %374 = arith.select %372, %368, %373 : vector<16x256xi1>, vector<16x256xf32>
    %cst_134 = arith.constant 0.000000e+00 : f32
    %375 = vector.shape_cast %85 : vector<1x256xi1> to vector<1x256xi1>
    %376 = vector.broadcast %375 : vector<1x256xi1> to vector<16x256xi1>
    %377 = vector.broadcast %cst_134 : f32 to vector<16x256xf32>
    %378 = arith.select %376, %370, %377 : vector<16x256xi1>, vector<16x256xf32>
    %379 = tpu.concatenate %374, %355, %378 in 0 : vector<16x256xf32>, vector<16x256xf32>, vector<16x256xf32> -> vector<48x256xf32>
    %380 = arith.truncf %379 : vector<48x256xf32> to vector<48x256xbf16>
    %cst_135 = arith.constant dense<0.000000e+00> : vector<16x256xf32>
    %381 = tpu.matmul %356, %380, %cst_135 {dimension_numbers = #tpu.dot_dimension_numbers<[1], [0], [0], [1], [0, 0, 1, 1], [], []>} : vector<16x48xbf16>, vector<48x256xbf16>, vector<16x256xf32> -> vector<16x256xf32>
    %382 = vector.broadcast %359 : vector<16x1xf32> to vector<16x256xf32>
    %383 = arith.addf %381, %382 : vector<16x256xf32>
    %384 = arith.addf %383, %355 : vector<16x256xf32>
    %385 = vector.broadcast %360 : vector<16x1xf32> to vector<16x256xf32>
    %386 = arith.mulf %384, %385 : vector<16x256xf32>
    %387 = vector.broadcast %361 : vector<16x1xf32> to vector<16x256xf32>
    %388 = arith.addf %386, %387 : vector<16x256xf32>
    %cst_136 = arith.constant -1.702000e+00 : f32
    %389 = vector.broadcast %cst_136 : f32 to vector<16x256xf32>
    %390 = arith.mulf %389, %388 : vector<16x256xf32>
    %391 = math.exp %390 : vector<16x256xf32>
    %cst_137 = arith.constant 1.000000e+00 : f32
    %392 = vector.broadcast %cst_137 : f32 to vector<16x256xf32>
    %393 = arith.addf %392, %391 : vector<16x256xf32>
    %cst_138 = arith.constant 1.000000e+00 : f32
    %394 = vector.broadcast %cst_138 : f32 to vector<16x256xf32>
    %395 = arith.divf %394, %393 : vector<16x256xf32>
    %396 = arith.mulf %388, %395 : vector<16x256xf32>
    %cst_139 = arith.constant 0.000000e+00 : f32
    %397 = vector.broadcast %cst_139 : f32 to vector<16x16xf32>
    %398 = vector.extract_strided_slice %396 {offsets = [0, 0], sizes = [16, 240], strides = [1, 1]} : vector<16x256xf32> to vector<16x240xf32>
    %399 = tpu.concatenate %397, %398 in 1 : vector<16x16xf32>, vector<16x240xf32> -> vector<16x256xf32>
    %400 = vector.extract_strided_slice %396 {offsets = [0, 16], sizes = [16, 240], strides = [1, 1]} : vector<16x256xf32> to vector<16x240xf32>
    %401 = tpu.concatenate %400, %397 in 1 : vector<16x240xf32>, vector<16x16xf32> -> vector<16x256xf32>
    %cst_140 = arith.constant 0.000000e+00 : f32
    %402 = vector.shape_cast %160 : vector<1x256xi1> to vector<1x256xi1>
    %403 = vector.broadcast %402 : vector<1x256xi1> to vector<16x256xi1>
    %404 = vector.broadcast %cst_140 : f32 to vector<16x256xf32>
    %405 = arith.select %403, %399, %404 : vector<16x256xi1>, vector<16x256xf32>
    %cst_141 = arith.constant 0.000000e+00 : f32
    %406 = vector.shape_cast %162 : vector<1x256xi1> to vector<1x256xi1>
    %407 = vector.broadcast %406 : vector<1x256xi1> to vector<16x256xi1>
    %408 = vector.broadcast %cst_141 : f32 to vector<16x256xf32>
    %409 = arith.select %407, %401, %408 : vector<16x256xi1>, vector<16x256xf32>
    %410 = tpu.concatenate %405, %396, %409 in 0 : vector<16x256xf32>, vector<16x256xf32>, vector<16x256xf32> -> vector<48x256xf32>
    %411 = arith.truncf %410 : vector<48x256xf32> to vector<48x256xbf16>
    %cst_142 = arith.constant dense<0.000000e+00> : vector<16x256xf32>
    %412 = tpu.matmul %357, %411, %cst_142 {dimension_numbers = #tpu.dot_dimension_numbers<[1], [0], [0], [1], [0, 0, 1, 1], [], []>} : vector<16x48xbf16>, vector<48x256xbf16>, vector<16x256xf32> -> vector<16x256xf32>
    %413 = vector.broadcast %362 : vector<16x1xf32> to vector<16x256xf32>
    %414 = arith.addf %412, %413 : vector<16x256xf32>
    %415 = arith.addf %414, %396 : vector<16x256xf32>
    %416 = vector.broadcast %363 : vector<16x1xf32> to vector<16x256xf32>
    %417 = arith.mulf %415, %416 : vector<16x256xf32>
    %418 = vector.broadcast %364 : vector<16x1xf32> to vector<16x256xf32>
    %419 = arith.addf %417, %418 : vector<16x256xf32>
    %cst_143 = arith.constant -1.702000e+00 : f32
    %420 = vector.broadcast %cst_143 : f32 to vector<16x256xf32>
    %421 = arith.mulf %420, %419 : vector<16x256xf32>
    %422 = math.exp %421 : vector<16x256xf32>
    %cst_144 = arith.constant 1.000000e+00 : f32
    %423 = vector.broadcast %cst_144 : f32 to vector<16x256xf32>
    %424 = arith.addf %423, %422 : vector<16x256xf32>
    %cst_145 = arith.constant 1.000000e+00 : f32
    %425 = vector.broadcast %cst_145 : f32 to vector<16x256xf32>
    %426 = arith.divf %425, %424 : vector<16x256xf32>
    %427 = arith.mulf %419, %426 : vector<16x256xf32>
    %cst_146 = arith.constant 0.000000e+00 : f32
    %428 = vector.broadcast %cst_146 : f32 to vector<16x1xf32>
    %429 = vector.extract_strided_slice %427 {offsets = [0, 0], sizes = [16, 255], strides = [1, 1]} : vector<16x256xf32> to vector<16x255xf32>
    %430 = tpu.concatenate %428, %429 in 1 : vector<16x1xf32>, vector<16x255xf32> -> vector<16x256xf32>
    %431 = vector.extract_strided_slice %427 {offsets = [0, 1], sizes = [16, 255], strides = [1, 1]} : vector<16x256xf32> to vector<16x255xf32>
    %432 = tpu.concatenate %431, %428 in 1 : vector<16x255xf32>, vector<16x1xf32> -> vector<16x256xf32>
    %cst_147 = arith.constant 0.000000e+00 : f32
    %433 = vector.shape_cast %118 : vector<1x256xi1> to vector<1x256xi1>
    %434 = vector.broadcast %433 : vector<1x256xi1> to vector<16x256xi1>
    %435 = vector.broadcast %cst_147 : f32 to vector<16x256xf32>
    %436 = arith.select %434, %430, %435 : vector<16x256xi1>, vector<16x256xf32>
    %cst_148 = arith.constant 0.000000e+00 : f32
    %437 = vector.shape_cast %120 : vector<1x256xi1> to vector<1x256xi1>
    %438 = vector.broadcast %437 : vector<1x256xi1> to vector<16x256xi1>
    %439 = vector.broadcast %cst_148 : f32 to vector<16x256xf32>
    %440 = arith.select %438, %432, %439 : vector<16x256xi1>, vector<16x256xf32>
    %441 = tpu.concatenate %436, %427, %440 in 0 : vector<16x256xf32>, vector<16x256xf32>, vector<16x256xf32> -> vector<48x256xf32>
    %442 = arith.truncf %441 : vector<48x256xf32> to vector<48x256xbf16>
    %cst_149 = arith.constant dense<0.000000e+00> : vector<32x256xf32>
    %443 = tpu.matmul %358, %442, %cst_149 {dimension_numbers = #tpu.dot_dimension_numbers<[1], [0], [0], [1], [0, 0, 1, 1], [], []>} : vector<32x48xbf16>, vector<48x256xbf16>, vector<32x256xf32> -> vector<32x256xf32>
    %444 = vector.broadcast %365 : vector<32x1xf32> to vector<32x256xf32>
    %445 = arith.addf %443, %444 : vector<32x256xf32>
    %446 = vector.extract_strided_slice %445 {offsets = [0, 0], sizes = [16, 256], strides = [1, 1]} : vector<32x256xf32> to vector<16x256xf32>
    %447 = vector.extract_strided_slice %445 {offsets = [16, 0], sizes = [16, 256], strides = [1, 1]} : vector<32x256xf32> to vector<16x256xf32>
    %cst_150 = arith.constant 0.000000e+00 : f32
    %448 = vector.broadcast %cst_150 : f32 to vector<16x256xf32>
    %449 = arith.subf %448, %447 : vector<16x256xf32>
    %450 = math.exp %449 : vector<16x256xf32>
    %cst_151 = arith.constant 1.000000e+00 : f32
    %451 = vector.broadcast %cst_151 : f32 to vector<16x256xf32>
    %452 = arith.addf %451, %450 : vector<16x256xf32>
    %cst_152 = arith.constant 1.000000e+00 : f32
    %453 = vector.broadcast %cst_152 : f32 to vector<16x256xf32>
    %454 = arith.divf %453, %452 : vector<16x256xf32>
    %455 = arith.mulf %446, %454 : vector<16x256xf32>
    %c256_153 = arith.constant 256 : index
    %c0_154 = arith.constant 0 : index
    %456 = vector.load %arg4[%c256_153, %c0_154] : memref<320x48xbf16, #tpu.memory_space<vmem>>, vector<16x48xbf16>
    %c272 = arith.constant 272 : index
    %c0_155 = arith.constant 0 : index
    %457 = vector.load %arg4[%c272, %c0_155] : memref<320x48xbf16, #tpu.memory_space<vmem>>, vector<16x48xbf16>
    %c288_156 = arith.constant 288 : index
    %c0_157 = arith.constant 0 : index
    %458 = vector.load %arg4[%c288_156, %c0_157] : memref<320x48xbf16, #tpu.memory_space<vmem>>, vector<32x48xbf16>
    %c544 = arith.constant 544 : index
    %c0_158 = arith.constant 0 : index
    %459 = vector.load %arg3[%c544, %c0_158] : memref<736x1xf32, #tpu.memory_space<vmem>>, vector<16x1xf32>
    %c560 = arith.constant 560 : index
    %c0_159 = arith.constant 0 : index
    %460 = vector.load %arg3[%c560, %c0_159] : memref<736x1xf32, #tpu.memory_space<vmem>>, vector<16x1xf32>
    %c576 = arith.constant 576 : index
    %c0_160 = arith.constant 0 : index
    %461 = vector.load %arg3[%c576, %c0_160] : memref<736x1xf32, #tpu.memory_space<vmem>>, vector<16x1xf32>
    %c592 = arith.constant 592 : index
    %c0_161 = arith.constant 0 : index
    %462 = vector.load %arg3[%c592, %c0_161] : memref<736x1xf32, #tpu.memory_space<vmem>>, vector<16x1xf32>
    %c608 = arith.constant 608 : index
    %c0_162 = arith.constant 0 : index
    %463 = vector.load %arg3[%c608, %c0_162] : memref<736x1xf32, #tpu.memory_space<vmem>>, vector<16x1xf32>
    %c624 = arith.constant 624 : index
    %c0_163 = arith.constant 0 : index
    %464 = vector.load %arg3[%c624, %c0_163] : memref<736x1xf32, #tpu.memory_space<vmem>>, vector<16x1xf32>
    %c640 = arith.constant 640 : index
    %c0_164 = arith.constant 0 : index
    %465 = vector.load %arg3[%c640, %c0_164] : memref<736x1xf32, #tpu.memory_space<vmem>>, vector<32x1xf32>
    %cst_165 = arith.constant 0.000000e+00 : f32
    %466 = vector.broadcast %cst_165 : f32 to vector<16x1xf32>
    %467 = vector.extract_strided_slice %455 {offsets = [0, 0], sizes = [16, 255], strides = [1, 1]} : vector<16x256xf32> to vector<16x255xf32>
    %468 = tpu.concatenate %466, %467 in 1 : vector<16x1xf32>, vector<16x255xf32> -> vector<16x256xf32>
    %469 = vector.extract_strided_slice %455 {offsets = [0, 1], sizes = [16, 255], strides = [1, 1]} : vector<16x256xf32> to vector<16x255xf32>
    %470 = tpu.concatenate %469, %466 in 1 : vector<16x255xf32>, vector<16x1xf32> -> vector<16x256xf32>
    %cst_166 = arith.constant 0.000000e+00 : f32
    %471 = vector.shape_cast %118 : vector<1x256xi1> to vector<1x256xi1>
    %472 = vector.broadcast %471 : vector<1x256xi1> to vector<16x256xi1>
    %473 = vector.broadcast %cst_166 : f32 to vector<16x256xf32>
    %474 = arith.select %472, %468, %473 : vector<16x256xi1>, vector<16x256xf32>
    %cst_167 = arith.constant 0.000000e+00 : f32
    %475 = vector.shape_cast %120 : vector<1x256xi1> to vector<1x256xi1>
    %476 = vector.broadcast %475 : vector<1x256xi1> to vector<16x256xi1>
    %477 = vector.broadcast %cst_167 : f32 to vector<16x256xf32>
    %478 = arith.select %476, %470, %477 : vector<16x256xi1>, vector<16x256xf32>
    %479 = tpu.concatenate %474, %455, %478 in 0 : vector<16x256xf32>, vector<16x256xf32>, vector<16x256xf32> -> vector<48x256xf32>
    %480 = arith.truncf %479 : vector<48x256xf32> to vector<48x256xbf16>
    %cst_168 = arith.constant dense<0.000000e+00> : vector<16x256xf32>
    %481 = tpu.matmul %456, %480, %cst_168 {dimension_numbers = #tpu.dot_dimension_numbers<[1], [0], [0], [1], [0, 0, 1, 1], [], []>} : vector<16x48xbf16>, vector<48x256xbf16>, vector<16x256xf32> -> vector<16x256xf32>
    %482 = vector.broadcast %459 : vector<16x1xf32> to vector<16x256xf32>
    %483 = arith.addf %481, %482 : vector<16x256xf32>
    %484 = arith.addf %483, %455 : vector<16x256xf32>
    %485 = vector.broadcast %460 : vector<16x1xf32> to vector<16x256xf32>
    %486 = arith.mulf %484, %485 : vector<16x256xf32>
    %487 = vector.broadcast %461 : vector<16x1xf32> to vector<16x256xf32>
    %488 = arith.addf %486, %487 : vector<16x256xf32>
    %cst_169 = arith.constant -1.702000e+00 : f32
    %489 = vector.broadcast %cst_169 : f32 to vector<16x256xf32>
    %490 = arith.mulf %489, %488 : vector<16x256xf32>
    %491 = math.exp %490 : vector<16x256xf32>
    %cst_170 = arith.constant 1.000000e+00 : f32
    %492 = vector.broadcast %cst_170 : f32 to vector<16x256xf32>
    %493 = arith.addf %492, %491 : vector<16x256xf32>
    %cst_171 = arith.constant 1.000000e+00 : f32
    %494 = vector.broadcast %cst_171 : f32 to vector<16x256xf32>
    %495 = arith.divf %494, %493 : vector<16x256xf32>
    %496 = arith.mulf %488, %495 : vector<16x256xf32>
    %cst_172 = arith.constant 0.000000e+00 : f32
    %497 = vector.broadcast %cst_172 : f32 to vector<16x2xf32>
    %498 = vector.extract_strided_slice %496 {offsets = [0, 0], sizes = [16, 254], strides = [1, 1]} : vector<16x256xf32> to vector<16x254xf32>
    %499 = tpu.concatenate %497, %498 in 1 : vector<16x2xf32>, vector<16x254xf32> -> vector<16x256xf32>
    %500 = vector.extract_strided_slice %496 {offsets = [0, 2], sizes = [16, 254], strides = [1, 1]} : vector<16x256xf32> to vector<16x254xf32>
    %501 = tpu.concatenate %500, %497 in 1 : vector<16x254xf32>, vector<16x2xf32> -> vector<16x256xf32>
    %cst_173 = arith.constant 0.000000e+00 : f32
    %502 = vector.shape_cast %264 : vector<1x256xi1> to vector<1x256xi1>
    %503 = vector.broadcast %502 : vector<1x256xi1> to vector<16x256xi1>
    %504 = vector.broadcast %cst_173 : f32 to vector<16x256xf32>
    %505 = arith.select %503, %499, %504 : vector<16x256xi1>, vector<16x256xf32>
    %cst_174 = arith.constant 0.000000e+00 : f32
    %506 = vector.shape_cast %266 : vector<1x256xi1> to vector<1x256xi1>
    %507 = vector.broadcast %506 : vector<1x256xi1> to vector<16x256xi1>
    %508 = vector.broadcast %cst_174 : f32 to vector<16x256xf32>
    %509 = arith.select %507, %501, %508 : vector<16x256xi1>, vector<16x256xf32>
    %510 = tpu.concatenate %505, %496, %509 in 0 : vector<16x256xf32>, vector<16x256xf32>, vector<16x256xf32> -> vector<48x256xf32>
    %511 = arith.truncf %510 : vector<48x256xf32> to vector<48x256xbf16>
    %cst_175 = arith.constant dense<0.000000e+00> : vector<16x256xf32>
    %512 = tpu.matmul %457, %511, %cst_175 {dimension_numbers = #tpu.dot_dimension_numbers<[1], [0], [0], [1], [0, 0, 1, 1], [], []>} : vector<16x48xbf16>, vector<48x256xbf16>, vector<16x256xf32> -> vector<16x256xf32>
    %513 = vector.broadcast %462 : vector<16x1xf32> to vector<16x256xf32>
    %514 = arith.addf %512, %513 : vector<16x256xf32>
    %515 = arith.addf %514, %496 : vector<16x256xf32>
    %516 = vector.broadcast %463 : vector<16x1xf32> to vector<16x256xf32>
    %517 = arith.mulf %515, %516 : vector<16x256xf32>
    %518 = vector.broadcast %464 : vector<16x1xf32> to vector<16x256xf32>
    %519 = arith.addf %517, %518 : vector<16x256xf32>
    %cst_176 = arith.constant -1.702000e+00 : f32
    %520 = vector.broadcast %cst_176 : f32 to vector<16x256xf32>
    %521 = arith.mulf %520, %519 : vector<16x256xf32>
    %522 = math.exp %521 : vector<16x256xf32>
    %cst_177 = arith.constant 1.000000e+00 : f32
    %523 = vector.broadcast %cst_177 : f32 to vector<16x256xf32>
    %524 = arith.addf %523, %522 : vector<16x256xf32>
    %cst_178 = arith.constant 1.000000e+00 : f32
    %525 = vector.broadcast %cst_178 : f32 to vector<16x256xf32>
    %526 = arith.divf %525, %524 : vector<16x256xf32>
    %527 = arith.mulf %519, %526 : vector<16x256xf32>
    %cst_179 = arith.constant 0.000000e+00 : f32
    %528 = vector.broadcast %cst_179 : f32 to vector<16x1xf32>
    %529 = vector.extract_strided_slice %527 {offsets = [0, 0], sizes = [16, 255], strides = [1, 1]} : vector<16x256xf32> to vector<16x255xf32>
    %530 = tpu.concatenate %528, %529 in 1 : vector<16x1xf32>, vector<16x255xf32> -> vector<16x256xf32>
    %531 = vector.extract_strided_slice %527 {offsets = [0, 1], sizes = [16, 255], strides = [1, 1]} : vector<16x256xf32> to vector<16x255xf32>
    %532 = tpu.concatenate %531, %528 in 1 : vector<16x255xf32>, vector<16x1xf32> -> vector<16x256xf32>
    %cst_180 = arith.constant 0.000000e+00 : f32
    %533 = vector.shape_cast %118 : vector<1x256xi1> to vector<1x256xi1>
    %534 = vector.broadcast %533 : vector<1x256xi1> to vector<16x256xi1>
    %535 = vector.broadcast %cst_180 : f32 to vector<16x256xf32>
    %536 = arith.select %534, %530, %535 : vector<16x256xi1>, vector<16x256xf32>
    %cst_181 = arith.constant 0.000000e+00 : f32
    %537 = vector.shape_cast %120 : vector<1x256xi1> to vector<1x256xi1>
    %538 = vector.broadcast %537 : vector<1x256xi1> to vector<16x256xi1>
    %539 = vector.broadcast %cst_181 : f32 to vector<16x256xf32>
    %540 = arith.select %538, %532, %539 : vector<16x256xi1>, vector<16x256xf32>
    %541 = tpu.concatenate %536, %527, %540 in 0 : vector<16x256xf32>, vector<16x256xf32>, vector<16x256xf32> -> vector<48x256xf32>
    %542 = arith.truncf %541 : vector<48x256xf32> to vector<48x256xbf16>
    %cst_182 = arith.constant dense<0.000000e+00> : vector<32x256xf32>
    %543 = tpu.matmul %458, %542, %cst_182 {dimension_numbers = #tpu.dot_dimension_numbers<[1], [0], [0], [1], [0, 0, 1, 1], [], []>} : vector<32x48xbf16>, vector<48x256xbf16>, vector<32x256xf32> -> vector<32x256xf32>
    %544 = vector.broadcast %465 : vector<32x1xf32> to vector<32x256xf32>
    %545 = arith.addf %543, %544 : vector<32x256xf32>
    %546 = vector.extract_strided_slice %545 {offsets = [0, 0], sizes = [16, 256], strides = [1, 1]} : vector<32x256xf32> to vector<16x256xf32>
    %547 = vector.extract_strided_slice %545 {offsets = [16, 0], sizes = [16, 256], strides = [1, 1]} : vector<32x256xf32> to vector<16x256xf32>
    %cst_183 = arith.constant 0.000000e+00 : f32
    %548 = vector.broadcast %cst_183 : f32 to vector<16x256xf32>
    %549 = arith.subf %548, %547 : vector<16x256xf32>
    %550 = math.exp %549 : vector<16x256xf32>
    %cst_184 = arith.constant 1.000000e+00 : f32
    %551 = vector.broadcast %cst_184 : f32 to vector<16x256xf32>
    %552 = arith.addf %551, %550 : vector<16x256xf32>
    %cst_185 = arith.constant 1.000000e+00 : f32
    %553 = vector.broadcast %cst_185 : f32 to vector<16x256xf32>
    %554 = arith.divf %553, %552 : vector<16x256xf32>
    %555 = arith.mulf %546, %554 : vector<16x256xf32>
    %c672 = arith.constant 672 : index
    %c0_186 = arith.constant 0 : index
    %556 = vector.load %arg3[%c672, %c0_186] : memref<736x1xf32, #tpu.memory_space<vmem>>, vector<32x1xf32>
    %c704 = arith.constant 704 : index
    %c0_187 = arith.constant 0 : index
    %557 = vector.load %arg3[%c704, %c0_187] : memref<736x1xf32, #tpu.memory_space<vmem>>, vector<32x1xf32>
    %c0_188 = arith.constant 0 : index
    %c0_189 = arith.constant 0 : index
    %558 = vector.load %arg5[%c0_188, %c0_189] : memref<32x16xbf16, #tpu.memory_space<vmem>>, vector<32x16xbf16>
    %559 = arith.truncf %555 : vector<16x256xf32> to vector<16x256xbf16>
    %cst_190 = arith.constant dense<0.000000e+00> : vector<32x256xf32>
    %560 = tpu.matmul %558, %559, %cst_190 {dimension_numbers = #tpu.dot_dimension_numbers<[1], [0], [0], [1], [0, 0, 1, 1], [], []>} : vector<32x16xbf16>, vector<16x256xbf16>, vector<32x256xf32> -> vector<32x256xf32>
    %561 = vector.broadcast %556 : vector<32x1xf32> to vector<32x256xf32>
    %562 = arith.addf %560, %561 : vector<32x256xf32>
    %cst_191 = arith.constant -1.702000e+00 : f32
    %563 = vector.broadcast %cst_191 : f32 to vector<32x256xf32>
    %564 = arith.mulf %563, %562 : vector<32x256xf32>
    %565 = math.exp %564 : vector<32x256xf32>
    %cst_192 = arith.constant 1.000000e+00 : f32
    %566 = vector.broadcast %cst_192 : f32 to vector<32x256xf32>
    %567 = arith.addf %566, %565 : vector<32x256xf32>
    %cst_193 = arith.constant 1.000000e+00 : f32
    %568 = vector.broadcast %cst_193 : f32 to vector<32x256xf32>
    %569 = arith.divf %568, %567 : vector<32x256xf32>
    %570 = arith.mulf %562, %569 : vector<32x256xf32>
    %c0_194 = arith.constant 0 : index
    %c0_195 = arith.constant 0 : index
    %571 = vector.load %arg6[%c0_194, %c0_195] : memref<32x32xbf16, #tpu.memory_space<vmem>>, vector<32x32xbf16>
    %572 = arith.truncf %570 : vector<32x256xf32> to vector<32x256xbf16>
    %cst_196 = arith.constant dense<0.000000e+00> : vector<32x256xf32>
    %573 = tpu.matmul %571, %572, %cst_196 {dimension_numbers = #tpu.dot_dimension_numbers<[1], [0], [0], [1], [0, 0, 1, 1], [], []>} : vector<32x32xbf16>, vector<32x256xbf16>, vector<32x256xf32> -> vector<32x256xf32>
    %574 = vector.broadcast %557 : vector<32x1xf32> to vector<32x256xf32>
    %575 = arith.addf %573, %574 : vector<32x256xf32>
    %cst_197 = arith.constant -1.702000e+00 : f32
    %576 = vector.broadcast %cst_197 : f32 to vector<32x256xf32>
    %577 = arith.mulf %576, %575 : vector<32x256xf32>
    %578 = math.exp %577 : vector<32x256xf32>
    %cst_198 = arith.constant 1.000000e+00 : f32
    %579 = vector.broadcast %cst_198 : f32 to vector<32x256xf32>
    %580 = arith.addf %579, %578 : vector<32x256xf32>
    %cst_199 = arith.constant 1.000000e+00 : f32
    %581 = vector.broadcast %cst_199 : f32 to vector<32x256xf32>
    %582 = arith.divf %581, %580 : vector<32x256xf32>
    %583 = arith.mulf %575, %582 : vector<32x256xf32>
    %584 = vector.extract_strided_slice %583 {offsets = [0, 0], sizes = [32, 128], strides = [1, 1]} : vector<32x256xf32> to vector<32x128xf32>
    %c0_200 = arith.constant 0 : index
    %c0_201 = arith.constant 0 : index
    %c0_202 = arith.constant 0 : index
    %585 = vector.load %arg7[%c0_200, %c0_201, %c0_202] : memref<2x32x128xf32, #tpu.memory_space<vmem>>, vector<1x32x128xf32>
    %586 = vector.shape_cast %585 : vector<1x32x128xf32> to vector<32x128xf32>
    %587 = vector.shape_cast %584 : vector<32x128xf32> to vector<1x32x128xf32>
    tpu.vector_store %arg7[%c0_200, %c0_201, %c0_202], %587 {strides = array<i32>} : memref<2x32x128xf32, #tpu.memory_space<vmem>>, vector<1x32x128xf32>,
    %588 = vector.extract_strided_slice %583 {offsets = [0, 128], sizes = [32, 128], strides = [1, 1]} : vector<32x256xf32> to vector<32x128xf32>
    %c1_203 = arith.constant 1 : index
    %c0_204 = arith.constant 0 : index
    %c0_205 = arith.constant 0 : index
    %589 = vector.load %arg7[%c1_203, %c0_204, %c0_205] : memref<2x32x128xf32, #tpu.memory_space<vmem>>, vector<1x32x128xf32>
    %590 = vector.shape_cast %589 : vector<1x32x128xf32> to vector<32x128xf32>
    %591 = vector.shape_cast %588 : vector<32x128xf32> to vector<1x32x128xf32>
    tpu.vector_store %arg7[%c1_203, %c0_204, %c0_205], %591 {strides = array<i32>} : memref<2x32x128xf32, #tpu.memory_space<vmem>>, vector<1x32x128xf32>,
    return
  }
  func.func @transform_0(%arg0: i32) -> (i32, i32, i32) {
    %c0_i32 = arith.constant 0 : i32
    %c0_i32_0 = arith.constant 0 : i32
    %c0_i32_1 = arith.constant 0 : i32
    %c0_i32_2 = arith.constant 0 : i32
    return %c0_i32, %c0_i32_0, %c0_i32_1 : i32, i32, i32
  }
  func.func @transform_1(%arg0: i32) -> (i32, i32, i32) {
    %c0_i32 = arith.constant 0 : i32
    %c0_i32_0 = arith.constant 0 : i32
    %c0_i32_1 = arith.constant 0 : i32
    %c0_i32_2 = arith.constant 0 : i32
    return %c0_i32, %c0_i32_0, %c0_i32_1 : i32, i32, i32
  }
  func.func @transform_2(%arg0: i32) -> (i32, i32) {
    %c0_i32 = arith.constant 0 : i32
    %c0_i32_0 = arith.constant 0 : i32
    %c0_i32_1 = arith.constant 0 : i32
    return %c0_i32, %c0_i32_0 : i32, i32
  }
  func.func @transform_3(%arg0: i32) -> (i32, i32) {
    %c0_i32 = arith.constant 0 : i32
    %c0_i32_0 = arith.constant 0 : i32
    %c0_i32_1 = arith.constant 0 : i32
    return %c0_i32, %c0_i32_0 : i32, i32
  }
  func.func @transform_4(%arg0: i32) -> (i32, i32) {
    %c0_i32 = arith.constant 0 : i32
    %c0_i32_0 = arith.constant 0 : i32
    %c0_i32_1 = arith.constant 0 : i32
    return %c0_i32, %c0_i32_0 : i32, i32
  }
  func.func @transform_5(%arg0: i32) -> (i32, i32) {
    %c0_i32 = arith.constant 0 : i32
    %c0_i32_0 = arith.constant 0 : i32
    %c0_i32_1 = arith.constant 0 : i32
    return %c0_i32, %c0_i32_0 : i32, i32
  }
  func.func @transform_6(%arg0: i32) -> (i32, i32, i32) {
    %c0_i32 = arith.constant 0 : i32
    %c0_i32_0 = arith.constant 0 : i32
    %c0_i32_1 = arith.constant 0 : i32
    %c0_i32_2 = arith.constant 0 : i32
    return %c0_i32, %c0_i32_0, %c0_i32_1 : i32, i32, i32
  }
}

</mosaic_0001>

<bundles_post_ra>
// kernel: brain_encoder_forward.1
= control target key start
LH: loop header
LB: loop body
LE: loop exit
PB: predicated region body
PF: predicated region fallthrough
CT: control target
= control target key end

     0   :  { %v4951_v5 = vmov 0   ;;  %vm6630_vm0 = vcmask 130048   ;;  %s6619_s0 = inlined_call_operand.vmem [shape: f32[2,16,128], index: 0, kind: input, shape index: {}]   ;;  %s6620_s1 = inlined_call_operand.vmem [shape: bf16[2,16,16], index: 1, kind: input, shape index: {}]   ;;  %s6621_s2 = inlined_call_operand.vmem [shape: f32[736,1], index: 2, kind: input, shape index: {}]   ;;  %s6622_s3 = inlined_call_operand.vmem [shape: bf16[320,48], index: 3, kind: input, shape index: {}]   ;;  %s6623_s4 = inlined_call_operand.vmem [shape: bf16[32,16], index: 4, kind: input, shape index: {}]   ;;  %s6624_s5 = inlined_call_operand.vmem [shape: bf16[32,32], index: 5, kind: input, shape index: {}]   ;;  %s6625_s6 = inlined_call_operand.hbm [shape: f32[2,32,128], index: 6, kind: output, shape index: {}]  }
   0x1   :  { %v54_v0 = vld [vmem:[%s6619_s0] sm:$0xff]  ;;  %v55_v1 = vld [vmem:[%s6619_s0 + $0x8] sm:$0xff]  ;;  %v3948_v2 = vld [vmem:[%s6619_s0 + $0x10] sm:$0xff]  ;;  %4319 = vset.pattern.permute.xlu1 %v4951_v5  ;;  %4318 = vset.pattern.permute.xlu0 %v4951_v5 }
   0x2   :  { %v56_v3 = vpack.c.bf16 %v55_v1, %v54_v0  ;;  %v3949_v4 = vld [vmem:[%s6619_s0 + $0x18] sm:$0xff]  ;;  %v4279_v7 = vld [vmem:[%s6620_s1] sm:$0xff]  ;;  %v99_v8 = vld [vmem:[%s6621_s2 + $0x10] sm:$0xff]  ;;  %4340 = vset.pattern.permute.xlu2 %v4951_v5 }
   0x3   :  { %v98_v6 = vpack.c.bf16 %v3949_v4, %v3948_v2  ;;  %v57_v9 = vld [vmem:[%s6621_s2] sm:$0xff]  ;;  %v4280_v10 = vld [vmem:[%s6620_s1 + $0x8] sm:$0xff]  ;;  %103 = vperm.xlu1 %4319, %v99_v8  }
   0x4   :  { %85 = vmatpush.bf16.msra.mxu0 %v56_v3 }
   0x5   :  { %11 = vsyncpa [#allocation3], 0  ;;  %126 = vmatpush.bf16.msra.mxu1 %v98_v6  ;;  %61 = vperm.xlu0 %4318, %v57_v9   ;;  %v100_v11 = vld [vmem:[%s6621_s2 + $0x18] sm:$0xff]  ;;  %v58_v12 = vld [vmem:[%s6621_s2 + $0x8] sm:$0xff]  ;;  %s4952_s1 = smov 4   ;;  %s4953_s16 = smov 124   ;;  %v25_v31 = vlaneseq }
   0x6   :  { %v142_v26 = vld [vmem:[%s6621_s2 + $0x28] sm:$0xff]  ;;  %v143_v28 = vld [vmem:[%s6621_s2 + $0x30] sm:$0xff]  ;;  %v145_v29 = vld [vmem:[%s6621_s2 + $0x40] sm:$0xff]  ;;  %vm6629_vm2 = vcmask 1014784   ;;  %vm6628_vm7 = vcmask 31744   ;;  %vm6631_vm11 = vcmask 392192  }
   0x7   :  { %3945 = vmatmul.msk.bf16.vlgmr.msra.gmra.mxu0 %vm6630_vm0, %v4279_v7  ;;  %v146_v30 = vld [vmem:[%s6621_s2 + $0x48] sm:$0xff]  ;;  %v5059_v32 = vand.u32 127, %v25_v31  ;;  %v141_v49 = vld [vmem:[%s6621_s2 + $0x20] sm:$0xff]  ;;  %v144_v52 = vld [vmem:[%s6621_s2 + $0x38] sm:$0xff]  ;;  %s4954_s7 = smov 8   ;;  %s4955_s8 = smov 120  }
   0x8   :  { %3954 = vmatmul.msk.bf16.vlgmr.msra.gmra.mxu1 %vm6630_vm0, %v4280_v10  ;;  %v4281_v3 = vld [vmem:[%s6622_s3] sm:$0xff]  ;;  %s4956_s23 = smov 1   ;;  %s4957_s24 = smov 127  }
   0x9   :  { %v27_v34 = vadd.s32 128, %v5059_v32  ;;  %vm159_vm1 = vcmp.lt.s32.totalorder %v5059_v32, 124  ;;  %vm157_vm6 = vcmp.ge.s32.totalorder %v5059_v32, 4  ;;  %s4958_s14 = smov 16   ;;  %s4959_s15 = smov 112  }
   0xa   :  { %vm5066_vm4 = vmpackc.low %vm159_vm1, %vm159_vm1  ;;  %s4960_s21 = smov 2   ;;  %s4961_s22 = smov 126  }
   0xb   :  { %108 = vperm.xlu1 %4319, %v100_v11   ;;  %v5062_v35 = vand.u32 127, %v27_v34  ;;  %vm5094_vm9 = vmpackc.low %vm157_vm6, %vm157_vm6  ;;  %s4963_s25 = smov 128  }
   0xd   :  { %66 = vperm.xlu0 %4318, %v58_v12   ;;  %vm160_vm3 = vcmp.lt.s32.totalorder %v5062_v35, 124  ;;  %vm158_vm8 = vcmp.ge.s32.totalorder %v5062_v35, 4 }
   0xe   :  { %vm5074_vm5 = vmpackc.low %vm160_vm3, %vm160_vm3 }
   0xf   :  { %vm5102_vm10 = vmpackc.low %vm158_vm8, %vm158_vm8 }
  0x75   :  { %v104_v14 = vpop.permute.xlu1 %103 }
  0x77   :  { %v62_v13 = vpop.permute.xlu0 %61 }
  0x7d   :  { %v109_v22 = vpop.permute.xlu1 %108 }
  0x7f   :  { %v67_v20 = vpop.permute.xlu0 %66 }
  0x84   :  { %v87_v15 = vpop.f32.mrf.mxu0 }
  0x85   :  { %v128_v16 = vpop.f32.mrf.mxu1  ;;  %v5031_v17 = vadd.f32 %v87_v15, %v62_v13 }
  0x86   :  { %v5033_v18 = vadd.f32 %v128_v16, %v104_v14 }
  0x88   :  { %v4330_v19 = vpack.i.bf16 %v5033_v18, %v5031_v17 }
  0x8a   :  { %4331 = vrot.lane.b32.xlu0 %v4330_v19, %s4952_s1  ;;  %4321 = vrot.lane.b32.xlu2 %v4330_v19, %s4953_s16 }
  0x8c   :  { %v89_v21 = vpop.f32.mrf.mxu0 }
  0x8d   :  { %v5039_v23 = vadd.f32 %v89_v21, %v67_v20  ;;  %v130_v24 = vpop.f32.mrf.mxu1 }
  0x8e   :  { %v5041_v25 = vadd.f32 %v130_v24, %v109_v22 }
  0x8f   :  { %v217_v50 = vpack.c.bf16 %v5039_v23, %v5031_v17 }
  0x90   :  { %v4335_v27 = vpack.i.bf16 %v5041_v25, %v5039_v23  ;;  %v218_v51 = vpack.c.bf16 %v5041_v25, %v5033_v18 }
  0x92   :  { %4336 = vrot.lane.b32.xlu1 %v4335_v27, %s4952_s1  ;;  %228 = vperm.xlu0 %4318, %v142_v26  }
  0x93   :  { %4326 = vrot.lane.b32.xlu2 %v4335_v27, %s4953_s16 }
  0x9a   :  { %274 = vperm.xlu1 %4319, %v143_v28   ;;  %288 = vperm.xlu0 %4318, %v145_v29  }
  0x9b   :  { %223 = vperm.xlu2 %4340, %v141_v49  }
  0xa2   :  { %293 = vperm.xlu1 %4319, %v146_v30  }
  0xa3   :  { %279 = vperm.xlu2 %4340, %v144_v52  }
  0xe4   :  { %v4322_v33 = vpop.permute.xlu2 %4321 }
  0xe5   :  { %v4324_v36 = vunpack.i.h.bf16 %v4322_v33  ;;  %v4323_v37 = vunpack.i.l.bf16 %v4322_v33 }
  0xe7   :  { %v191_v43 = vsel %vm6629_vm2, %v4323_v37, %v4324_v36  ;;  %v197_v45 = vsel %vm6629_vm2, %v4324_v36, 0.0 }
  0xed   :  { %v4327_v38 = vpop.permute.xlu2 %4326 }
  0xee   :  { %v4329_v39 = vunpack.i.h.bf16 %v4327_v38  ;;  %v4328_v40 = vunpack.i.l.bf16 %v4327_v38 }
  0xf0   :  { %v198_v42 = vsel %vm6629_vm2, %v4329_v39, 0.0  ;;  %v192_v44 = vsel %vm6629_vm2, %v4328_v40, %v4329_v39 }
  0xf1   :  { %v3960_v47 = vpack.c.bf16 %v192_v44, %v191_v43  ;;  %v3967_v48 = vpack.c.bf16 %v198_v42, %v197_v45 }
  0xf3   :  { %3961 = vmatpush.bf16.msk.msrb.mxu0 %vm5066_vm4, %v3960_v47  ;;  %3968 = vmatpush.bf16.msk.msrb.mxu1 %vm5074_vm5, %v3967_v48 }
  0xf5   :  { %v224_v5 = vpop.permute.xlu2 %223 }
  0xf7   :  { %246 = vmatpush.bf16.msrb.mxu0 %v217_v50  ;;  %260 = vmatpush.bf16.msrb.mxu1 %v218_v51 }
  0xfc   :  { %v4332_v53 = vpop.permute.xlu0 %4331 }
  0xfd   :  { %v4334_v54 = vunpack.i.h.bf16 %v4332_v53  ;;  %v4333_v55 = vunpack.i.l.bf16 %v4332_v53  ;;  %v280_v30 = vpop.permute.xlu2 %279 }
  0xff   :  { %v180_v60 = vsel %vm6628_vm7, 0.0, %v4333_v55  ;;  %v174_v62 = vsel %vm6628_vm7, %v4333_v55, %v4334_v54 }
 0x104   :  { %v4337_v56 = vpop.permute.xlu1 %4336  ;;  %v229_v4 = vpop.permute.xlu0 %228 }
 0x105   :  { %v4339_v57 = vunpack.i.h.bf16 %v4337_v56  ;;  %v4338_v58 = vunpack.i.l.bf16 %v4337_v56 }
 0x107   :  { %v181_v61 = vsel %vm6628_vm7, 0.0, %v4338_v58  ;;  %v175_v63 = vsel %vm6628_vm7, %v4338_v58, %v4339_v57 }
 0x108   :  { %v3963_v1 = vpack.c.bf16 %v181_v61, %v180_v60  ;;  %v3970_v2 = vpack.c.bf16 %v175_v63, %v174_v62 }
 0x10a   :  { %3964 = vmatpush.bf16.msk.msrb.mxu0 %vm5094_vm9, %v3963_v1  ;;  %3971 = vmatpush.bf16.msk.msrb.mxu1 %vm5102_vm10, %v3970_v2 }
 0x10c   :  { %v275_v12 = vpop.permute.xlu1 %274  ;;  %v289_v15 = vpop.permute.xlu0 %288 }
 0x10d   :  { %3965 = vmatmul.msk.bf16.vlgmr.msrb.gmra.mxu0 %vm6631_vm11, %v4281_v3  ;;  %3972 = vmatmul.msk.bf16.vlgmr.msrb.gmra.mxu1 %vm6631_vm11, %v4281_v3 }
 0x114   :  { %v294_v34 = vpop.permute.xlu1 %293 }
 0x18a   :  { %v249_v6 = vpop.f32.mrf.mxu0  ;;  %v263_v7 = vpop.f32.mrf.mxu1 }
 0x18b   :  { %v250_v8 = vadd.f32 %v249_v6, %v224_v5  ;;  %v264_v9 = vadd.f32 %v263_v7, %v224_v5 }
 0x18d   :  { %v268_v10 = vadd.f32 %v250_v8, %v5031_v17  ;;  %v269_v11 = vadd.f32 %v264_v9, %v5033_v18 }
 0x18f   :  { %v282_v13 = vmul.f32 %v275_v12, %v268_v10  ;;  %v283_v14 = vmul.f32 %v275_v12, %v269_v11 }
 0x191   :  { %v5117_v16 = vadd.f32 %v289_v15, %v282_v13  ;;  %v5119_v19 = vadd.f32 %v289_v15, %v283_v14 }
 0x192   :  { %v251_v20 = vpop.f32.mrf.mxu0  ;;  %v265_v21 = vpop.f32.mrf.mxu1 }
 0x193   :  { %v300_v22 = vmul.f32 -1.702, %v5117_v16  ;;  %v301_v24 = vmul.f32 -1.702, %v5119_v19  ;;  %v252_v26 = vadd.f32 %v251_v20, %v229_v4  ;;  %v266_v27 = vadd.f32 %v265_v21, %v229_v4 }
 0x195   :  { %v304_v28 = vmul.f32 1.442695, %v300_v22  ;;  %v306_v17 = vmul.f32 1.442695, %v301_v24  ;;  %v270_v18 = vadd.f32 %v252_v26, %v5039_v23  ;;  %v271_v29 = vadd.f32 %v266_v27, %v5041_v25 }
 0x197   :  { %4621 = vpow2.f32 %v304_v28  ;;  %v284_v31 = vmul.f32 %v280_v30, %v270_v18  ;;  %v285_v33 = vmul.f32 %v280_v30, %v271_v29 }
 0x198   :  { %4623 = vpow2.f32 %v306_v17 }
 0x199   :  { %v5125_v36 = vadd.f32 %v294_v34, %v284_v31  ;;  %v5127_v37 = vadd.f32 %v294_v34, %v285_v33 }
 0x19b   :  { %v302_v38 = vmul.f32 -1.702, %v5125_v36  ;;  %v303_v39 = vmul.f32 -1.702, %v5127_v37 }
 0x19d   :  { %v4622_v40 = vpop.eup %4621  ;;  %v308_v42 = vmul.f32 1.442695, %v302_v38  ;;  %v310_v44 = vmul.f32 1.442695, %v303_v39  ;;  %v148_v38 = vld [vmem:[%s6621_s2 + $0x58] sm:$0xff] }
 0x19e   :  { %v4624_v43 = vpop.eup %4623  ;;  %v312_v23 = vadd.f32 1.0, %v4622_v40 }
 0x19f   :  { %v313_v25 = vadd.f32 1.0, %v4624_v43  ;;  %4625 = vpow2.f32 %v308_v42  ;;  %v147_v42 = vld [vmem:[%s6621_s2 + $0x50] sm:$0xff]  ;;  %v150_v43 = vld [vmem:[%s6621_s2 + $0x68] sm:$0xff] }
 0x1a0   :  { %4627 = vrcp.f32 %v312_v23  ;;  %v325_v55 = vand.u32 2147483647, %v312_v23  ;;  %v327_v56 = vand.u32 2147483648, %v312_v23  ;;  %vm321_vm14 = vweird.f32 %v312_v23 }
 0x1a1   :  { %4629 = vrcp.f32 %v313_v25  ;;  %v342_v60 = vand.u32 2147483648, %v313_v25  ;;  %v340_v62 = vand.u32 2147483647, %v313_v25  ;;  %vm336_vm1 = vweird.f32 %v313_v25 }
 0x1a2   :  { %4631 = vpow2.f32 %v310_v44  ;;  %v328_v2 = vor.u32 1.1754944e-38, %v327_v56  ;;  %vm326_vm3 = vcmp.eq.f32.partialorder %v325_v55, 8.507059e+37  ;;  %v6659_v56 = vmov 0 }
 0x1a3   :  { %v343_v5 = vor.u32 1.1754944e-38, %v342_v60  ;;  %vm341_vm8 = vcmp.eq.f32.partialorder %v340_v62, 8.507059e+37 }
 0x1a5   :  { %v4626_v45 = vpop.eup %4625 }
 0x1a6   :  { %v4628_v47 = vpop.eup %4627  ;;  %v314_v48 = vadd.f32 1.0, %v4626_v45 }
 0x1a7   :  { %v4630_v49 = vpop.eup %4629  ;;  %v317_v50 = vmul.f32 %v4628_v47, %v312_v23  ;;  %vm322_vm12 = vweird.f32 %v4628_v47  ;;  %v152_v23 = vld [vmem:[%s6621_s2 + $0x78] sm:$0xff] }
 0x1a8   :  { %v4632_v51 = vpop.eup %4631  ;;  %v332_v52 = vmul.f32 %v4630_v49, %v313_v25  ;;  %4633 = vrcp.f32 %v314_v48  ;;  %vm337_vm13 = vweird.f32 %v4630_v49  ;;  %vm323_vm15 = vmor %vm321_vm14, %vm322_vm12  ;;  %v357_v14 = vand.u32 2147483648, %v314_v48 }
 0x1a9   :  { %v318_v53 = vsub.f32 1.0, %v317_v50  ;;  %v315_v54 = vadd.f32 1.0, %v4632_v51  ;;  %vm338_vm6 = vmor %vm336_vm1, %vm337_vm13  ;;  %v355_v21 = vand.u32 2147483647, %v314_v48  ;;  %vm351_vm13 = vweird.f32 %v314_v48 }
 0x1aa   :  { %v333_v57 = vsub.f32 1.0, %v332_v52  ;;  %v6657_v51 = vmov 0 }
 0x1ab   :  { %v319_v58 = vmul.f32 %v4628_v47, %v318_v53  ;;  %4635 = vrcp.f32 %v315_v54  ;;  %v372_v27 = vand.u32 2147483648, %v315_v54  ;;  %v370_v17 = vand.u32 2147483647, %v315_v54 }
 0x1ac   :  { %v334_v61 = vmul.f32 %v4630_v49, %v333_v57  ;;  %vm356_vm1 = vcmp.eq.f32.partialorder %v355_v21, 8.507059e+37 }
 0x1ad   :  { %v320_v63 = vadd.f32 %v4628_v47, %v319_v58  ;;  %v373_v30 = vor.u32 1.1754944e-38, %v372_v27 }
 0x1ae   :  { %v4634_v1 = vpop.eup %4633  ;;  %v335_v3 = vadd.f32 %v4630_v49, %v334_v61 }
 0x1af   :  { %v324_v4 = vsel %vm323_vm15, %v4628_v47, %v320_v63  ;;  %v347_v6 = vmul.f32 %v4634_v1, %v314_v48  ;;  %vm352_vm12 = vweird.f32 %v4634_v1 }
 0x1b0   :  { %v329_v7 = vsel %vm326_vm3, %v328_v2, %v324_v4  ;;  %v339_v8 = vsel %vm338_vm6, %v4630_v49, %v335_v3  ;;  %vm353_vm14 = vmor %vm351_vm13, %vm352_vm12  ;;  %vm366_vm3 = vweird.f32 %v315_v54  ;;  %vm382_vm12 = vcmp.lt.s32.totalorder %v5059_v32, 120 }
 0x1b1   :  { %v4636_v9 = vpop.eup %4635  ;;  %v5132_v10 = vmul.f32 %v329_v7, %v5117_v16  ;;  %v344_v11 = vsel %vm341_vm8, %v343_v5, %v339_v8  ;;  %v348_v12 = vsub.f32 1.0, %v347_v6  ;;  %v358_v16 = vor.u32 1.1754944e-38, %v357_v14  ;;  %v4282_v14 = vld [vmem:[%s6622_s3 + $0x8] sm:$0xff] }
 0x1b2   :  { %v5135_v13 = vmul.f32 %v344_v11, %v5119_v19  ;;  %v362_v15 = vmul.f32 %v4636_v9, %v315_v54  ;;  %vm367_vm15 = vweird.f32 %v4636_v9  ;;  %vm371_vm8 = vcmp.eq.f32.partialorder %v370_v17, 8.507059e+37 }
 0x1b3   :  { %v349_v20 = vmul.f32 %v4634_v1, %v348_v12  ;;  %vm368_vm6 = vmor %vm366_vm3, %vm367_vm15  ;;  %vm6627_vm13 = vcmask 982016   ;;  %vm380_vm3 = vcmp.ge.s32.totalorder %v5059_v32, 8  ;;  %v6661_v6 = vmov 0 }
 0x1b4   :  { %v363_v22 = vsub.f32 1.0, %v362_v15  ;;  %v4351_v24 = vpack.i.bf16 %v5135_v13, %v5132_v10  ;;  %vm5171_vm15 = vmpackc.low %vm382_vm12, %vm382_vm12 }
 0x1b5   :  { %v350_v26 = vadd.f32 %v4634_v1, %v349_v20  ;;  %v6658_v51 = vsel %vm5171_vm15, 4294967295, %v6657_v51  ;;  %vm5195_vm12 = vmpackc.low %vm380_vm3, %vm380_vm3 }
 0x1b6   :  { %v364_v28 = vmul.f32 %v4636_v9, %v363_v22  ;;  %4352 = vrot.lane.b32.xlu1 %v4351_v24, %s4954_s7  ;;  %4342 = vrot.lane.b32.xlu2 %v4351_v24, %s4955_s8  ;;  %v6662_v6 = vsel %vm5195_vm12, 4294967295, %v6661_v6 }
 0x1b7   :  { %v354_v19 = vsel %vm353_vm14, %v4634_v1, %v350_v26  ;;  %vm383_vm14 = vcmp.lt.s32.totalorder %v5062_v35, 120 }
 0x1b8   :  { %v359_v18 = vsel %vm356_vm1, %v358_v16, %v354_v19  ;;  %v365_v29 = vadd.f32 %v4636_v9, %v364_v28  ;;  %vm5179_vm1 = vmpackc.low %vm383_vm14, %vm383_vm14 }
 0x1b9   :  { %v5142_v31 = vmul.f32 %v359_v18, %v5125_v36  ;;  %v151_v36 = vld [vmem:[%s6621_s2 + $0x70] sm:$0xff]  ;;  %v6660_v56 = vsel %vm5179_vm1, 4294967295, %v6659_v56 }
 0x1ba   :  { %v369_v33 = vsel %vm368_vm6, %v4636_v9, %v365_v29  ;;  %vm6626_vm6 = vcmask 64512   ;;  %v6663_v9 = vmov 0 }
 0x1bb   :  { %v374_v34 = vsel %vm371_vm8, %v373_v30, %v369_v33  ;;  %v440_v2 = vpack.c.bf16 %v5142_v31, %v5132_v10  ;;  %vm381_vm8 = vcmp.ge.s32.totalorder %v5062_v35, 8 }
 0x1bc   :  { %v5148_v39 = vmul.f32 %v374_v34, %v5127_v37  ;;  %v149_v37 = vld [vmem:[%s6621_s2 + $0x60] sm:$0xff]  ;;  %vm5201_vm14 = vmpackc.low %vm381_vm8, %vm381_vm8 }
 0x1bd   :  { %v6664_v9 = vsel %vm5201_vm14, 4294967295, %v6663_v9 }
 0x1be   :  { %v4346_v40 = vpack.i.bf16 %v5148_v39, %v5142_v31  ;;  %451 = vperm.xlu1 %4319, %v148_v38   ;;  %v441_v3 = vpack.c.bf16 %v5148_v39, %v5135_v13 }
 0x1c0   :  { %4347 = vrot.lane.b32.xlu0 %v4346_v40, %s4955_s8  ;;  %4357 = vrot.lane.b32.xlu2 %v4346_v40, %s4954_s7 }
 0x1c6   :  { %510 = vperm.xlu1 %4319, %v151_v36  }
 0x1c8   :  { %446 = vperm.xlu0 %4318, %v147_v42   ;;  %496 = vperm.xlu2 %4340, %v149_v37  }
 0x1d0   :  { %501 = vperm.xlu0 %4318, %v150_v43   ;;  %515 = vperm.xlu2 %4340, %v152_v23  }
 0x210   :  { %v4343_v44 = vpop.permute.xlu2 %4342 }
 0x211   :  { %v4345_v25 = vunpack.i.h.bf16 %v4343_v44  ;;  %v4344_v45 = vunpack.i.l.bf16 %v4343_v44 }
 0x213   :  { %v420_v52 = vsel %vm6627_vm13, %v4345_v25, 0.0  ;;  %v414_v53 = vsel %vm6627_vm13, %v4344_v45, %v4345_v25 }
 0x21a   :  { %v4358_v57 = vpop.permute.xlu2 %4357 }
 0x21b   :  { %v4360_v63 = vunpack.i.h.bf16 %v4358_v57  ;;  %v4359_v1 = vunpack.i.l.bf16 %v4358_v57 }
 0x21d   :  { %v398_v7 = vsel %vm6626_vm6, %v4359_v1, %v4360_v63  ;;  %v404_v8 = vsel %vm6626_vm6, 0.0, %v4359_v1 }
 0x222   :  { %v497_v28 = vpop.permute.xlu2 %496 }
 0x228   :  { %v4353_v50 = vpop.permute.xlu1 %4352 }
 0x229   :  { %v4355_v61 = vunpack.i.h.bf16 %v4353_v50  ;;  %v4354_v62 = vunpack.i.l.bf16 %v4353_v50 }
 0x22a   :  { %v516_v45 = vpop.permute.xlu2 %515 }
 0x22b   :  { %v397_v4 = vsel %vm6626_vm6, %v4354_v62, %v4355_v61  ;;  %v403_v5 = vsel %vm6626_vm6, 0.0, %v4354_v62 }
 0x22c   :  { %v3981_v11 = vpack.c.bf16 %v404_v8, %v403_v5  ;;  %v3988_v12 = vpack.c.bf16 %v398_v7, %v397_v4 }
 0x230   :  { %v452_v15 = vpop.permute.xlu1 %451 }
 0x232   :  { %v4348_v47 = vpop.permute.xlu0 %4347 }
 0x233   :  { %v4350_v48 = vunpack.i.h.bf16 %v4348_v47  ;;  %v4349_v49 = vunpack.i.l.bf16 %v4348_v47 }
 0x235   :  { %v421_v54 = vsel %vm6627_vm13, %v4350_v48, 0.0  ;;  %v415_v55 = vsel %vm6627_vm13, %v4349_v49, %v4350_v48 }
 0x236   :  { %v3978_v58 = vpack.c.bf16 %v415_v55, %v414_v53  ;;  %v3985_v60 = vpack.c.bf16 %v421_v54, %v420_v52 }
 0x238   :  { %3979 = vmatpush.bf16.msk.msra.mxu0 %vm5171_vm15, %v3978_v58  ;;  %3986 = vmatpush.bf16.msk.msra.mxu1 %vm5179_vm1, %v3985_v60  ;;  %v511_v18 = vpop.permute.xlu1 %510 }
 0x23a   :  { %v447_v20 = vpop.permute.xlu0 %446 }
 0x23c   :  { %468 = vmatpush.bf16.msra.mxu0 %v440_v2  ;;  %482 = vmatpush.bf16.msra.mxu1 %v441_v3 }
 0x240   :  { %3982 = vmatpush.bf16.msk.msra.mxu0 %vm5195_vm12, %v3981_v11  ;;  %3989 = vmatpush.bf16.msk.msra.mxu1 %vm5201_vm14, %v3988_v12 }
 0x242   :  { %v502_v23 = vpop.permute.xlu0 %501 }
 0x243   :  { %3983 = vmatmul.msk.bf16.vlgmr.msra.gmra.mxu0 %vm6631_vm11, %v4282_v14  ;;  %3990 = vmatmul.msk.bf16.vlgmr.msra.gmra.mxu1 %vm6631_vm11, %v4282_v14 }
 0x2c0   :  { %v471_v21 = vpop.f32.mrf.mxu0  ;;  %v485_v22 = vpop.f32.mrf.mxu1 }
 0x2c1   :  { %v472_v24 = vadd.f32 %v471_v21, %v447_v20  ;;  %v486_v26 = vadd.f32 %v485_v22, %v447_v20 }
 0x2c3   :  { %v490_v27 = vadd.f32 %v472_v24, %v5132_v10  ;;  %v491_v16 = vadd.f32 %v486_v26, %v5135_v13 }
 0x2c5   :  { %v504_v17 = vmul.f32 %v497_v28, %v490_v27  ;;  %v505_v19 = vmul.f32 %v497_v28, %v491_v16 }
 0x2c7   :  { %v5216_v29 = vadd.f32 %v511_v18, %v504_v17  ;;  %v5218_v30 = vadd.f32 %v511_v18, %v505_v19 }
 0x2c8   :  { %v473_v33 = vpop.f32.mrf.mxu0  ;;  %v487_v34 = vpop.f32.mrf.mxu1 }
 0x2c9   :  { %v522_v38 = vmul.f32 -1.702, %v5216_v29  ;;  %v523_v40 = vmul.f32 -1.702, %v5218_v30  ;;  %v474_v36 = vadd.f32 %v473_v33, %v452_v15  ;;  %v488_v42 = vadd.f32 %v487_v34, %v452_v15 }
 0x2cb   :  { %v526_v37 = vmul.f32 1.442695, %v522_v38  ;;  %v528_v10 = vmul.f32 1.442695, %v523_v40  ;;  %v492_v13 = vadd.f32 %v474_v36, %v5142_v31  ;;  %v493_v43 = vadd.f32 %v488_v42, %v5148_v39 }
 0x2cd   :  { %4637 = vpow2.f32 %v526_v37  ;;  %v506_v44 = vmul.f32 %v502_v23, %v492_v13  ;;  %v507_v25 = vmul.f32 %v502_v23, %v493_v43 }
 0x2ce   :  { %4639 = vpow2.f32 %v528_v10 }
 0x2cf   :  { %v5224_v47 = vadd.f32 %v516_v45, %v506_v44  ;;  %v5226_v48 = vadd.f32 %v516_v45, %v507_v25 }
 0x2d1   :  { %v524_v49 = vmul.f32 -1.702, %v5224_v47  ;;  %v525_v50 = vmul.f32 -1.702, %v5226_v48 }
 0x2d3   :  { %v4638_v52 = vpop.eup %4637  ;;  %v530_v53 = vmul.f32 1.442695, %v524_v49  ;;  %v532_v55 = vmul.f32 1.442695, %v525_v50 }
 0x2d4   :  { %v4640_v54 = vpop.eup %4639  ;;  %v534_v31 = vadd.f32 1.0, %v4638_v52 }
 0x2d5   :  { %v535_v39 = vadd.f32 1.0, %v4640_v54  ;;  %4641 = vpow2.f32 %v530_v53  ;;  %v156_v54 = vld [vmem:[%s6621_s2 + $0x98] sm:$0xff] }
 0x2d6   :  { %4643 = vrcp.f32 %v534_v31  ;;  %v547_v4 = vand.u32 2147483647, %v534_v31  ;;  %v549_v5 = vand.u32 2147483648, %v534_v31  ;;  %vm543_vm6 = vweird.f32 %v534_v31 }
 0x2d7   :  { %4645 = vrcp.f32 %v535_v39  ;;  %v564_v11 = vand.u32 2147483648, %v535_v39  ;;  %v562_v14 = vand.u32 2147483647, %v535_v39  ;;  %vm558_vm7 = vweird.f32 %v535_v39 }
 0x2d8   :  { %4647 = vpow2.f32 %v532_v55  ;;  %v550_v21 = vor.u32 1.1754944e-38, %v549_v5  ;;  %vm548_vm2 = vcmp.eq.f32.partialorder %v547_v4, 8.507059e+37 }
 0x2d9   :  { %v565_v26 = vor.u32 1.1754944e-38, %v564_v11  ;;  %vm563_vm11 = vcmp.eq.f32.partialorder %v562_v14, 8.507059e+37 }
 0x2db   :  { %v4642_v57 = vpop.eup %4641 }
 0x2dc   :  { %v4644_v58 = vpop.eup %4643  ;;  %v536_v60 = vadd.f32 1.0, %v4642_v57 }
 0x2dd   :  { %v4646_v61 = vpop.eup %4645  ;;  %v539_v62 = vmul.f32 %v4644_v58, %v534_v31  ;;  %vm544_vm3 = vweird.f32 %v4644_v58 }
 0x2de   :  { %v4648_v63 = vpop.eup %4647  ;;  %4649 = vrcp.f32 %v536_v60  ;;  %v554_v1 = vmul.f32 %v4646_v61, %v535_v39  ;;  %vm559_vm8 = vweird.f32 %v4646_v61  ;;  %vm545_vm13 = vmor %vm543_vm6, %vm544_vm3  ;;  %v579_v38 = vand.u32 2147483648, %v536_v60 }
 0x2df   :  { %v537_v2 = vadd.f32 1.0, %v4648_v63  ;;  %v540_v3 = vsub.f32 1.0, %v539_v62  ;;  %vm560_vm0 = vmor %vm558_vm7, %vm559_vm8  ;;  %v577_v42 = vand.u32 2147483647, %v536_v60 }
 0x2e0   :  { %v555_v7 = vsub.f32 1.0, %v554_v1 }
 0x2e1   :  { %4651 = vrcp.f32 %v537_v2  ;;  %v541_v8 = vmul.f32 %v4644_v58, %v540_v3  ;;  %v594_v43 = vand.u32 2147483648, %v537_v2  ;;  %v592_v23 = vand.u32 2147483647, %v537_v2 }
 0x2e2   :  { %v556_v12 = vmul.f32 %v4646_v61, %v555_v7  ;;  %vm588_vm6 = vweird.f32 %v537_v2 }
 0x2e3   :  { %v542_v15 = vadd.f32 %v4644_v58, %v541_v8  ;;  %v595_v49 = vor.u32 1.1754944e-38, %v594_v43  ;;  %vm593_vm8 = vcmp.eq.f32.partialorder %v592_v23, 8.507059e+37 }
 0x2e4   :  { %v4650_v20 = vpop.eup %4649  ;;  %v557_v22 = vadd.f32 %v4646_v61, %v556_v12  ;;  %v4299_v12 = vld [vmem:[%s6622_s3 + $0x90] sm:$0xff] }
 0x2e5   :  { %v546_v24 = vsel %vm545_vm13, %v4644_v58, %v542_v15  ;;  %v569_v27 = vmul.f32 %v4650_v20, %v536_v60  ;;  %vm574_vm13 = vweird.f32 %v4650_v20  ;;  %v153_v58 = vld [vmem:[%s6621_s2 + $0x80] sm:$0xff] }
 0x2e6   :  { %v551_v16 = vsel %vm548_vm2, %v550_v21, %v546_v24  ;;  %v561_v28 = vsel %vm560_vm0, %v4646_v61, %v557_v22  ;;  %vm573_vm0 = vweird.f32 %v536_v60 }
 0x2e7   :  { %v4652_v17 = vpop.eup %4651  ;;  %v566_v19 = vsel %vm563_vm11, %v565_v26, %v561_v28  ;;  %v5231_v18 = vmul.f32 %v551_v16, %v5216_v29  ;;  %v570_v33 = vsub.f32 1.0, %v569_v27  ;;  %vm575_vm2 = vmor %vm573_vm0, %vm574_vm13  ;;  %v580_v29 = vor.u32 1.1754944e-38, %v579_v38  ;;  %v4283_v38 = vld [vmem:[%s6622_s3 + $0x10] sm:$0xff] }
 0x2e8   :  { %v5234_v34 = vmul.f32 %v566_v19, %v5218_v30  ;;  %v584_v40 = vmul.f32 %v4652_v17, %v537_v2  ;;  %vm589_vm7 = vweird.f32 %v4652_v17  ;;  %vm578_vm11 = vcmp.eq.f32.partialorder %v577_v42, 8.507059e+37 }
 0x2e9   :  { %v571_v36 = vmul.f32 %v4650_v20, %v570_v33  ;;  %vm590_vm3 = vmor %vm588_vm6, %vm589_vm7  ;;  %vm604_vm13 = vcmp.lt.s32.totalorder %v5059_v32, 127  ;;  %vm6632_vm0 = vcmask 1039360   ;;  %vm602_vm6 = vcmp.ge.s32.totalorder %v5059_v32, 1 }
 0x2ea   :  { %v4371_v37 = vpack.i.bf16 %v5234_v34, %v5231_v18  ;;  %v585_v10 = vsub.f32 1.0, %v584_v40  ;;  %vm5260_vm7 = vmpackc.low %vm604_vm13, %vm604_vm13  ;;  %v4284_v40 = vld [vmem:[%s6622_s3 + $0x18] sm:$0xff] }
 0x2eb   :  { %v572_v13 = vadd.f32 %v4650_v20, %v571_v36  ;;  %vm5280_vm13 = vmpackc.low %vm602_vm6, %vm602_vm6  ;;  %vm6673_vm6 = vcmask 392192  }
 0x2ec   :  { %4372 = vrot.lane.b32.xlu2 %v4371_v37, %s4956_s23  ;;  %4362 = vrot.lane.b32.xlu0 %v4371_v37, %s4957_s24  ;;  %v586_v30 = vmul.f32 %v4652_v17, %v585_v10 }
 0x2ed   :  { %v576_v44 = vsel %vm575_vm2, %v4650_v20, %v572_v13  ;;  %vm605_vm2 = vcmp.lt.s32.totalorder %v5062_v35, 127 }
 0x2ee   :  { %v581_v25 = vsel %vm578_vm11, %v580_v29, %v576_v44  ;;  %v587_v45 = vadd.f32 %v4652_v17, %v586_v30  ;;  %vm5268_vm11 = vmpackc.low %vm605_vm2, %vm605_vm2 }
 0x2ef   :  { %v600_v50 = vmul.f32 %v581_v25, %v5224_v47  ;;  %v155_v47 = vld [vmem:[%s6621_s2 + $0x90] sm:$0xff] }
 0x2f0   :  { %v591_v52 = vsel %vm590_vm3, %v4652_v17, %v587_v45  ;;  %vm6633_vm3 = vcmask 7168  }
 0x2f1   :  { %v596_v53 = vsel %vm593_vm8, %v595_v49, %v591_v52  ;;  %v662_v31 = vpack.c.bf16 %v600_v50, %v5231_v18  ;;  %vm603_vm8 = vcmp.ge.s32.totalorder %v5062_v35, 1 }
 0x2f2   :  { %v601_v55 = vmul.f32 %v596_v53, %v5226_v48  ;;  %v154_v48 = vld [vmem:[%s6621_s2 + $0x88] sm:$0xff]  ;;  %vm5286_vm2 = vmpackc.low %vm603_vm8, %vm603_vm8 }
 0x2f4   :  { %v4366_v39 = vpack.i.bf16 %v601_v55, %v600_v50  ;;  %683 = vperm.xlu2 %4340, %v156_v54   ;;  %v663_v57 = vpack.c.bf16 %v601_v55, %v5234_v34 }
 0x2f6   :  { %4367 = vrot.lane.b32.xlu1 %v4366_v39, %s4957_s24  ;;  %4377 = vrot.lane.b32.xlu0 %v4366_v39, %s4956_s23 }
 0x2fe   :  { %678 = vperm.xlu1 %4319, %v155_v47   ;;  %668 = vperm.xlu0 %4318, %v153_v58  }
 0x306   :  { %673 = vperm.xlu1 %4319, %v154_v48  }
 0x346   :  { %v4373_v14 = vpop.permute.xlu2 %4372 }
 0x347   :  { %v4375_v24 = vunpack.i.h.bf16 %v4373_v14  ;;  %v4374_v26 = vunpack.i.l.bf16 %v4373_v14 }
 0x349   :  { %v625_v17 = vsel %vm6633_vm3, 0.0, %v4374_v26  ;;  %v619_v19 = vsel %vm6633_vm3, %v4374_v26, %v4375_v24 }
 0x34e   :  { %v684_v50 = vpop.permute.xlu2 %683 }
 0x35e   :  { %v4363_v60 = vpop.permute.xlu0 %4362 }
 0x35f   :  { %v4365_v61 = vunpack.i.h.bf16 %v4363_v60  ;;  %v4364_v62 = vunpack.i.l.bf16 %v4363_v60 }
 0x361   :  { %v636_v5 = vsel %vm6632_vm0, %v4364_v62, %v4365_v61  ;;  %v642_v8 = vsel %vm6632_vm0, %v4365_v61, 0.0 }
 0x368   :  { %v4368_v63 = vpop.permute.xlu1 %4367  ;;  %v4378_v3 = vpop.permute.xlu0 %4377 }
 0x369   :  { %v4370_v1 = vunpack.i.h.bf16 %v4368_v63  ;;  %v4369_v2 = vunpack.i.l.bf16 %v4368_v63  ;;  %v4380_v21 = vunpack.i.h.bf16 %v4378_v3  ;;  %v4379_v22 = vunpack.i.l.bf16 %v4378_v3 }
 0x36b   :  { %v637_v7 = vsel %vm6632_vm0, %v4369_v2, %v4370_v1  ;;  %v643_v11 = vsel %vm6632_vm0, %v4370_v1, 0.0  ;;  %v626_v27 = vsel %vm6633_vm3, 0.0, %v4379_v22  ;;  %v620_v16 = vsel %vm6633_vm3, %v4379_v22, %v4380_v21  ;;  %vm6674_vm0 = vmmov %vm6673_vm6 }
 0x36c   :  { %v4000_v15 = vpack.c.bf16 %v637_v7, %v636_v5  ;;  %v4008_v20 = vpack.c.bf16 %v643_v11, %v642_v8  ;;  %v4003_v33 = vpack.c.bf16 %v626_v27, %v625_v17  ;;  %v4011_v34 = vpack.c.bf16 %v620_v16, %v619_v19  ;;  %vm6675_vm8 = vmmov %vm6674_vm0 }
 0x36d   :  { %vm6676_vm3 = vmmov %vm6674_vm0 }
 0x36e   :  { %4001 = vmatpush.bf16.msk.msra.mxu2 %vm5260_vm7, %v4000_v15  ;;  %4009 = vmatpush.bf16.msk.msra.mxu3 %vm5268_vm11, %v4008_v20 }
 0x370   :  { %v679_v13 = vpop.permute.xlu1 %678  ;;  %v669_v27 = vpop.permute.xlu0 %668 }
 0x372   :  { %708 = vmatpush.bf16.msra.mxu2 %v662_v31  ;;  %727 = vmatpush.bf16.msra.mxu3 %v663_v57 }
 0x376   :  { %4004 = vmatpush.bf16.msk.msra.mxu2 %vm5280_vm13, %v4003_v33  ;;  %4012 = vmatpush.bf16.msk.msra.mxu3 %vm5286_vm2, %v4011_v34 }
 0x379   :  { %4005 = vmatmul.msk.bf16.vlgmr.msra.gmra.mxu2 %vm6673_vm6, %v4283_v38  ;;  %4013 = vmatmul.msk.bf16.vlgmr.msra.gmra.mxu3 %vm6674_vm0, %v4283_v38 }
 0x389   :  { %4006 = vmatmul.msk.bf16.gmra.mxu2 %vm6675_vm8, %v4284_v40  ;;  %4014 = vmatmul.msk.bf16.gmra.mxu3 %vm6676_vm3, %v4284_v40 }
 0x3fc   :  { %v711_v36 = vpop.f32.mrf.mxu2  ;;  %v5304_v42 = vpop.f32.mrf.mxu3 }
 0x3fd   :  { %v712_v19 = vadd.f32 %v711_v36, %v669_v27 }
 0x404   :  { %v5306_v37 = vpop.f32.mrf.mxu2  ;;  %v5308_v10 = vpop.f32.mrf.mxu3 }
 0x40c   :  { %v716_v43 = vpop.f32.mrf.mxu2  ;;  %v735_v29 = vpop.f32.mrf.mxu3 }
 0x40d   :  { %v717_v30 = vadd.f32 %v716_v43, %v679_v13  ;;  %v736_v23 = vadd.f32 %v735_v29, %v679_v13  ;;  %v731_v43 = vadd.f32 %v5304_v42, %v669_v27 }
 0x40f   :  { %v740_v44 = vsub.f32 0.0, %v717_v30  ;;  %v741_v25 = vsub.f32 0.0, %v736_v23 }
 0x411   :  { %v744_v45 = vmul.f32 1.442695, %v740_v44  ;;  %v746_v49 = vmul.f32 1.442695, %v741_v25 }
 0x413   :  { %4653 = vpow2.f32 %v744_v45 }
 0x414   :  { %4655 = vpow2.f32 %v746_v49  ;;  %v718_v52 = vpop.f32.mrf.mxu2  ;;  %v737_v53 = vpop.f32.mrf.mxu3 }
 0x415   :  { %v719_v54 = vadd.f32 %v718_v52, %v684_v50  ;;  %v738_v31 = vadd.f32 %v737_v53, %v684_v50 }
 0x417   :  { %v742_v55 = vsub.f32 0.0, %v719_v54  ;;  %v743_v39 = vsub.f32 0.0, %v738_v31 }
 0x419   :  { %v4654_v57 = vpop.eup %4653  ;;  %v748_v47 = vmul.f32 1.442695, %v742_v55  ;;  %v750_v60 = vmul.f32 1.442695, %v743_v39 }
 0x41a   :  { %v4656_v58 = vpop.eup %4655  ;;  %v752_v48 = vadd.f32 1.0, %v4654_v57 }
 0x41b   :  { %v753_v61 = vadd.f32 1.0, %v4656_v58  ;;  %4657 = vpow2.f32 %v748_v47  ;;  %v674_v58 = vpop.permute.xlu1 %673 }
 0x41c   :  { %4659 = vrcp.f32 %v752_v48  ;;  %v767_v14 = vand.u32 2147483648, %v752_v48  ;;  %v765_v20 = vand.u32 2147483647, %v752_v48  ;;  %vm761_vm6 = vweird.f32 %v752_v48 }
 0x41d   :  { %4661 = vrcp.f32 %v753_v61  ;;  %v782_v22 = vand.u32 2147483648, %v753_v61  ;;  %v780_v26 = vand.u32 2147483647, %v753_v61  ;;  %vm776_vm14 = vweird.f32 %v753_v61 }
 0x41e   :  { %4663 = vpow2.f32 %v750_v60  ;;  %v768_v33 = vor.u32 1.1754944e-38, %v767_v14  ;;  %vm766_vm1 = vcmp.eq.f32.partialorder %v765_v20, 8.507059e+37  ;;  %v714_v60 = vadd.f32 %v5306_v37, %v674_v58  ;;  %v830_v14 = vld [vmem:[%s6621_s2 + $0xb0] sm:$0xff]  ;;  %v833_v20 = vld [vmem:[%s6621_s2 + $0xc8] sm:$0xff] }
 0x41f   :  { %v783_v38 = vor.u32 1.1754944e-38, %v782_v22  ;;  %vm781_vm15 = vcmp.eq.f32.partialorder %v780_v26, 8.507059e+37 }
 0x421   :  { %v4658_v62 = vpop.eup %4657 }
 0x422   :  { %v4660_v63 = vpop.eup %4659  ;;  %v5310_v1 = vadd.f32 1.0, %v4658_v62 }
 0x423   :  { %v4662_v2 = vpop.eup %4661  ;;  %v757_v3 = vmul.f32 %v4660_v63, %v752_v48  ;;  %vm762_vm0 = vweird.f32 %v4660_v63 }
 0x424   :  { %v4664_v5 = vpop.eup %4663  ;;  %v772_v7 = vmul.f32 %v4662_v2, %v753_v61  ;;  %4665 = vrcp.f32 %v5310_v1  ;;  %vm777_vm3 = vweird.f32 %v4662_v2  ;;  %vm763_vm8 = vmor %vm761_vm6, %vm762_vm0  ;;  %v797_v36 = vand.u32 2147483648, %v5310_v1 }
 0x425   :  { %v758_v8 = vsub.f32 1.0, %v757_v3  ;;  %v5313_v11 = vadd.f32 1.0, %v4664_v5  ;;  %vm778_vm12 = vmor %vm776_vm14, %vm777_vm3  ;;  %v795_v53 = vand.u32 2147483647, %v5310_v1 }
 0x426   :  { %v773_v15 = vsub.f32 1.0, %v772_v7  ;;  %v798_v39 = vor.u32 1.1754944e-38, %v797_v36  ;;  %v829_v7 = vld [vmem:[%s6621_s2 + $0xa8] sm:$0xff] }
 0x427   :  { %v759_v21 = vmul.f32 %v4660_v63, %v758_v8  ;;  %4667 = vrcp.f32 %v5313_v11  ;;  %v812_v31 = vand.u32 2147483648, %v5313_v11  ;;  %v810_v47 = vand.u32 2147483647, %v5313_v11 }
 0x428   :  { %v774_v24 = vmul.f32 %v4662_v2, %v773_v15  ;;  %vm796_vm0 = vcmp.eq.f32.partialorder %v795_v53, 8.507059e+37  ;;  %vm806_vm3 = vweird.f32 %v5313_v11  ;;  %v831_v15 = vld [vmem:[%s6621_s2 + $0xb8] sm:$0xff] }
 0x429   :  { %v760_v16 = vadd.f32 %v4660_v63, %v759_v21 }
 0x42a   :  { %v4666_v17 = vpop.eup %4665  ;;  %v775_v34 = vadd.f32 %v4662_v2, %v774_v24 }
 0x42b   :  { %v787_v40 = vmul.f32 %v4666_v17, %v5310_v1  ;;  %v764_v13 = vsel %vm763_vm8, %v4660_v63, %v760_v16  ;;  %vm792_vm14 = vweird.f32 %v4666_v17  ;;  %v813_v63 = vor.u32 1.1754944e-38, %v812_v31 }
 0x42c   :  { %v769_v29 = vsel %vm766_vm1, %v768_v33, %v764_v13  ;;  %v779_v30 = vsel %vm778_vm12, %v4662_v2, %v775_v34  ;;  %vm791_vm1 = vweird.f32 %v5310_v1  ;;  %v733_v1 = vadd.f32 %v5308_v10, %v674_v58  ;;  %v832_v10 = vld [vmem:[%s6621_s2 + $0xc0] sm:$0xff] }
 0x42d   :  { %v4668_v23 = vpop.eup %4667  ;;  %v788_v44 = vsub.f32 1.0, %v787_v40  ;;  %v784_v25 = vsel %vm781_vm15, %v783_v38, %v779_v30  ;;  %v5318_v45 = vmul.f32 %v769_v29, %v712_v19  ;;  %vm793_vm15 = vmor %vm791_vm1, %vm792_vm14  ;;  %vm811_vm8 = vcmp.eq.f32.partialorder %v810_v47, 8.507059e+37  ;;  %v4285_v58 = vld [vmem:[%s6622_s3 + $0x20] sm:$0xff] }
 0x42e   :  { %v802_v49 = vmul.f32 %v4668_v23, %v5313_v11  ;;  %v5322_v50 = vmul.f32 %v784_v25, %v731_v43  ;;  %vm807_vm12 = vweird.f32 %v4668_v23  ;;  %v828_v11 = vld [vmem:[%s6621_s2 + $0xa0] sm:$0xff]  ;;  %vm846_vm14 = vcmp.lt.s32.totalorder %v5059_v32, 112 }
 0x42f   :  { %v789_v52 = vmul.f32 %v4666_v17, %v788_v44  ;;  %vm808_vm6 = vmor %vm806_vm3, %vm807_vm12  ;;  %vm6638_vm1 = vcmask 916480   ;;  %v6677_v19 = vmov 0  ;;  %v6679_v13 = vmov 0 }
 0x430   :  { %v803_v54 = vsub.f32 1.0, %v802_v49  ;;  %v4391_v42 = vpack.i.bf16 %v5322_v50, %v5318_v45  ;;  %vm5363_vm12 = vmpackc.low %vm846_vm14, %vm846_vm14  ;;  %vm844_vm3 = vcmp.ge.s32.totalorder %v5059_v32, 16 }
 0x431   :  { %v790_v55 = vadd.f32 %v4666_v17, %v789_v52  ;;  %v6678_v19 = vsel %vm5363_vm12, 4294967295, %v6677_v19 }
 0x432   :  { %v804_v57 = vmul.f32 %v4668_v23, %v803_v54  ;;  %4392 = vrot.lane.b32.xlu1 %v4391_v42, %s4958_s14  ;;  %4382 = vrot.lane.b32.xlu2 %v4391_v42, %s4959_s15  ;;  %v6683_v42 = vmov 0 }
 0x433   :  { %v794_v48 = vsel %vm793_vm15, %v4666_v17, %v790_v55  ;;  %vm847_vm15 = vcmp.lt.s32.totalorder %v5062_v35, 112 }
 0x434   :  { %v799_v61 = vsel %vm796_vm0, %v798_v39, %v794_v48  ;;  %v805_v62 = vadd.f32 %v4668_v23, %v804_v57  ;;  %vm5371_vm0 = vmpackc.low %vm847_vm15, %vm847_vm15  ;;  %v6687_v39 = vmov 0 }
 0x435   :  { %v5335_v3 = vmul.f32 %v799_v61, %v714_v60  ;;  %v6680_v13 = vsel %vm5371_vm0, 4294967295, %v6679_v13  ;;  %vm5387_vm15 = vmpackc.low %vm844_vm3, %vm844_vm3  ;;  %vm6689_vm3 = vcmask 392192  }
 0x436   :  { %v809_v2 = vsel %vm808_vm6, %v4668_v23, %v805_v62  ;;  %vm845_vm6 = vcmp.ge.s32.totalorder %v5062_v35, 16  ;;  %v6684_v42 = vsel %vm5387_vm15, 4294967295, %v6683_v42 }
 0x437   :  { %v814_v5 = vsel %vm811_vm8, %v813_v63, %v809_v2  ;;  %v903_v49 = vpack.c.bf16 %v5335_v3, %v5318_v45  ;;  %vm6681_vm8 = vcmask 130048  }
 0x438   :  { %v5340_v8 = vmul.f32 %v814_v5, %v733_v1  ;;  %vm6682_vm14 = vmmov %vm6681_vm8 }
 0x43a   :  { %v4386_v37 = vpack.i.bf16 %v5340_v8, %v5335_v3  ;;  %914 = vperm.xlu1 %4319, %v829_v7   ;;  %v904_v52 = vpack.c.bf16 %v5340_v8, %v5322_v50 }
 0x43c   :  { %4387 = vrot.lane.b32.xlu0 %v4386_v37, %s4959_s15  ;;  %4397 = vrot.lane.b32.xlu2 %v4386_v37, %s4958_s14 }
 0x442   :  { %973 = vperm.xlu1 %4319, %v832_v10  }
 0x444   :  { %909 = vperm.xlu0 %4318, %v828_v11   ;;  %959 = vperm.xlu2 %4340, %v830_v14  }
 0x44c   :  { %964 = vperm.xlu0 %4318, %v831_v15   ;;  %978 = vperm.xlu2 %4340, %v833_v20  }
 0x48c   :  { %v4383_v21 = vpop.permute.xlu2 %4382 }
 0x48d   :  { %v4385_v22 = vunpack.i.h.bf16 %v4383_v21  ;;  %v4384_v24 = vunpack.i.l.bf16 %v4383_v21 }
 0x48f   :  { %v883_v33 = vsel %vm6638_vm1, %v4385_v22, 0.0  ;;  %v877_v34 = vsel %vm6638_vm1, %v4384_v24, %v4385_v22 }
 0x496   :  { %v4398_v43 = vpop.permute.xlu2 %4397 }
 0x497   :  { %v4400_v25 = vunpack.i.h.bf16 %v4398_v43  ;;  %v4399_v36 = vunpack.i.l.bf16 %v4398_v43 }
 0x49e   :  { %v960_v7 = vpop.permute.xlu2 %959 }
 0x4a4   :  { %v4393_v17 = vpop.permute.xlu1 %4392 }
 0x4a5   :  { %v4395_v23 = vunpack.i.h.bf16 %v4393_v17  ;;  %v4394_v44 = vunpack.i.l.bf16 %v4393_v17 }
 0x4a7   :  { %v860_v53 = vsel %vm6681_vm8, %v4394_v44, %v4395_v23  ;;  %v866_v54 = vsel %vm6682_vm14, 0.0, %v4394_v44 }
 0x4ac   :  { %v915_v48 = vpop.permute.xlu1 %914 }
 0x4ae   :  { %v4388_v26 = vpop.permute.xlu0 %4387 }
 0x4af   :  { %v4390_v27 = vunpack.i.h.bf16 %v4388_v26  ;;  %v4389_v16 = vunpack.i.l.bf16 %v4388_v26 }
 0x4b1   :  { %v884_v38 = vsel %vm6638_vm1, %v4390_v27, 0.0  ;;  %v878_v40 = vsel %vm6638_vm1, %v4389_v16, %v4390_v27  ;;  %vm6685_vm1 = vmmov %vm6681_vm8 }
 0x4b2   :  { %v4020_v29 = vpack.c.bf16 %v878_v40, %v877_v34  ;;  %v4027_v30 = vpack.c.bf16 %v884_v38, %v883_v33  ;;  %v861_v31 = vsel %vm6685_vm1, %v4399_v36, %v4400_v25  ;;  %v979_v40 = vpop.permute.xlu2 %978 }
 0x4b3   :  { %v4030_v47 = vpack.c.bf16 %v861_v31, %v860_v53 }
 0x4b4   :  { %4021 = vmatpush.bf16.msk.msrb.mxu0 %vm5363_vm12, %v4020_v29  ;;  %4028 = vmatpush.bf16.msk.msrb.mxu1 %vm5371_vm0, %v4027_v30  ;;  %vm6686_vm0 = vmmov %vm6685_vm1  ;;  %v974_v11 = vpop.permute.xlu1 %973 }
 0x4b5   :  { %v867_v55 = vsel %vm6686_vm0, 0.0, %v4399_v36  ;;  %vm5393_vm12 = vmpackc.low %vm845_vm6, %vm845_vm6 }
 0x4b6   :  { %v6688_v39 = vsel %vm5393_vm12, 4294967295, %v6687_v39  ;;  %v4023_v57 = vpack.c.bf16 %v867_v55, %v866_v54  ;;  %vm6690_vm1 = vmmov %vm6689_vm3  ;;  %v910_v60 = vpop.permute.xlu0 %909 }
 0x4b8   :  { %931 = vmatpush.bf16.msrb.mxu0 %v903_v49  ;;  %945 = vmatpush.bf16.msrb.mxu1 %v904_v52 }
 0x4bc   :  { %4024 = vmatpush.bf16.msk.msrb.mxu0 %vm5387_vm15, %v4023_v57  ;;  %4031 = vmatpush.bf16.msk.msrb.mxu1 %vm5393_vm12, %v4030_v47 }
 0x4be   :  { %v965_v33 = vpop.permute.xlu0 %964 }
 0x4bf   :  { %4025 = vmatmul.msk.bf16.vlgmr.msrb.gmra.mxu0 %vm6689_vm3, %v4285_v58  ;;  %4032 = vmatmul.msk.bf16.vlgmr.msrb.gmra.mxu1 %vm6690_vm1, %v4285_v58 }
 0x53c   :  { %v934_v61 = vpop.f32.mrf.mxu0  ;;  %v948_v62 = vpop.f32.mrf.mxu1 }
 0x53d   :  { %v935_v63 = vadd.f32 %v934_v61, %v910_v60  ;;  %v949_v1 = vadd.f32 %v948_v62, %v910_v60 }
 0x53f   :  { %v953_v2 = vadd.f32 %v935_v63, %v5318_v45  ;;  %v954_v5 = vadd.f32 %v949_v1, %v5322_v50 }
 0x541   :  { %v967_v37 = vmul.f32 %v960_v7, %v953_v2  ;;  %v968_v10 = vmul.f32 %v960_v7, %v954_v5 }
 0x543   :  { %v5408_v14 = vadd.f32 %v974_v11, %v967_v37  ;;  %v5410_v15 = vadd.f32 %v974_v11, %v968_v10 }
 0x544   :  { %v936_v20 = vpop.f32.mrf.mxu0  ;;  %v950_v21 = vpop.f32.mrf.mxu1 }
 0x545   :  { %v985_v22 = vmul.f32 -1.702, %v5408_v14  ;;  %v986_v24 = vmul.f32 -1.702, %v5410_v15  ;;  %v937_v26 = vadd.f32 %v936_v20, %v915_v48  ;;  %v951_v27 = vadd.f32 %v950_v21, %v915_v48 }
 0x547   :  { %v989_v16 = vmul.f32 1.442695, %v985_v22  ;;  %v991_v45 = vmul.f32 1.442695, %v986_v24  ;;  %v955_v50 = vadd.f32 %v937_v26, %v5335_v3  ;;  %v956_v17 = vadd.f32 %v951_v27, %v5340_v8 }
 0x549   :  { %4669 = vpow2.f32 %v989_v16  ;;  %v969_v34 = vmul.f32 %v965_v33, %v955_v50  ;;  %v970_v38 = vmul.f32 %v965_v33, %v956_v17 }
 0x54a   :  { %4671 = vpow2.f32 %v991_v45 }
 0x54b   :  { %v5416_v43 = vadd.f32 %v979_v40, %v969_v34  ;;  %v5418_v29 = vadd.f32 %v979_v40, %v970_v38 }
 0x54d   :  { %v987_v30 = vmul.f32 -1.702, %v5416_v43  ;;  %v988_v23 = vmul.f32 -1.702, %v5418_v29 }
 0x54f   :  { %v4670_v44 = vpop.eup %4669  ;;  %v993_v25 = vmul.f32 1.442695, %v987_v30  ;;  %v995_v49 = vmul.f32 1.442695, %v988_v23 }
 0x550   :  { %v4672_v36 = vpop.eup %4671  ;;  %v997_v3 = vadd.f32 1.0, %v4670_v44 }
 0x551   :  { %v998_v8 = vadd.f32 1.0, %v4672_v36  ;;  %4673 = vpow2.f32 %v993_v25 }
 0x552   :  { %4675 = vrcp.f32 %v997_v3  ;;  %v1010_v60 = vand.u32 2147483647, %v997_v3  ;;  %v1012_v61 = vand.u32 2147483648, %v997_v3  ;;  %vm1006_vm8 = vweird.f32 %v997_v3 }
 0x553   :  { %4677 = vrcp.f32 %v998_v8  ;;  %v1027_v1 = vand.u32 2147483648, %v998_v8  ;;  %v1025_v5 = vand.u32 2147483647, %v998_v8  ;;  %vm1021_vm3 = vweird.f32 %v998_v8 }
 0x554   :  { %4679 = vpow2.f32 %v995_v49  ;;  %v1013_v10 = vor.u32 1.1754944e-38, %v1012_v61  ;;  %vm1011_vm1 = vcmp.eq.f32.partialorder %v1010_v60, 8.507059e+37  ;;  %v839_v60 = vld [vmem:[%s6621_s2 + $0xf8] sm:$0xff] }
 0x555   :  { %v1028_v21 = vor.u32 1.1754944e-38, %v1027_v1  ;;  %vm1026_vm15 = vcmp.eq.f32.partialorder %v1025_v5, 8.507059e+37 }
 0x557   :  { %v4674_v52 = vpop.eup %4673 }
 0x558   :  { %v4676_v53 = vpop.eup %4675  ;;  %v999_v54 = vadd.f32 1.0, %v4674_v52 }
 0x559   :  { %v4678_v31 = vpop.eup %4677  ;;  %v1002_v55 = vmul.f32 %v4676_v53, %v997_v3  ;;  %vm1007_vm0 = vweird.f32 %v4676_v53 }
 0x55a   :  { %v4680_v57 = vpop.eup %4679  ;;  %v1017_v47 = vmul.f32 %v4678_v31, %v998_v8  ;;  %4681 = vrcp.f32 %v999_v54  ;;  %vm1022_vm6 = vweird.f32 %v4678_v31  ;;  %vm1008_vm14 = vmor %vm1006_vm8, %vm1007_vm0  ;;  %v1042_v33 = vand.u32 2147483648, %v999_v54 }
 0x55b   :  { %v1003_v58 = vsub.f32 1.0, %v1002_v55  ;;  %v1000_v48 = vadd.f32 1.0, %v4680_v57  ;;  %vm1023_vm12 = vmor %vm1021_vm3, %vm1022_vm6  ;;  %v1040_v40 = vand.u32 2147483647, %v999_v54  ;;  %v835_v55 = vld [vmem:[%s6621_s2 + $0xd8] sm:$0xff] }
 0x55c   :  { %v1018_v62 = vsub.f32 1.0, %v1017_v47 }
 0x55d   :  { %v1004_v63 = vmul.f32 %v4676_v53, %v1003_v58  ;;  %4683 = vrcp.f32 %v1000_v48  ;;  %v1057_v25 = vand.u32 2147483648, %v1000_v48  ;;  %v1055_v3 = vand.u32 2147483647, %v1000_v48  ;;  %v834_v58 = vld [vmem:[%s6621_s2 + $0xd0] sm:$0xff] }
 0x55e   :  { %v1019_v2 = vmul.f32 %v4678_v31, %v1018_v62  ;;  %vm1041_vm8 = vcmp.eq.f32.partialorder %v1040_v40, 8.507059e+37 }
 0x55f   :  { %v1005_v7 = vadd.f32 %v4676_v53, %v1004_v63  ;;  %v1058_v52 = vor.u32 1.1754944e-38, %v1057_v25 }
 0x560   :  { %v4682_v37 = vpop.eup %4681  ;;  %v1020_v11 = vadd.f32 %v4678_v31, %v1019_v2 }
 0x561   :  { %v1009_v20 = vsel %vm1008_vm14, %v4676_v53, %v1005_v7  ;;  %v1032_v22 = vmul.f32 %v4682_v37, %v999_v54  ;;  %vm1037_vm0 = vweird.f32 %v4682_v37  ;;  %vm1051_vm14 = vweird.f32 %v1000_v48 }
 0x562   :  { %v1014_v24 = vsel %vm1011_vm1, %v1013_v10, %v1009_v20  ;;  %v1024_v26 = vsel %vm1023_vm12, %v4678_v31, %v1020_v11  ;;  %vm1036_vm12 = vweird.f32 %v999_v54  ;;  %vm1056_vm1 = vcmp.eq.f32.partialorder %v1055_v3, 8.507059e+37 }
 0x563   :  { %v4684_v27 = vpop.eup %4683  ;;  %v5423_v16 = vmul.f32 %v1014_v24, %v5408_v14  ;;  %v1029_v45 = vsel %vm1026_vm15, %v1028_v21, %v1024_v26  ;;  %v1033_v50 = vsub.f32 1.0, %v1032_v22  ;;  %vm1038_vm6 = vmor %vm1036_vm12, %vm1037_vm0  ;;  %v1043_v14 = vor.u32 1.1754944e-38, %v1042_v33 }
 0x564   :  { %v5426_v17 = vmul.f32 %v1029_v45, %v5410_v15  ;;  %v1047_v34 = vmul.f32 %v4684_v27, %v1000_v48  ;;  %vm1052_vm15 = vweird.f32 %v4684_v27  ;;  %v837_v48 = vld [vmem:[%s6621_s2 + $0xe8] sm:$0xff]  ;;  %vm6691_vm0 = vcmask 1039360  }
 0x565   :  { %v1034_v38 = vmul.f32 %v4682_v37, %v1033_v50  ;;  %vm1053_vm3 = vmor %vm1051_vm14, %vm1052_vm15 }
 0x566   :  { %v1048_v30 = vsub.f32 1.0, %v1047_v34  ;;  %v4411_v23 = vpack.i.bf16 %v5426_v17, %v5423_v16  ;;  %vm6692_vm12 = vmmov %vm6691_vm0 }
 0x567   :  { %v1035_v44 = vadd.f32 %v4682_v37, %v1034_v38  ;;  %vm6694_vm15 = vmmov %vm6691_vm0 }
 0x568   :  { %v1049_v36 = vmul.f32 %v4684_v27, %v1048_v30  ;;  %4412 = vrot.lane.b32.xlu2 %v4411_v23, %s4956_s23  ;;  %4402 = vrot.lane.b32.xlu0 %v4411_v23, %s4957_s24 }
 0x569   :  { %v1039_v15 = vsel %vm1038_vm6, %v4682_v37, %v1035_v44  ;;  %vm6693_vm6 = vmmov %vm6691_vm0 }
 0x56a   :  { %v1044_v49 = vsel %vm1041_vm8, %v1043_v14, %v1039_v15  ;;  %v1050_v8 = vadd.f32 %v4684_v27, %v1049_v36  ;;  %vm6695_vm8 = vcmask 7168   ;;  %v4286_v14 = vld [vmem:[%s6622_s3 + $0x28] sm:$0xff] }
 0x56b   :  { %v5433_v53 = vmul.f32 %v1044_v49, %v5416_v43  ;;  %v838_v43 = vld [vmem:[%s6621_s2 + $0xf0] sm:$0xff]  ;;  %vm6696_vm14 = vmmov %vm6695_vm8 }
 0x56c   :  { %v1054_v54 = vsel %vm1053_vm3, %v4684_v27, %v1050_v8  ;;  %vm6697_vm3 = vmmov %vm6695_vm8 }
 0x56d   :  { %v1059_v31 = vsel %vm1056_vm1, %v1058_v52, %v1054_v54  ;;  %v1111_v33 = vpack.c.bf16 %v5433_v53, %v5423_v16  ;;  %vm6698_vm1 = vmmov %vm6697_vm3 }
 0x56e   :  { %v5439_v57 = vmul.f32 %v1059_v31, %v5418_v29  ;;  %v836_v29 = vld [vmem:[%s6621_s2 + $0xe0] sm:$0xff] }
 0x570   :  { %v4406_v47 = vpack.i.bf16 %v5439_v57, %v5433_v53  ;;  %1122 = vperm.xlu2 %4340, %v835_v55   ;;  %v1112_v34 = vpack.c.bf16 %v5439_v57, %v5426_v17 }
 0x572   :  { %4407 = vrot.lane.b32.xlu1 %v4406_v47, %s4957_s24  ;;  %4417 = vrot.lane.b32.xlu0 %v4406_v47, %s4956_s23 }
 0x578   :  { %1181 = vperm.xlu2 %4340, %v838_v43  }
 0x57a   :  { %1117 = vperm.xlu1 %4319, %v834_v58   ;;  %1167 = vperm.xlu0 %4318, %v836_v29  }
 0x582   :  { %1172 = vperm.xlu1 %4319, %v837_v48   ;;  %1186 = vperm.xlu0 %4318, %v839_v60  }
 0x5c2   :  { %v4413_v21 = vpop.permute.xlu2 %4412 }
 0x5c3   :  { %v4415_v45 = vunpack.i.h.bf16 %v4413_v21  ;;  %v4414_v50 = vunpack.i.l.bf16 %v4413_v21 }
 0x5c5   :  { %v1077_v30 = vsel %vm6697_vm3, %v4414_v50, %v4415_v45  ;;  %v1083_v23 = vsel %vm6698_vm1, 0.0, %v4414_v50 }
 0x5ca   :  { %v1123_v36 = vpop.permute.xlu2 %1122 }
 0x5d2   :  { %v1182_v58 = vpop.permute.xlu2 %1181 }
 0x5da   :  { %v4403_v61 = vpop.permute.xlu0 %4402 }
 0x5db   :  { %v4405_v62 = vunpack.i.h.bf16 %v4403_v61  ;;  %v4404_v63 = vunpack.i.l.bf16 %v4403_v61 }
 0x5dd   :  { %v1099_v37 = vsel %vm6691_vm0, %v4405_v62, 0.0  ;;  %v1093_v10 = vsel %vm6692_vm12, %v4404_v63, %v4405_v62  ;;  %vm6699_vm0 = vcmask 392192  }
 0x5de   :  { %vm6700_vm12 = vmmov %vm6699_vm0 }
 0x5e4   :  { %v4408_v1 = vpop.permute.xlu1 %4407  ;;  %v4418_v7 = vpop.permute.xlu0 %4417 }
 0x5e5   :  { %v4410_v2 = vunpack.i.h.bf16 %v4408_v1  ;;  %v4409_v5 = vunpack.i.l.bf16 %v4408_v1  ;;  %v4420_v26 = vunpack.i.h.bf16 %v4418_v7  ;;  %v4419_v27 = vunpack.i.l.bf16 %v4418_v7 }
 0x5e7   :  { %v1100_v11 = vsel %vm6693_vm6, %v4410_v2, 0.0  ;;  %v1094_v20 = vsel %vm6694_vm15, %v4409_v5, %v4410_v2  ;;  %v1078_v38 = vsel %vm6695_vm8, %v4419_v27, %v4420_v26  ;;  %v1084_v40 = vsel %vm6696_vm14, 0.0, %v4419_v27 }
 0x5e8   :  { %v4038_v22 = vpack.c.bf16 %v1094_v20, %v1093_v10  ;;  %v4045_v24 = vpack.c.bf16 %v1100_v11, %v1099_v37  ;;  %v4041_v44 = vpack.c.bf16 %v1084_v40, %v1083_v23  ;;  %v4048_v25 = vpack.c.bf16 %v1078_v38, %v1077_v30 }
 0x5ea   :  { %4039 = vmatpush.bf16.msk.msra.mxu0 %vm5260_vm7, %v4038_v22  ;;  %4046 = vmatpush.bf16.msk.msra.mxu1 %vm5268_vm11, %v4045_v24 }
 0x5ec   :  { %v1118_v3 = vpop.permute.xlu1 %1117  ;;  %v1168_v55 = vpop.permute.xlu0 %1167 }
 0x5ee   :  { %1139 = vmatpush.bf16.msra.mxu0 %v1111_v33  ;;  %1153 = vmatpush.bf16.msra.mxu1 %v1112_v34 }
 0x5f2   :  { %4042 = vmatpush.bf16.msk.msra.mxu0 %vm5280_vm13, %v4041_v44  ;;  %4049 = vmatpush.bf16.msk.msra.mxu1 %vm5286_vm2, %v4048_v25 }
 0x5f4   :  { %v1173_v37 = vpop.permute.xlu1 %1172  ;;  %v1187_v20 = vpop.permute.xlu0 %1186 }
 0x5f5   :  { %4043 = vmatmul.msk.bf16.vlgmr.msra.gmra.mxu0 %vm6699_vm0, %v4286_v14  ;;  %4050 = vmatmul.msk.bf16.vlgmr.msra.gmra.mxu1 %vm6700_vm12, %v4286_v14 }
 0x672   :  { %v1142_v15 = vpop.f32.mrf.mxu0  ;;  %v1156_v49 = vpop.f32.mrf.mxu1 }
 0x673   :  { %v1143_v8 = vadd.f32 %v1142_v15, %v1118_v3  ;;  %v1157_v52 = vadd.f32 %v1156_v49, %v1118_v3 }
 0x675   :  { %v1161_v54 = vadd.f32 %v1143_v8, %v5423_v16  ;;  %v1162_v31 = vadd.f32 %v1157_v52, %v5426_v17 }
 0x677   :  { %v1175_v47 = vmul.f32 %v1168_v55, %v1161_v54  ;;  %v1176_v43 = vmul.f32 %v1168_v55, %v1162_v31 }
 0x679   :  { %v5487_v29 = vadd.f32 %v1182_v58, %v1175_v47  ;;  %v5489_v48 = vadd.f32 %v1182_v58, %v1176_v43 }
 0x67a   :  { %v1144_v60 = vpop.f32.mrf.mxu0  ;;  %v1158_v61 = vpop.f32.mrf.mxu1 }
 0x67b   :  { %v1193_v62 = vmul.f32 -1.702, %v5487_v29  ;;  %v1194_v63 = vmul.f32 -1.702, %v5489_v48  ;;  %v1145_v1 = vadd.f32 %v1144_v60, %v1123_v36  ;;  %v1159_v2 = vadd.f32 %v1158_v61, %v1123_v36 }
 0x67d   :  { %v1197_v5 = vmul.f32 1.442695, %v1193_v62  ;;  %v1199_v16 = vmul.f32 1.442695, %v1194_v63  ;;  %v1163_v17 = vadd.f32 %v1145_v1, %v5433_v53  ;;  %v1164_v7 = vadd.f32 %v1159_v2, %v5439_v57 }
 0x67f   :  { %4685 = vpow2.f32 %v1197_v5  ;;  %v1177_v10 = vmul.f32 %v1173_v37, %v1163_v17  ;;  %v1178_v11 = vmul.f32 %v1173_v37, %v1164_v7 }
 0x680   :  { %4687 = vpow2.f32 %v1199_v16 }
 0x681   :  { %v5495_v21 = vadd.f32 %v1187_v20, %v1177_v10  ;;  %v5497_v22 = vadd.f32 %v1187_v20, %v1178_v11 }
 0x683   :  { %v1195_v24 = vmul.f32 -1.702, %v5495_v21  ;;  %v1196_v26 = vmul.f32 -1.702, %v5497_v22 }
 0x685   :  { %v4686_v27 = vpop.eup %4685  ;;  %v1201_v45 = vmul.f32 1.442695, %v1195_v24  ;;  %v1203_v33 = vmul.f32 1.442695, %v1196_v26 }
 0x686   :  { %v4688_v50 = vpop.eup %4687  ;;  %v1205_v53 = vadd.f32 1.0, %v4686_v27 }
 0x687   :  { %v1206_v57 = vadd.f32 1.0, %v4688_v50  ;;  %4689 = vpow2.f32 %v1201_v45 }
 0x688   :  { %4691 = vrcp.f32 %v1205_v53  ;;  %v1218_v3 = vand.u32 2147483647, %v1205_v53  ;;  %v1220_v15 = vand.u32 2147483648, %v1205_v53  ;;  %vm1214_vm8 = vweird.f32 %v1205_v53 }
 0x689   :  { %4693 = vrcp.f32 %v1206_v57  ;;  %v1235_v52 = vand.u32 2147483648, %v1206_v57  ;;  %v1233_v31 = vand.u32 2147483647, %v1206_v57  ;;  %vm1229_vm3 = vweird.f32 %v1206_v57 }
 0x68a   :  { %4695 = vpow2.f32 %v1203_v33  ;;  %v1221_v43 = vor.u32 1.1754944e-38, %v1220_v15  ;;  %vm1219_vm1 = vcmp.eq.f32.partialorder %v1218_v3, 8.507059e+37 }
 0x68b   :  { %v1236_v61 = vor.u32 1.1754944e-38, %v1235_v52  ;;  %vm1234_vm12 = vcmp.eq.f32.partialorder %v1233_v31, 8.507059e+37 }
 0x68d   :  { %v4690_v34 = vpop.eup %4689 }
 0x68e   :  { %v4692_v38 = vpop.eup %4691  ;;  %v1207_v40 = vadd.f32 1.0, %v4690_v34 }
 0x68f   :  { %v4694_v30 = vpop.eup %4693  ;;  %v1210_v23 = vmul.f32 %v4692_v38, %v1205_v53  ;;  %vm1215_vm6 = vweird.f32 %v4692_v38 }
 0x690   :  { %v4696_v44 = vpop.eup %4695  ;;  %4697 = vrcp.f32 %v1207_v40  ;;  %v1225_v25 = vmul.f32 %v4694_v30, %v1206_v57  ;;  %vm1230_vm15 = vweird.f32 %v4694_v30  ;;  %vm1216_vm14 = vmor %vm1214_vm8, %vm1215_vm6  ;;  %v1250_v37 = vand.u32 2147483648, %v1207_v40 }
 0x691   :  { %v1208_v14 = vadd.f32 1.0, %v4696_v44  ;;  %v1211_v36 = vsub.f32 1.0, %v1210_v23  ;;  %vm1231_vm0 = vmor %vm1229_vm3, %vm1230_vm15  ;;  %v1248_v20 = vand.u32 2147483647, %v1207_v40  ;;  %vm1244_vm15 = vweird.f32 %v1207_v40  ;;  %v843_v23 = vld [vmem:[%s6621_s2 + $0x118] sm:$0xff] }
 0x692   :  { %v1226_v49 = vsub.f32 1.0, %v1225_v25 }
 0x693   :  { %4699 = vrcp.f32 %v1208_v14  ;;  %v1212_v8 = vmul.f32 %v4692_v38, %v1211_v36  ;;  %v1265_v45 = vand.u32 2147483648, %v1208_v14  ;;  %vm1249_vm3 = vcmp.eq.f32.partialorder %v1248_v20, 8.507059e+37 }
 0x694   :  { %v1227_v54 = vmul.f32 %v4694_v30, %v1226_v49 }
 0x695   :  { %v1213_v55 = vadd.f32 %v4692_v38, %v1212_v8  ;;  %v1266_v34 = vor.u32 1.1754944e-38, %v1265_v45 }
 0x696   :  { %v4698_v47 = vpop.eup %4697  ;;  %v1228_v58 = vadd.f32 %v4694_v30, %v1227_v54 }
 0x697   :  { %v1217_v60 = vsel %vm1216_vm14, %v4692_v38, %v1213_v55  ;;  %v1240_v62 = vmul.f32 %v4698_v47, %v1207_v40  ;;  %vm1245_vm6 = vweird.f32 %v4698_v47 }
 0x698   :  { %v1222_v63 = vsel %vm1219_vm1, %v1221_v43, %v1217_v60  ;;  %v1232_v1 = vsel %vm1231_vm0, %v4694_v30, %v1228_v58  ;;  %vm1246_vm8 = vmor %vm1244_vm15, %vm1245_vm6  ;;  %vm1259_vm1 = vweird.f32 %v1208_v14  ;;  %vm6701_vm6 = vcmask 1039360  }
 0x699   :  { %v4700_v2 = vpop.eup %4699  ;;  %v1237_v5 = vsel %vm1234_vm12, %v1236_v61, %v1232_v1  ;;  %v5502_v16 = vmul.f32 %v1222_v63, %v5487_v29  ;;  %v1241_v17 = vsub.f32 1.0, %v1240_v62  ;;  %v1251_v29 = vor.u32 1.1754944e-38, %v1250_v37  ;;  %vm6702_vm15 = vmmov %vm6701_vm6 }
 0x69a   :  { %v1270_v7 = vmul.f32 %v1237_v5, %v5489_v48  ;;  %v1255_v10 = vmul.f32 %v4700_v2, %v1208_v14  ;;  %vm1260_vm14 = vweird.f32 %v4700_v2  ;;  %v1263_v48 = vand.u32 2147483647, %v1208_v14  ;;  %v840_v14 = vld [vmem:[%s6621_s2 + $0x100] sm:$0xff] }
 0x69b   :  { %v1242_v11 = vmul.f32 %v4698_v47, %v1241_v17  ;;  %vm1261_vm0 = vmor %vm1259_vm1, %vm1260_vm14 }
 0x69c   :  { %v4431_v24 = vpack.i.bf16 %v1270_v7, %v5502_v16  ;;  %v1256_v26 = vsub.f32 1.0, %v1255_v10  ;;  %vm1264_vm12 = vcmp.eq.f32.partialorder %v1263_v48, 8.507059e+37  ;;  %vm6704_vm14 = vmmov %vm6701_vm6 }
 0x69d   :  { %v1243_v27 = vadd.f32 %v4698_v47, %v1242_v11 }
 0x69e   :  { %4432 = vrot.lane.b32.xlu0 %v4431_v24, %s4956_s23  ;;  %4422 = vrot.lane.b32.xlu1 %v4431_v24, %s4957_s24  ;;  %v1257_v50 = vmul.f32 %v4700_v2, %v1256_v26  ;;  %v4287_v24 = vld [vmem:[%s6622_s3 + $0x30] sm:$0xff]  ;;  %v4288_v26 = vld [vmem:[%s6622_s3 + $0x38] sm:$0xff] }
 0x69f   :  { %v1247_v53 = vsel %vm1246_vm8, %v4698_v47, %v1243_v27  ;;  %vm6703_vm8 = vmmov %vm6701_vm6 }
 0x6a0   :  { %v1252_v33 = vsel %vm1249_vm3, %v1251_v29, %v1247_v53  ;;  %v1258_v57 = vadd.f32 %v4700_v2, %v1257_v50  ;;  %vm6705_vm3 = vcmask 7168  }
 0x6a1   :  { %v1271_v38 = vmul.f32 %v1252_v33, %v5495_v21  ;;  %v842_v21 = vld [vmem:[%s6621_s2 + $0x110] sm:$0xff]  ;;  %vm6706_vm1 = vmmov %vm6705_vm3 }
 0x6a2   :  { %v1262_v40 = vsel %vm1261_vm0, %v4700_v2, %v1258_v57  ;;  %vm6707_vm0 = vmmov %vm6706_vm1 }
 0x6a3   :  { %v1267_v30 = vsel %vm1264_vm12, %v1266_v34, %v1262_v40  ;;  %v1319_v44 = vpack.c.bf16 %v1271_v38, %v5502_v16  ;;  %vm6708_vm12 = vmmov %vm6707_vm0 }
 0x6a4   :  { %v1272_v25 = vmul.f32 %v1267_v30, %v5497_v22  ;;  %v841_v22 = vld [vmem:[%s6621_s2 + $0x108] sm:$0xff] }
 0x6a6   :  { %v4426_v36 = vpack.i.bf16 %v1272_v25, %v1271_v38  ;;  %1340 = vperm.xlu0 %4318, %v843_v23   ;;  %v1320_v3 = vpack.c.bf16 %v1272_v25, %v1270_v7 }
 0x6a8   :  { %4427 = vrot.lane.b32.xlu2 %v4426_v36, %s4957_s24  ;;  %4437 = vrot.lane.b32.xlu1 %v4426_v36, %s4956_s23 }
 0x6b0   :  { %1335 = vperm.xlu2 %4340, %v842_v21   ;;  %1325 = vperm.xlu1 %4319, %v840_v14  }
 0x6b8   :  { %1330 = vperm.xlu2 %4340, %v841_v22  }
 0x702   :  { %v4428_v15 = vpop.permute.xlu2 %4427 }
 0x703   :  { %v4430_v49 = vunpack.i.h.bf16 %v4428_v15  ;;  %v4429_v8 = vunpack.i.l.bf16 %v4428_v15 }
 0x705   :  { %v1308_v55 = vsel %vm6701_vm6, %v4430_v49, 0.0  ;;  %v1302_v58 = vsel %vm6704_vm14, %v4429_v8, %v4430_v49  ;;  %vm6709_vm6 = vcmask 392192  }
 0x706   :  { %vm6712_vm14 = vmmov %vm6709_vm6 }
 0x70a   :  { %v1336_v48 = vpop.permute.xlu2 %1335 }
 0x710   :  { %v4423_v52 = vpop.permute.xlu1 %4422  ;;  %v4433_v62 = vpop.permute.xlu0 %4432 }
 0x711   :  { %v4425_v54 = vunpack.i.h.bf16 %v4423_v52  ;;  %v4424_v31 = vunpack.i.l.bf16 %v4423_v52  ;;  %v4435_v63 = vunpack.i.h.bf16 %v4433_v62  ;;  %v4434_v1 = vunpack.i.l.bf16 %v4433_v62 }
 0x713   :  { %v1307_v47 = vsel %vm6702_vm15, %v4425_v54, 0.0  ;;  %v1301_v43 = vsel %vm6703_vm8, %v4424_v31, %v4425_v54  ;;  %v1291_v17 = vsel %vm6705_vm3, 0.0, %v4434_v1  ;;  %v1285_v37 = vsel %vm6707_vm0, %v4434_v1, %v4435_v63  ;;  %vm6710_vm15 = vmmov %vm6709_vm6 }
 0x714   :  { %v4060_v60 = vpack.c.bf16 %v1302_v58, %v1301_v43  ;;  %v4068_v61 = vpack.c.bf16 %v1308_v55, %v1307_v47  ;;  %vm6711_vm8 = vmmov %vm6709_vm6 }
 0x716   :  { %4061 = vmatpush.bf16.msk.msrb.mxu2 %vm5260_vm7, %v4060_v60  ;;  %4069 = vmatpush.bf16.msk.msrb.mxu3 %vm5268_vm11, %v4068_v61 }
 0x71a   :  { %v4438_v2 = vpop.permute.xlu1 %4437  ;;  %1365 = vmatpush.bf16.msrb.mxu2 %v1319_v44  ;;  %1384 = vmatpush.bf16.msrb.mxu3 %v1320_v3  ;;  %v1341_v44 = vpop.permute.xlu0 %1340 }
 0x71b   :  { %v4440_v5 = vunpack.i.h.bf16 %v4438_v2  ;;  %v4439_v16 = vunpack.i.l.bf16 %v4438_v2 }
 0x71d   :  { %v1292_v7 = vsel %vm6706_vm1, 0.0, %v4439_v16  ;;  %v1286_v10 = vsel %vm6708_vm12, %v4439_v16, %v4440_v5 }
 0x71e   :  { %v4063_v11 = vpack.c.bf16 %v1292_v7, %v1291_v17  ;;  %v4071_v20 = vpack.c.bf16 %v1286_v10, %v1285_v37 }
 0x720   :  { %4064 = vmatpush.bf16.msk.msrb.mxu2 %vm5280_vm13, %v4063_v11  ;;  %4072 = vmatpush.bf16.msk.msrb.mxu3 %vm5286_vm2, %v4071_v20 }
 0x722   :  { %v1326_v11 = vpop.permute.xlu1 %1325 }
 0x723   :  { %4065 = vmatmul.msk.bf16.vlgmr.msrb.gmra.mxu2 %vm6709_vm6, %v4287_v24  ;;  %4073 = vmatmul.msk.bf16.vlgmr.msrb.gmra.mxu3 %vm6710_vm15, %v4287_v24 }
 0x733   :  { %4066 = vmatmul.msk.bf16.gmra.mxu2 %vm6711_vm8, %v4288_v26  ;;  %4074 = vmatmul.msk.bf16.gmra.mxu3 %vm6712_vm14, %v4288_v26 }
 0x7a6   :  { %v1368_v27 = vpop.f32.mrf.mxu2  ;;  %v5551_v45 = vpop.f32.mrf.mxu3 }
 0x7a7   :  { %v1369_v26 = vadd.f32 %v1368_v27, %v1326_v11 }
 0x7ae   :  { %v5553_v29 = vpop.f32.mrf.mxu2  ;;  %v5555_v50 = vpop.f32.mrf.mxu3 }
 0x7b6   :  { %v1373_v53 = vpop.f32.mrf.mxu2  ;;  %v1392_v33 = vpop.f32.mrf.mxu3 }
 0x7b7   :  { %v1374_v57 = vadd.f32 %v1373_v53, %v1336_v48  ;;  %v1393_v34 = vadd.f32 %v1392_v33, %v1336_v48 }
 0x7b9   :  { %v1397_v38 = vsub.f32 0.0, %v1374_v57  ;;  %v1398_v40 = vsub.f32 0.0, %v1393_v34 }
 0x7bb   :  { %v1401_v30 = vmul.f32 1.442695, %v1397_v38  ;;  %v1403_v23 = vmul.f32 1.442695, %v1398_v40  ;;  %v1388_v38 = vadd.f32 %v5551_v45, %v1326_v11 }
 0x7bd   :  { %4701 = vpow2.f32 %v1401_v30 }
 0x7be   :  { %4703 = vpow2.f32 %v1403_v23  ;;  %v1375_v25 = vpop.f32.mrf.mxu2  ;;  %v1394_v36 = vpop.f32.mrf.mxu3 }
 0x7bf   :  { %v1376_v3 = vadd.f32 %v1375_v25, %v1341_v44  ;;  %v1395_v21 = vadd.f32 %v1394_v36, %v1341_v44 }
 0x7c1   :  { %v1399_v14 = vsub.f32 0.0, %v1376_v3  ;;  %v1400_v22 = vsub.f32 0.0, %v1395_v21 }
 0x7c3   :  { %v4702_v15 = vpop.eup %4701  ;;  %v1405_v49 = vmul.f32 1.442695, %v1399_v14  ;;  %v1407_v54 = vmul.f32 1.442695, %v1400_v22 }
 0x7c4   :  { %v4704_v8 = vpop.eup %4703  ;;  %v1409_v52 = vadd.f32 1.0, %v4702_v15 }
 0x7c5   :  { %v1410_v31 = vadd.f32 1.0, %v4704_v8  ;;  %4705 = vpow2.f32 %v1405_v49 }
 0x7c6   :  { %4707 = vrcp.f32 %v1409_v52  ;;  %v1424_v2 = vand.u32 2147483648, %v1409_v52  ;;  %v1422_v16 = vand.u32 2147483647, %v1409_v52  ;;  %vm1418_vm0 = vweird.f32 %v1409_v52 }
 0x7c7   :  { %4709 = vrcp.f32 %v1410_v31  ;;  %v1439_v7 = vand.u32 2147483648, %v1410_v31  ;;  %v1437_v10 = vand.u32 2147483647, %v1410_v31  ;;  %vm1433_vm6 = vweird.f32 %v1410_v31 }
 0x7c8   :  { %4711 = vpow2.f32 %v1407_v54  ;;  %v1425_v48 = vor.u32 1.1754944e-38, %v1424_v2  ;;  %vm1423_vm8 = vcmp.eq.f32.partialorder %v1422_v16, 8.507059e+37  ;;  %v1486_v16 = vld [vmem:[%s6621_s2 + $0x128] sm:$0xff] }
 0x7c9   :  { %v1440_v33 = vor.u32 1.1754944e-38, %v1439_v7  ;;  %vm1438_vm14 = vcmp.eq.f32.partialorder %v1437_v10, 8.507059e+37  ;;  %v1487_v7 = vld [vmem:[%s6621_s2 + $0x130] sm:$0xff]  ;;  %v1490_v10 = vld [vmem:[%s6621_s2 + $0x148] sm:$0xff] }
 0x7cb   :  { %v4706_v55 = vpop.eup %4705 }
 0x7cc   :  { %v4708_v47 = vpop.eup %4707  ;;  %v5557_v43 = vadd.f32 1.0, %v4706_v55  ;;  %v1331_v55 = vpop.permute.xlu2 %1330 }
 0x7cd   :  { %v4710_v58 = vpop.eup %4709  ;;  %v1414_v60 = vmul.f32 %v4708_v47, %v1409_v52  ;;  %vm1419_vm3 = vweird.f32 %v4708_v47 }
 0x7ce   :  { %v4712_v61 = vpop.eup %4711  ;;  %v1429_v62 = vmul.f32 %v4710_v58, %v1410_v31  ;;  %4713 = vrcp.f32 %v5557_v43  ;;  %vm1434_vm1 = vweird.f32 %v4710_v58  ;;  %vm1420_vm12 = vmor %vm1418_vm0, %vm1419_vm3  ;;  %v1454_v27 = vand.u32 2147483648, %v5557_v43 }
 0x7cf   :  { %v1415_v63 = vsub.f32 1.0, %v1414_v60  ;;  %v5560_v1 = vadd.f32 1.0, %v4712_v61  ;;  %vm1435_vm15 = vmor %vm1433_vm6, %vm1434_vm1  ;;  %v1452_v22 = vand.u32 2147483647, %v5557_v43  ;;  %vm1448_vm1 = vweird.f32 %v5557_v43 }
 0x7d0   :  { %v1430_v5 = vsub.f32 1.0, %v1429_v62  ;;  %v1455_v52 = vor.u32 1.1754944e-38, %v1454_v27  ;;  %v1390_v62 = vadd.f32 %v5555_v50, %v1331_v55  ;;  %v1489_v50 = vld [vmem:[%s6621_s2 + $0x140] sm:$0xff] }
 0x7d1   :  { %v1416_v17 = vmul.f32 %v4708_v47, %v1415_v63  ;;  %4715 = vrcp.f32 %v5560_v1  ;;  %v1469_v49 = vand.u32 2147483648, %v5560_v1  ;;  %v1467_v31 = vand.u32 2147483647, %v5560_v1 }
 0x7d2   :  { %v1431_v37 = vmul.f32 %v4710_v58, %v1430_v5  ;;  %vm1453_vm6 = vcmp.eq.f32.partialorder %v1452_v22, 8.507059e+37 }
 0x7d3   :  { %v1417_v20 = vadd.f32 %v4708_v47, %v1416_v17  ;;  %v1470_v61 = vor.u32 1.1754944e-38, %v1469_v49 }
 0x7d4   :  { %v4714_v24 = vpop.eup %4713  ;;  %v1432_v53 = vadd.f32 %v4710_v58, %v1431_v37  ;;  %v1488_v37 = vld [vmem:[%s6621_s2 + $0x138] sm:$0xff] }
 0x7d5   :  { %v1444_v57 = vmul.f32 %v4714_v24, %v5557_v43  ;;  %v1421_v34 = vsel %vm1420_vm12, %v4708_v47, %v1417_v20  ;;  %vm1449_vm3 = vweird.f32 %v4714_v24  ;;  %v1371_v43 = vadd.f32 %v5553_v29, %v1331_v55 }
 0x7d6   :  { %v1426_v40 = vsel %vm1423_vm8, %v1425_v48, %v1421_v34  ;;  %v1436_v30 = vsel %vm1435_vm15, %v4710_v58, %v1432_v53  ;;  %vm1450_vm0 = vmor %vm1448_vm1, %vm1449_vm3  ;;  %vm1463_vm15 = vweird.f32 %v5560_v1  ;;  %vm1503_vm3 = vcmp.lt.s32.totalorder %v5059_v32, 126 }
 0x7d7   :  { %v4716_v23 = vpop.eup %4715  ;;  %v1445_v44 = vsub.f32 1.0, %v1444_v57  ;;  %v1441_v25 = vsel %vm1438_vm14, %v1440_v33, %v1436_v30  ;;  %v5565_v36 = vmul.f32 %v1426_v40, %v1369_v26  ;;  %vm1468_vm14 = vcmp.eq.f32.partialorder %v1467_v31, 8.507059e+37 }
 0x7d8   :  { %v1459_v3 = vmul.f32 %v4716_v23, %v5560_v1  ;;  %v5569_v21 = vmul.f32 %v1441_v25, %v1388_v38  ;;  %vm1464_vm12 = vweird.f32 %v4716_v23  ;;  %v1485_v1 = vld [vmem:[%s6621_s2 + $0x120] sm:$0xff]  ;;  %vm6643_vm1 = vcmask 1031168  }
 0x7d9   :  { %v1446_v14 = vmul.f32 %v4714_v24, %v1445_v44  ;;  %vm1465_vm8 = vmor %vm1463_vm15, %vm1464_vm12  ;;  %v6713_v57 = vmov 0  ;;  %vm1501_vm15 = vcmp.ge.s32.totalorder %v5059_v32, 2  ;;  %v6719_v55 = vmov 0 }
 0x7da   :  { %v1460_v15 = vsub.f32 1.0, %v1459_v3  ;;  %v4451_v45 = vpack.i.bf16 %v5569_v21, %v5565_v36  ;;  %vm5610_vm12 = vmpackc.low %vm1503_vm3, %vm1503_vm3 }
 0x7db   :  { %v1447_v8 = vadd.f32 %v4714_v24, %v1446_v14  ;;  %v6714_v57 = vsel %vm5610_vm12, 4294967295, %v6713_v57  ;;  %vm5634_vm3 = vmpackc.low %vm1501_vm15, %vm1501_vm15  ;;  %vm6721_vm15 = vcmask 392192  }
 0x7dc   :  { %v1461_v54 = vmul.f32 %v4716_v23, %v1460_v15  ;;  %4452 = vrot.lane.b32.xlu2 %v4451_v45, %s4960_s21  ;;  %4442 = vrot.lane.b32.xlu0 %v4451_v45, %s4961_s22 }
 0x7dd   :  { %v1451_v47 = vsel %vm1450_vm0, %v4714_v24, %v1447_v8  ;;  %vm1504_vm0 = vcmp.lt.s32.totalorder %v5062_v35, 126 }
 0x7de   :  { %v1456_v58 = vsel %vm1453_vm6, %v1455_v52, %v1451_v47  ;;  %v1462_v60 = vadd.f32 %v4716_v23, %v1461_v54  ;;  %vm5618_vm6 = vmpackc.low %vm1504_vm0, %vm1504_vm0  ;;  %v6717_v54 = vmov 0 }
 0x7df   :  { %v5582_v2 = vmul.f32 %v1456_v58, %v1371_v43  ;;  %v6718_v54 = vsel %vm5634_vm3, 4294967295, %v6717_v54  ;;  %v4289_v43 = vld [vmem:[%s6622_s3 + $0x40] sm:$0xff] }
 0x7e0   :  { %v1466_v63 = vsel %vm1465_vm8, %v4716_v23, %v1462_v60  ;;  %v6715_v23 = vmov 0  ;;  %vm6644_vm8 = vcmask 15360  }
 0x7e1   :  { %v1471_v5 = vsel %vm1468_vm14, %v1470_v61, %v1466_v63  ;;  %v6716_v23 = vsel %vm5618_vm6, 4294967295, %v6715_v23  ;;  %v1561_v45 = vpack.c.bf16 %v5582_v2, %v5565_v36  ;;  %vm1502_vm14 = vcmp.ge.s32.totalorder %v5062_v35, 2 }
 0x7e2   :  { %v5587_v17 = vmul.f32 %v1471_v5, %v1390_v62  ;;  %vm5640_vm0 = vmpackc.low %vm1502_vm14, %vm1502_vm14 }
 0x7e3   :  { %v6720_v55 = vsel %vm5640_vm0, 4294967295, %v6719_v55 }
 0x7e4   :  { %v4446_v29 = vpack.i.bf16 %v5587_v17, %v5582_v2  ;;  %1572 = vperm.xlu2 %4340, %v1486_v16   ;;  %v1562_v49 = vpack.c.bf16 %v5587_v17, %v5569_v21 }
 0x7e6   :  { %4447 = vrot.lane.b32.xlu1 %v4446_v29, %s4961_s22  ;;  %4457 = vrot.lane.b32.xlu0 %v4446_v29, %s4960_s21 }
 0x7ec   :  { %1631 = vperm.xlu2 %4340, %v1489_v50  }
 0x7ee   :  { %1567 = vperm.xlu1 %4319, %v1485_v1   ;;  %1617 = vperm.xlu0 %4318, %v1487_v7  }
 0x7f6   :  { %1622 = vperm.xlu1 %4319, %v1488_v37   ;;  %1636 = vperm.xlu0 %4318, %v1490_v10  }
 0x836   :  { %v4453_v44 = vpop.permute.xlu2 %4452 }
 0x837   :  { %v4455_v22 = vunpack.i.h.bf16 %v4453_v44  ;;  %v4454_v15 = vunpack.i.l.bf16 %v4453_v44 }
 0x839   :  { %v1518_v32 = vsel %vm6644_vm8, %v4454_v15, %v4455_v22  ;;  %v1524_v31 = vsel %vm6644_vm8, 0.0, %v4454_v15 }
 0x83e   :  { %v1573_v58 = vpop.permute.xlu2 %1572 }
 0x846   :  { %v1632_v37 = vpop.permute.xlu2 %1631 }
 0x84e   :  { %v4443_v11 = vpop.permute.xlu0 %4442 }
 0x84f   :  { %v4445_v20 = vunpack.i.h.bf16 %v4443_v11  ;;  %v4444_v24 = vunpack.i.l.bf16 %v4443_v11 }
 0x851   :  { %v1541_v34 = vsel %vm6643_vm1, %v4445_v20, 0.0  ;;  %v1535_v38 = vsel %vm6643_vm1, %v4444_v24, %v4445_v20 }
 0x858   :  { %v4448_v26 = vpop.permute.xlu1 %4447  ;;  %v4458_v33 = vpop.permute.xlu0 %4457 }
 0x859   :  { %v4450_v48 = vunpack.i.h.bf16 %v4448_v26  ;;  %v4449_v53 = vunpack.i.l.bf16 %v4448_v26  ;;  %v4460_v3 = vunpack.i.h.bf16 %v4458_v33  ;;  %v4459_v14 = vunpack.i.l.bf16 %v4458_v33 }
 0x85b   :  { %v1542_v40 = vsel %vm6643_vm1, %v4450_v48, 0.0  ;;  %v1536_v30 = vsel %vm6643_vm1, %v4449_v53, %v4450_v48  ;;  %v1519_v8 = vsel %vm6644_vm8, %v4459_v14, %v4460_v3  ;;  %v1525_v52 = vsel %vm6644_vm8, 0.0, %v4459_v14  ;;  %vm6722_vm1 = vmmov %vm6721_vm15 }
 0x85c   :  { %v4080_v25 = vpack.c.bf16 %v1536_v30, %v1535_v38  ;;  %v4087_v27 = vpack.c.bf16 %v1542_v40, %v1541_v34  ;;  %v4083_v47 = vpack.c.bf16 %v1525_v52, %v1524_v31  ;;  %v4090_v35 = vpack.c.bf16 %v1519_v8, %v1518_v32 }
 0x85e   :  { %4081 = vmatpush.bf16.msk.msrb.mxu0 %vm5610_vm12, %v4080_v25  ;;  %4088 = vmatpush.bf16.msk.msrb.mxu1 %vm5618_vm6, %v4087_v27 }
 0x860   :  { %v1568_v60 = vpop.permute.xlu1 %1567  ;;  %v1618_v50 = vpop.permute.xlu0 %1617 }
 0x862   :  { %1589 = vmatpush.bf16.msrb.mxu0 %v1561_v45  ;;  %1603 = vmatpush.bf16.msrb.mxu1 %v1562_v49 }
 0x866   :  { %4084 = vmatpush.bf16.msk.msrb.mxu0 %vm5634_vm3, %v4083_v47  ;;  %4091 = vmatpush.bf16.msk.msrb.mxu1 %vm5640_vm0, %v4090_v35 }
 0x868   :  { %v1623_v40 = vpop.permute.xlu1 %1622  ;;  %v1637_v25 = vpop.permute.xlu0 %1636 }
 0x869   :  { %4085 = vmatmul.msk.bf16.vlgmr.msrb.gmra.mxu0 %vm6721_vm15, %v4289_v43  ;;  %4092 = vmatmul.msk.bf16.vlgmr.msrb.gmra.mxu1 %vm6722_vm1, %v4289_v43 }
 0x8e6   :  { %v1592_v61 = vpop.f32.mrf.mxu0  ;;  %v1606_v62 = vpop.f32.mrf.mxu1 }
 0x8e7   :  { %v1593_v63 = vadd.f32 %v1592_v61, %v1568_v60  ;;  %v1607_v5 = vadd.f32 %v1606_v62, %v1568_v60 }
 0x8e9   :  { %v1611_v16 = vadd.f32 %v1593_v63, %v5565_v36  ;;  %v1612_v29 = vadd.f32 %v1607_v5, %v5569_v21 }
 0x8eb   :  { %v1625_v1 = vmul.f32 %v1618_v50, %v1611_v16  ;;  %v1626_v7 = vmul.f32 %v1618_v50, %v1612_v29 }
 0x8ed   :  { %v5655_v10 = vadd.f32 %v1632_v37, %v1625_v1  ;;  %v5657_v11 = vadd.f32 %v1632_v37, %v1626_v7 }
 0x8ee   :  { %v1594_v20 = vpop.f32.mrf.mxu0  ;;  %v1608_v24 = vpop.f32.mrf.mxu1 }
 0x8ef   :  { %v1643_v26 = vmul.f32 -1.702, %v5655_v10  ;;  %v1644_v48 = vmul.f32 -1.702, %v5657_v11  ;;  %v1595_v53 = vadd.f32 %v1594_v20, %v1573_v58  ;;  %v1609_v33 = vadd.f32 %v1608_v24, %v1573_v58 }
 0x8f1   :  { %v1647_v34 = vmul.f32 1.442695, %v1643_v26  ;;  %v1649_v36 = vmul.f32 1.442695, %v1644_v48  ;;  %v1613_v21 = vadd.f32 %v1595_v53, %v5582_v2  ;;  %v1614_v38 = vadd.f32 %v1609_v33, %v5587_v17 }
 0x8f3   :  { %4717 = vpow2.f32 %v1647_v34  ;;  %v1627_v30 = vmul.f32 %v1623_v40, %v1613_v21  ;;  %v1628_v44 = vmul.f32 %v1623_v40, %v1614_v38 }
 0x8f4   :  { %4719 = vpow2.f32 %v1649_v36 }
 0x8f5   :  { %v5663_v27 = vadd.f32 %v1637_v25, %v1627_v30  ;;  %v5665_v3 = vadd.f32 %v1637_v25, %v1628_v44 }
 0x8f7   :  { %v1645_v14 = vmul.f32 -1.702, %v5663_v27  ;;  %v1646_v22 = vmul.f32 -1.702, %v5665_v3 }
 0x8f9   :  { %v4718_v15 = vpop.eup %4717  ;;  %v1651_v45 = vmul.f32 1.442695, %v1645_v14  ;;  %v1653_v8 = vmul.f32 1.442695, %v1646_v22 }
 0x8fa   :  { %v4720_v49 = vpop.eup %4719  ;;  %v1655_v2 = vadd.f32 1.0, %v4718_v15 }
 0x8fb   :  { %v1656_v17 = vadd.f32 1.0, %v4720_v49  ;;  %4721 = vpow2.f32 %v1651_v45 }
 0x8fc   :  { %4723 = vrcp.f32 %v1655_v2  ;;  %v1668_v62 = vand.u32 2147483647, %v1655_v2  ;;  %v1670_v63 = vand.u32 2147483648, %v1655_v2  ;;  %vm1664_vm15 = vweird.f32 %v1655_v2 }
 0x8fd   :  { %4725 = vrcp.f32 %v1656_v17  ;;  %v1685_v29 = vand.u32 2147483648, %v1656_v17  ;;  %v1683_v1 = vand.u32 2147483647, %v1656_v17  ;;  %vm1679_vm0 = vweird.f32 %v1656_v17 }
 0x8fe   :  { %4727 = vpow2.f32 %v1653_v8  ;;  %v1671_v20 = vor.u32 1.1754944e-38, %v1670_v63  ;;  %vm1669_vm3 = vcmp.eq.f32.partialorder %v1668_v62, 8.507059e+37  ;;  %v1494_v63 = vld [vmem:[%s6621_s2 + $0x168] sm:$0xff] }
 0x8ff   :  { %v1686_v48 = vor.u32 1.1754944e-38, %v1685_v29  ;;  %vm1684_vm12 = vcmp.eq.f32.partialorder %v1683_v1, 8.507059e+37 }
 0x901   :  { %v4722_v52 = vpop.eup %4721 }
 0x902   :  { %v4724_v32 = vpop.eup %4723  ;;  %v1657_v31 = vadd.f32 1.0, %v4722_v52 }
 0x903   :  { %v4726_v47 = vpop.eup %4725  ;;  %v1660_v35 = vmul.f32 %v4724_v32, %v1655_v2  ;;  %vm1665_vm1 = vweird.f32 %v4724_v32 }
 0x904   :  { %v4728_v43 = vpop.eup %4727  ;;  %v1675_v58 = vmul.f32 %v4726_v47, %v1656_v17  ;;  %4729 = vrcp.f32 %v1657_v31  ;;  %vm1680_vm14 = vweird.f32 %v4726_v47  ;;  %vm1666_vm8 = vmor %vm1664_vm15, %vm1665_vm1  ;;  %v1700_v44 = vand.u32 2147483648, %v1657_v31 }
 0x905   :  { %v1661_v60 = vsub.f32 1.0, %v1660_v35  ;;  %v1658_v61 = vadd.f32 1.0, %v4728_v43  ;;  %vm1681_vm6 = vmor %vm1679_vm0, %vm1680_vm14  ;;  %v1698_v22 = vand.u32 2147483647, %v1657_v31 }
 0x906   :  { %v1676_v5 = vsub.f32 1.0, %v1675_v58  ;;  %v1492_v58 = vld [vmem:[%s6621_s2 + $0x158] sm:$0xff] }
 0x907   :  { %v1662_v16 = vmul.f32 %v4724_v32, %v1661_v60  ;;  %4731 = vrcp.f32 %v1658_v61  ;;  %v1715_v2 = vand.u32 2147483648, %v1658_v61  ;;  %v1713_v17 = vand.u32 2147483647, %v1658_v61 }
 0x908   :  { %v1677_v50 = vmul.f32 %v4726_v47, %v1676_v5  ;;  %vm1699_vm0 = vcmp.eq.f32.partialorder %v1698_v22, 8.507059e+37  ;;  %vm1709_vm1 = vweird.f32 %v1658_v61  ;;  %v1496_v5 = vld [vmem:[%s6621_s2 + $0x178] sm:$0xff] }
 0x909   :  { %v1663_v7 = vadd.f32 %v4724_v32, %v1662_v16  ;;  %vm1714_vm15 = vcmp.eq.f32.partialorder %v1713_v17, 8.507059e+37 }
 0x90a   :  { %v4730_v37 = vpop.eup %4729  ;;  %v1678_v24 = vadd.f32 %v4726_v47, %v1677_v50 }
 0x90b   :  { %v1667_v26 = vsel %vm1666_vm8, %v4724_v32, %v1663_v7  ;;  %v1690_v53 = vmul.f32 %v4730_v37, %v1657_v31  ;;  %vm1695_vm8 = vweird.f32 %v4730_v37 }
 0x90c   :  { %v1672_v33 = vsel %vm1669_vm3, %v1671_v20, %v1667_v26  ;;  %v1682_v34 = vsel %vm1681_vm6, %v4726_v47, %v1678_v24  ;;  %vm1694_vm6 = vweird.f32 %v1657_v31  ;;  %v1716_v47 = vor.u32 1.1754944e-38, %v1715_v2 }
 0x90d   :  { %v4732_v36 = vpop.eup %4731  ;;  %v5670_v21 = vmul.f32 %v1672_v33, %v5655_v10  ;;  %v1687_v38 = vsel %vm1684_vm12, %v1686_v48, %v1682_v34  ;;  %v1691_v40 = vsub.f32 1.0, %v1690_v53  ;;  %vm1696_vm3 = vmor %vm1694_vm6, %vm1695_vm8  ;;  %v1701_v10 = vor.u32 1.1754944e-38, %v1700_v44 }
 0x90e   :  { %v5673_v30 = vmul.f32 %v1687_v38, %v5657_v11  ;;  %v1705_v25 = vmul.f32 %v4732_v36, %v1658_v61  ;;  %vm1710_vm12 = vweird.f32 %v4732_v36  ;;  %v1491_v61 = vld [vmem:[%s6621_s2 + $0x150] sm:$0xff]  ;;  %vm6723_vm8 = vcmask 1014784  }
 0x90f   :  { %v1692_v14 = vmul.f32 %v4730_v37, %v1691_v40  ;;  %vm1711_vm14 = vmor %vm1709_vm1, %vm1710_vm12 }
 0x910   :  { %v1706_v15 = vsub.f32 1.0, %v1705_v25  ;;  %v4471_v45 = vpack.i.bf16 %v5673_v30, %v5670_v21  ;;  %vm6724_vm6 = vmmov %vm6723_vm8 }
 0x911   :  { %v1693_v49 = vadd.f32 %v4730_v37, %v1692_v14 }
 0x912   :  { %v1707_v8 = vmul.f32 %v4732_v36, %v1706_v15  ;;  %4472 = vrot.lane.b32.xlu0 %v4471_v45, %s4952_s1  ;;  %4462 = vrot.lane.b32.xlu1 %v4471_v45, %s4953_s16 }
 0x913   :  { %v1697_v11 = vsel %vm1696_vm3, %v4730_v37, %v1693_v49  ;;  %vm6725_vm3 = vmmov %vm6724_vm6 }
 0x914   :  { %v1702_v52 = vsel %vm1699_vm0, %v1701_v10, %v1697_v11  ;;  %v1708_v32 = vadd.f32 %v4732_v36, %v1707_v8  ;;  %vm6726_vm12 = vmmov %vm6725_vm3  ;;  %vm6727_vm0 = vcmask 31744   ;;  %v4290_v10 = vld [vmem:[%s6622_s3 + $0x48] sm:$0xff] }
 0x915   :  { %v5680_v35 = vmul.f32 %v1702_v52, %v5663_v27  ;;  %v1495_v27 = vld [vmem:[%s6621_s2 + $0x170] sm:$0xff]  ;;  %vm6728_vm1 = vmmov %vm6727_vm0 }
 0x916   :  { %v1712_v31 = vsel %vm1711_vm14, %v4732_v36, %v1708_v32  ;;  %vm6731_vm14 = vcmask 392192  }
 0x917   :  { %v1717_v43 = vsel %vm1714_vm15, %v1716_v47, %v1712_v31  ;;  %v1769_v36 = vpack.c.bf16 %v5680_v35, %v5670_v21  ;;  %vm6732_vm15 = vmmov %vm6731_vm14 }
 0x918   :  { %v5686_v60 = vmul.f32 %v1717_v43, %v5665_v3  ;;  %v1493_v3 = vld [vmem:[%s6621_s2 + $0x160] sm:$0xff] }
 0x91a   :  { %v4466_v62 = vpack.i.bf16 %v5686_v60, %v5680_v35  ;;  %1780 = vperm.xlu0 %4318, %v1492_v58   ;;  %v1770_v38 = vpack.c.bf16 %v5686_v60, %v5673_v30 }
 0x91c   :  { %4467 = vrot.lane.b32.xlu2 %v4466_v62, %s4953_s16  ;;  %4477 = vrot.lane.b32.xlu1 %v4466_v62, %s4952_s1 }
 0x922   :  { %1839 = vperm.xlu0 %4318, %v1495_v27  }
 0x924   :  { %1775 = vperm.xlu2 %4340, %v1491_v61   ;;  %1825 = vperm.xlu1 %4319, %v1493_v3  }
 0x92c   :  { %1830 = vperm.xlu2 %4340, %v1494_v63   ;;  %1844 = vperm.xlu1 %4319, %v1496_v5  }
 0x976   :  { %v4468_v16 = vpop.permute.xlu2 %4467 }
 0x977   :  { %v4470_v29 = vunpack.i.h.bf16 %v4468_v16  ;;  %v4469_v50 = vunpack.i.l.bf16 %v4468_v16 }
 0x979   :  { %v1758_v20 = vsel %vm6723_vm8, %v4470_v29, 0.0  ;;  %v1752_v24 = vsel %vm6724_vm6, %v4469_v50, %v4470_v29 }
 0x97e   :  { %v1776_v17 = vpop.permute.xlu2 %1775 }
 0x984   :  { %v4463_v1 = vpop.permute.xlu1 %4462  ;;  %v4473_v34 = vpop.permute.xlu0 %4472 }
 0x985   :  { %v4465_v7 = vunpack.i.h.bf16 %v4463_v1  ;;  %v4464_v37 = vunpack.i.l.bf16 %v4463_v1  ;;  %v4475_v40 = vunpack.i.h.bf16 %v4473_v34  ;;  %v4474_v44 = vunpack.i.l.bf16 %v4473_v34 }
 0x987   :  { %v1757_v26 = vsel %vm6725_vm3, %v4465_v7, 0.0  ;;  %v1751_v48 = vsel %vm6726_vm12, %v4464_v37, %v4465_v7  ;;  %v1735_v15 = vsel %vm6727_vm0, %v4474_v44, %v4475_v40  ;;  %v1741_v41 = vsel %vm6728_vm1, 0.0, %v4474_v44  ;;  %v1831_v37 = vpop.permute.xlu2 %1830 }
 0x988   :  { %v4105_v53 = vpack.c.bf16 %v1758_v20, %v1757_v26  ;;  %v4098_v33 = vpack.c.bf16 %v1752_v24, %v1751_v48 }
 0x98a   :  { %4099 = vmatpush.bf16.msk.msra.mxu0 %vm5066_vm4, %v4098_v33  ;;  %4106 = vmatpush.bf16.msk.msra.mxu1 %vm5074_vm5, %v4105_v53  ;;  %vm6729_vm4 = vmmov %vm6727_vm0 }
 0x98b   :  { %vm6730_vm5 = vmmov %vm6727_vm0 }
 0x98c   :  { %v1781_v8 = vpop.permute.xlu0 %1780 }
 0x98e   :  { %v4478_v25 = vpop.permute.xlu1 %4477  ;;  %1797 = vmatpush.bf16.msra.mxu0 %v1769_v36  ;;  %1811 = vmatpush.bf16.msra.mxu1 %v1770_v38 }
 0x98f   :  { %v4480_v14 = vunpack.i.h.bf16 %v4478_v25  ;;  %v4479_v22 = vunpack.i.l.bf16 %v4478_v25 }
 0x991   :  { %v1736_v46 = vsel %vm6729_vm4, %v4479_v22, %v4480_v14  ;;  %v1742_v45 = vsel %vm6730_vm5, 0.0, %v4479_v22 }
 0x992   :  { %v4101_v49 = vpack.c.bf16 %v1742_v45, %v1741_v41  ;;  %v4108_v2 = vpack.c.bf16 %v1736_v46, %v1735_v15 }
 0x994   :  { %4102 = vmatpush.bf16.msk.msra.mxu0 %vm5094_vm9, %v4101_v49  ;;  %4109 = vmatpush.bf16.msk.msra.mxu1 %vm5102_vm10, %v4108_v2  ;;  %v1840_v27 = vpop.permute.xlu0 %1839 }
 0x996   :  { %v1826_v58 = vpop.permute.xlu1 %1825 }
 0x997   :  { %4103 = vmatmul.msk.bf16.vlgmr.msra.gmra.mxu0 %vm6731_vm14, %v4290_v10  ;;  %4110 = vmatmul.msk.bf16.vlgmr.msra.gmra.mxu1 %vm6732_vm15, %v4290_v10 }
 0x99e   :  { %v1845_v26 = vpop.permute.xlu1 %1844 }
 0xa14   :  { %v1800_v11 = vpop.f32.mrf.mxu0  ;;  %v1814_v52 = vpop.f32.mrf.mxu1 }
 0xa15   :  { %v1801_v32 = vadd.f32 %v1800_v11, %v1776_v17  ;;  %v1815_v47 = vadd.f32 %v1814_v52, %v1776_v17 }
 0xa17   :  { %v1819_v31 = vadd.f32 %v1801_v32, %v5670_v21  ;;  %v1820_v43 = vadd.f32 %v1815_v47, %v5673_v30 }
 0xa19   :  { %v1833_v59 = vmul.f32 %v1826_v58, %v1819_v31  ;;  %v1834_v62 = vmul.f32 %v1826_v58, %v1820_v43 }
 0xa1b   :  { %v5734_v0 = vadd.f32 %v1840_v27, %v1833_v59  ;;  %v5736_v61 = vadd.f32 %v1840_v27, %v1834_v62 }
 0xa1c   :  { %v1802_v3 = vpop.f32.mrf.mxu0  ;;  %v1816_v63 = vpop.f32.mrf.mxu1 }
 0xa1d   :  { %v1851_v5 = vmul.f32 -1.702, %v5734_v0  ;;  %v1852_v16 = vmul.f32 -1.702, %v5736_v61  ;;  %v1803_v29 = vadd.f32 %v1802_v3, %v1781_v8  ;;  %v1817_v50 = vadd.f32 %v1816_v63, %v1781_v8 }
 0xa1f   :  { %v1855_v1 = vmul.f32 1.442695, %v1851_v5  ;;  %v1857_v21 = vmul.f32 1.442695, %v1852_v16  ;;  %v1821_v30 = vadd.f32 %v1803_v29, %v5680_v35  ;;  %v1822_v7 = vadd.f32 %v1817_v50, %v5686_v60 }
 0xa21   :  { %4733 = vpow2.f32 %v1855_v1  ;;  %v1835_v20 = vmul.f32 %v1831_v37, %v1821_v30  ;;  %v1836_v24 = vmul.f32 %v1831_v37, %v1822_v7 }
 0xa22   :  { %4735 = vpow2.f32 %v1857_v21 }
 0xa23   :  { %v5742_v48 = vadd.f32 %v1845_v26, %v1835_v20  ;;  %v5744_v53 = vadd.f32 %v1845_v26, %v1836_v24 }
 0xa25   :  { %v1853_v33 = vmul.f32 -1.702, %v5742_v48  ;;  %v1854_v34 = vmul.f32 -1.702, %v5744_v53 }
 0xa27   :  { %v4734_v36 = vpop.eup %4733  ;;  %v1859_v38 = vmul.f32 1.442695, %v1853_v33  ;;  %v1861_v44 = vmul.f32 1.442695, %v1854_v34 }
 0xa28   :  { %v4736_v40 = vpop.eup %4735  ;;  %v1863_v35 = vadd.f32 1.0, %v4734_v36 }
 0xa29   :  { %v1864_v60 = vadd.f32 1.0, %v4736_v40  ;;  %4737 = vpow2.f32 %v1859_v38 }
 0xa2a   :  { %4739 = vrcp.f32 %v1863_v35  ;;  %v1876_v10 = vand.u32 2147483647, %v1863_v35  ;;  %v1878_v8 = vand.u32 2147483648, %v1863_v35  ;;  %vm1872_vm8 = vweird.f32 %v1863_v35 }
 0xa2b   :  { %4741 = vrcp.f32 %v1864_v60  ;;  %v1893_v52 = vand.u32 2147483648, %v1864_v60  ;;  %v1891_v47 = vand.u32 2147483647, %v1864_v60  ;;  %vm1887_vm3 = vweird.f32 %v1864_v60 }
 0xa2c   :  { %4743 = vpow2.f32 %v1861_v44  ;;  %v1879_v58 = vor.u32 1.1754944e-38, %v1878_v8  ;;  %vm1877_vm12 = vcmp.eq.f32.partialorder %v1876_v10, 8.507059e+37 }
 0xa2d   :  { %v1894_v27 = vor.u32 1.1754944e-38, %v1893_v52  ;;  %vm1892_vm1 = vcmp.eq.f32.partialorder %v1891_v47, 8.507059e+37 }
 0xa2f   :  { %v4738_v25 = vpop.eup %4737 }
 0xa30   :  { %v4740_v14 = vpop.eup %4739  ;;  %v1865_v22 = vadd.f32 1.0, %v4738_v25 }
 0xa31   :  { %v4742_v15 = vpop.eup %4741  ;;  %v1868_v41 = vmul.f32 %v4740_v14, %v1863_v35  ;;  %vm1873_vm9 = vweird.f32 %v4740_v14 }
 0xa32   :  { %v4744_v46 = vpop.eup %4743  ;;  %4745 = vrcp.f32 %v1865_v22  ;;  %v1883_v45 = vmul.f32 %v4742_v15, %v1864_v60  ;;  %vm1888_vm10 = vweird.f32 %v4742_v15  ;;  %vm1874_vm6 = vmor %vm1872_vm8, %vm1873_vm9  ;;  %v1908_v30 = vand.u32 2147483648, %v1865_v22 }
 0xa33   :  { %v1866_v49 = vadd.f32 1.0, %v4744_v46  ;;  %v1869_v2 = vsub.f32 1.0, %v1868_v41  ;;  %vm1889_vm0 = vmor %vm1887_vm3, %vm1888_vm10  ;;  %v1906_v20 = vand.u32 2147483647, %v1865_v22  ;;  %vm1902_vm5 = vweird.f32 %v1865_v22 }
 0xa34   :  { %v1884_v17 = vsub.f32 1.0, %v1883_v45  ;;  %vm6733_vm3 = vcmask 1039360  }
 0xa35   :  { %4747 = vrcp.f32 %v1866_v49  ;;  %v1870_v11 = vmul.f32 %v4740_v14, %v1869_v2  ;;  %v1923_v34 = vand.u32 2147483648, %v1866_v49  ;;  %v1921_v36 = vand.u32 2147483647, %v1866_v49 }
 0xa36   :  { %v1885_v32 = vmul.f32 %v4742_v15, %v1884_v17  ;;  %vm1907_vm9 = vcmp.eq.f32.partialorder %v1906_v20, 8.507059e+37  ;;  %vm1917_vm10 = vweird.f32 %v1866_v49  ;;  %v4292_v20 = vld [vmem:[%s6622_s3 + $0x58] sm:$0xff] }
 0xa37   :  { %v1871_v31 = vadd.f32 %v4740_v14, %v1870_v11  ;;  %v1924_v44 = vor.u32 1.1754944e-38, %v1923_v34 }
 0xa38   :  { %v4746_v43 = vpop.eup %4745  ;;  %v1886_v59 = vadd.f32 %v4742_v15, %v1885_v32 }
 0xa39   :  { %v1875_v62 = vsel %vm1874_vm6, %v4740_v14, %v1871_v31  ;;  %v1898_v3 = vmul.f32 %v4746_v43, %v1865_v22  ;;  %vm1903_vm4 = vweird.f32 %v4746_v43  ;;  %vm1922_vm6 = vcmp.eq.f32.partialorder %v1921_v36, 8.507059e+37  ;;  %v1500_v22 = vld [vmem:[%s6621_s2 + $0x198] sm:$0xff] }
 0xa3a   :  { %v1880_v63 = vsel %vm1877_vm12, %v1879_v58, %v1875_v62  ;;  %v1890_v5 = vsel %vm1889_vm0, %v4742_v15, %v1886_v59  ;;  %vm1904_vm14 = vmor %vm1902_vm5, %vm1903_vm4  ;;  %vm6737_vm4 = vcmask 7168  }
 0xa3b   :  { %v4748_v16 = vpop.eup %4747  ;;  %v1895_v29 = vsel %vm1892_vm1, %v1894_v27, %v1890_v5  ;;  %v5749_v50 = vmul.f32 %v1880_v63, %v5734_v0  ;;  %v1899_v1 = vsub.f32 1.0, %v1898_v3  ;;  %v1909_v0 = vor.u32 1.1754944e-38, %v1908_v30  ;;  %vm6734_vm12 = vmmov %vm6733_vm3 }
 0xa3c   :  { %v5752_v21 = vmul.f32 %v1895_v29, %v5736_v61  ;;  %v1913_v7 = vmul.f32 %v4748_v16, %v1866_v49  ;;  %vm1918_vm15 = vweird.f32 %v4748_v16  ;;  %v1497_v49 = vld [vmem:[%s6621_s2 + $0x180] sm:$0xff]  ;;  %vm6735_vm0 = vmmov %vm6733_vm3 }
 0xa3d   :  { %v1900_v37 = vmul.f32 %v4746_v43, %v1899_v1  ;;  %vm1919_vm8 = vmor %vm1917_vm10, %vm1918_vm15 }
 0xa3e   :  { %v4491_v24 = vpack.i.bf16 %v5752_v21, %v5749_v50  ;;  %v1914_v26 = vsub.f32 1.0, %v1913_v7  ;;  %vm6736_vm1 = vmmov %vm6735_vm0 }
 0xa3f   :  { %v1901_v33 = vadd.f32 %v4746_v43, %v1900_v37  ;;  %vm6738_vm5 = vmmov %vm6737_vm4  ;;  %v4291_v37 = vld [vmem:[%s6622_s3 + $0x50] sm:$0xff] }
 0xa40   :  { %4492 = vrot.lane.b32.xlu1 %v4491_v24, %s4956_s23  ;;  %4482 = vrot.lane.b32.xlu2 %v4491_v24, %s4957_s24  ;;  %v1915_v61 = vmul.f32 %v4748_v16, %v1914_v26  ;;  %vm6740_vm15 = vmmov %vm6737_vm4 }
 0xa41   :  { %v1905_v38 = vsel %vm1904_vm14, %v4746_v43, %v1901_v33  ;;  %vm6739_vm14 = vmmov %vm6737_vm4 }
 0xa42   :  { %v1910_v40 = vsel %vm1907_vm9, %v1909_v0, %v1905_v38  ;;  %v1916_v35 = vadd.f32 %v4748_v16, %v1915_v61  ;;  %vm6741_vm9 = vcmask 392192  }
 0xa43   :  { %v1929_v60 = vmul.f32 %v1910_v40, %v5742_v48  ;;  %v1499_v48 = vld [vmem:[%s6621_s2 + $0x190] sm:$0xff]  ;;  %vm6742_vm10 = vmmov %vm6741_vm9 }
 0xa44   :  { %v1920_v25 = vsel %vm1919_vm8, %v4748_v16, %v1916_v35  ;;  %vm6743_vm8 = vmmov %vm6741_vm9 }
 0xa45   :  { %v1925_v14 = vsel %vm1922_vm6, %v1924_v44, %v1920_v25  ;;  %v1977_v15 = vpack.c.bf16 %v1929_v60, %v5749_v50  ;;  %vm6744_vm6 = vmmov %vm6743_vm8 }
 0xa46   :  { %v1930_v41 = vmul.f32 %v1925_v14, %v5744_v53  ;;  %v1498_v53 = vld [vmem:[%s6621_s2 + $0x188] sm:$0xff] }
 0xa48   :  { %v4486_v46 = vpack.i.bf16 %v1930_v41, %v1929_v60  ;;  %1998 = vperm.xlu1 %4319, %v1500_v22   ;;  %v1978_v45 = vpack.c.bf16 %v1930_v41, %v5752_v21 }
 0xa4a   :  { %4487 = vrot.lane.b32.xlu0 %v4486_v46, %s4957_s24  ;;  %4497 = vrot.lane.b32.xlu2 %v4486_v46, %s4956_s23 }
 0xa52   :  { %1993 = vperm.xlu0 %4318, %v1499_v48   ;;  %1983 = vperm.xlu2 %4340, %v1497_v49  }
 0xa5a   :  { %1988 = vperm.xlu0 %4318, %v1498_v53  }
 0xa9a   :  { %v4483_v2 = vpop.permute.xlu2 %4482 }
 0xa9b   :  { %v4485_v10 = vunpack.i.h.bf16 %v4483_v2  ;;  %v4484_v8 = vunpack.i.l.bf16 %v4483_v2 }
 0xa9d   :  { %v1965_v47 = vsel %vm6733_vm3, %v4485_v10, 0.0  ;;  %v1959_v31 = vsel %vm6734_vm12, %v4484_v8, %v4485_v10 }
 0xaa4   :  { %v4498_v59 = vpop.permute.xlu2 %4497 }
 0xaa5   :  { %v4500_v5 = vunpack.i.h.bf16 %v4498_v59  ;;  %v4499_v16 = vunpack.i.l.bf16 %v4498_v59 }
 0xaa7   :  { %v1944_v1 = vsel %vm6739_vm14, %v4499_v16, %v4500_v5  ;;  %v1950_v21 = vsel %vm6740_vm15, 0.0, %v4499_v16 }
 0xab2   :  { %v4493_v32 = vpop.permute.xlu1 %4492 }
 0xab3   :  { %v4495_v3 = vunpack.i.h.bf16 %v4493_v32  ;;  %v4494_v63 = vunpack.i.l.bf16 %v4493_v32 }
 0xab5   :  { %v1943_v29 = vsel %vm6737_vm4, %v4494_v63, %v4495_v3  ;;  %v1949_v50 = vsel %vm6738_vm5, 0.0, %v4494_v63 }
 0xab6   :  { %v4123_v30 = vpack.c.bf16 %v1950_v21, %v1949_v50  ;;  %v4131_v7 = vpack.c.bf16 %v1944_v1, %v1943_v29  ;;  %v1984_v1 = vpop.permute.xlu2 %1983 }
 0xaba   :  { %v1999_v14 = vpop.permute.xlu1 %1998 }
 0xabc   :  { %v4488_v17 = vpop.permute.xlu0 %4487 }
 0xabd   :  { %v4490_v11 = vunpack.i.h.bf16 %v4488_v17  ;;  %v4489_v52 = vunpack.i.l.bf16 %v4488_v17 }
 0xabf   :  { %v1966_v43 = vsel %vm6735_vm0, %v4490_v11, 0.0  ;;  %v1960_v58 = vsel %vm6736_vm1, %v4489_v52, %v4490_v11 }
 0xac0   :  { %v4120_v62 = vpack.c.bf16 %v1960_v58, %v1959_v31  ;;  %v4128_v27 = vpack.c.bf16 %v1966_v43, %v1965_v47 }
 0xac2   :  { %4121 = vmatpush.bf16.msk.msra.mxu2 %vm5260_vm7, %v4120_v62  ;;  %4129 = vmatpush.bf16.msk.msra.mxu3 %vm5268_vm11, %v4128_v27 }
 0xac4   :  { %v1994_v0 = vpop.permute.xlu0 %1993 }
 0xac6   :  { %2023 = vmatpush.bf16.msra.mxu2 %v1977_v15  ;;  %2042 = vmatpush.bf16.msra.mxu3 %v1978_v45 }
 0xaca   :  { %4124 = vmatpush.bf16.msk.msra.mxu2 %vm5280_vm13, %v4123_v30  ;;  %4132 = vmatpush.bf16.msk.msra.mxu3 %vm5286_vm2, %v4131_v7 }
 0xacd   :  { %4125 = vmatmul.msk.bf16.vlgmr.msra.gmra.mxu2 %vm6741_vm9, %v4291_v37  ;;  %4133 = vmatmul.msk.bf16.vlgmr.msra.gmra.mxu3 %vm6742_vm10, %v4291_v37 }
 0xadd   :  { %4126 = vmatmul.msk.bf16.gmra.mxu2 %vm6743_vm8, %v4292_v20  ;;  %4134 = vmatmul.msk.bf16.gmra.mxu3 %vm6744_vm6, %v4292_v20 }
 0xb50   :  { %v2026_v24 = vpop.f32.mrf.mxu2  ;;  %v5802_v26 = vpop.f32.mrf.mxu3 }
 0xb51   :  { %v2027_v7 = vadd.f32 %v2026_v24, %v1984_v1 }
 0xb58   :  { %v5804_v33 = vpop.f32.mrf.mxu2  ;;  %v5806_v34 = vpop.f32.mrf.mxu3 }
 0xb60   :  { %v2031_v61 = vpop.f32.mrf.mxu2  ;;  %v2050_v36 = vpop.f32.mrf.mxu3 }
 0xb61   :  { %v2032_v38 = vadd.f32 %v2031_v61, %v1994_v0  ;;  %v2051_v40 = vadd.f32 %v2050_v36, %v1994_v0 }
 0xb63   :  { %v2055_v35 = vsub.f32 0.0, %v2032_v38  ;;  %v2056_v44 = vsub.f32 0.0, %v2051_v40  ;;  %v2046_v38 = vadd.f32 %v5802_v26, %v1984_v1 }
 0xb65   :  { %v2059_v60 = vmul.f32 1.442695, %v2055_v35  ;;  %v2061_v25 = vmul.f32 1.442695, %v2056_v44 }
 0xb67   :  { %4749 = vpow2.f32 %v2059_v60 }
 0xb68   :  { %4751 = vpow2.f32 %v2061_v25  ;;  %v2033_v22 = vpop.f32.mrf.mxu2  ;;  %v2052_v15 = vpop.f32.mrf.mxu3 }
 0xb69   :  { %v2034_v41 = vadd.f32 %v2033_v22, %v1999_v14  ;;  %v2053_v46 = vadd.f32 %v2052_v15, %v1999_v14 }
 0xb6b   :  { %v2057_v45 = vsub.f32 0.0, %v2034_v41  ;;  %v2058_v48 = vsub.f32 0.0, %v2053_v46 }
 0xb6d   :  { %v4750_v49 = vpop.eup %4749  ;;  %v2063_v53 = vmul.f32 1.442695, %v2057_v45  ;;  %v2065_v8 = vmul.f32 1.442695, %v2058_v48 }
 0xb6e   :  { %v4752_v2 = vpop.eup %4751  ;;  %v2067_v10 = vadd.f32 1.0, %v4750_v49 }
 0xb6f   :  { %v2068_v17 = vadd.f32 1.0, %v4752_v2  ;;  %4753 = vpow2.f32 %v2063_v53 }
 0xb70   :  { %4755 = vrcp.f32 %v2067_v10  ;;  %v2082_v27 = vand.u32 2147483648, %v2067_v10  ;;  %v2080_v63 = vand.u32 2147483647, %v2067_v10  ;;  %vm2076_vm0 = vweird.f32 %v2067_v10 }
 0xb71   :  { %4757 = vrcp.f32 %v2068_v17  ;;  %v2097_v16 = vand.u32 2147483648, %v2068_v17  ;;  %v2095_v50 = vand.u32 2147483647, %v2068_v17  ;;  %vm2091_vm4 = vweird.f32 %v2068_v17 }
 0xb72   :  { %4759 = vpow2.f32 %v2065_v8  ;;  %v2083_v37 = vor.u32 1.1754944e-38, %v2082_v27  ;;  %vm2081_vm14 = vcmp.eq.f32.partialorder %v2080_v63, 8.507059e+37  ;;  %v1989_v8 = vpop.permute.xlu0 %1988  ;;  %v2144_v27 = vld [vmem:[%s6621_s2 + $0x1a8] sm:$0xff]  ;;  %v2145_v63 = vld [vmem:[%s6621_s2 + $0x1b0] sm:$0xff] }
 0xb73   :  { %v2098_v0 = vor.u32 1.1754944e-38, %v2097_v16  ;;  %vm2096_vm15 = vcmp.eq.f32.partialorder %v2095_v50, 8.507059e+37  ;;  %v2148_v16 = vld [vmem:[%s6621_s2 + $0x1c8] sm:$0xff] }
 0xb75   :  { %v4754_v11 = vpop.eup %4753 }
 0xb76   :  { %v4756_v52 = vpop.eup %4755  ;;  %v2069_v32 = vadd.f32 1.0, %v4754_v11  ;;  %v2029_v11 = vadd.f32 %v5804_v33, %v1989_v8 }
 0xb77   :  { %v4758_v47 = vpop.eup %4757  ;;  %v2072_v31 = vmul.f32 %v4756_v52, %v2067_v10  ;;  %vm2077_vm3 = vweird.f32 %v4756_v52 }
 0xb78   :  { %v4760_v43 = vpop.eup %4759  ;;  %v2087_v58 = vmul.f32 %v4758_v47, %v2068_v17  ;;  %4761 = vrcp.f32 %v2069_v32  ;;  %vm2092_vm12 = vweird.f32 %v4758_v47  ;;  %vm2078_vm1 = vmor %vm2076_vm0, %vm2077_vm3  ;;  %v2112_v24 = vand.u32 2147483648, %v2069_v32 }
 0xb79   :  { %v2073_v59 = vsub.f32 1.0, %v2072_v31  ;;  %v5808_v62 = vadd.f32 1.0, %v4760_v43  ;;  %vm2093_vm5 = vmor %vm2091_vm4, %vm2092_vm12  ;;  %v2110_v46 = vand.u32 2147483647, %v2069_v32  ;;  %vm2106_vm10 = vweird.f32 %v2069_v32 }
 0xb7a   :  { %v2088_v3 = vsub.f32 1.0, %v2087_v58  ;;  %v2113_v53 = vor.u32 1.1754944e-38, %v2112_v24  ;;  %v2048_v31 = vadd.f32 %v5806_v34, %v1989_v8  ;;  %v2147_v34 = vld [vmem:[%s6621_s2 + $0x1c0] sm:$0xff]  ;;  %vm6745_vm4 = vcmask 982016  }
 0xb7b   :  { %v2074_v5 = vmul.f32 %v4756_v52, %v2073_v59  ;;  %4763 = vrcp.f32 %v5808_v62  ;;  %v2127_v48 = vand.u32 2147483648, %v5808_v62  ;;  %v2125_v10 = vand.u32 2147483647, %v5808_v62 }
 0xb7c   :  { %v2089_v29 = vmul.f32 %v4758_v47, %v2088_v3  ;;  %vm2111_vm3 = vcmp.eq.f32.partialorder %v2110_v46, 8.507059e+37  ;;  %vm2121_vm12 = vweird.f32 %v5808_v62 }
 0xb7d   :  { %v2075_v21 = vadd.f32 %v4756_v52, %v2074_v5  ;;  %v2146_v5 = vld [vmem:[%s6621_s2 + $0x1b8] sm:$0xff] }
 0xb7e   :  { %v4762_v30 = vpop.eup %4761  ;;  %v2090_v20 = vadd.f32 %v4758_v47, %v2089_v29 }
 0xb7f   :  { %v2102_v61 = vmul.f32 %v4762_v30, %v2069_v32  ;;  %v2079_v36 = vsel %vm2078_vm1, %v4756_v52, %v2075_v21  ;;  %vm2107_vm9 = vweird.f32 %v4762_v30  ;;  %vm2126_vm1 = vcmp.eq.f32.partialorder %v2125_v10, 8.507059e+37 }
 0xb80   :  { %v2084_v40 = vsel %vm2081_vm14, %v2083_v37, %v2079_v36  ;;  %v2094_v35 = vsel %vm2093_vm5, %v4758_v47, %v2090_v20  ;;  %vm2108_vm8 = vmor %vm2106_vm10, %vm2107_vm9  ;;  %v2128_v47 = vor.u32 1.1754944e-38, %v2127_v48  ;;  %vm6749_vm9 = vnez %v6658_v51 }
 0xb81   :  { %v4764_v44 = vpop.eup %4763  ;;  %v2103_v60 = vsub.f32 1.0, %v2102_v61  ;;  %v2099_v25 = vsel %vm2096_vm15, %v2098_v0, %v2094_v35  ;;  %v5812_v14 = vmul.f32 %v2084_v40, %v2027_v7  ;;  %vm6746_vm5 = vmmov %vm6745_vm4  ;;  %vm6750_vm10 = vnez %v6660_v56 }
 0xb82   :  { %v2117_v22 = vmul.f32 %v4764_v44, %v5808_v62  ;;  %v5815_v15 = vmul.f32 %v2099_v25, %v2046_v38  ;;  %vm2122_vm6 = vweird.f32 %v4764_v44  ;;  %v2143_v62 = vld [vmem:[%s6621_s2 + $0x1a0] sm:$0xff]  ;;  %vm6747_vm14 = vmmov %vm6745_vm4 }
 0xb83   :  { %v2104_v41 = vmul.f32 %v4762_v30, %v2103_v60  ;;  %vm2123_vm0 = vmor %vm2121_vm12, %vm2122_vm6 }
 0xb84   :  { %v2118_v45 = vsub.f32 1.0, %v2117_v22  ;;  %v4511_v26 = vpack.i.bf16 %v5815_v15, %v5812_v14  ;;  %vm6748_vm15 = vmmov %vm6745_vm4 }
 0xb85   :  { %v2105_v49 = vadd.f32 %v4762_v30, %v2104_v41 }
 0xb86   :  { %v2119_v2 = vmul.f32 %v4764_v44, %v2118_v45  ;;  %4512 = vrot.lane.b32.xlu0 %v4511_v26, %s4954_s7  ;;  %4502 = vrot.lane.b32.xlu1 %v4511_v26, %s4955_s8 }
 0xb87   :  { %v2109_v17 = vsel %vm2108_vm8, %v4762_v30, %v2105_v49  ;;  %vm6751_vm8 = vcmask 64512   ;;  %v4293_v49 = vld [vmem:[%s6622_s3 + $0x60] sm:$0xff] }
 0xb88   :  { %v2114_v52 = vsel %vm2111_vm3, %v2113_v53, %v2109_v17  ;;  %v2120_v32 = vadd.f32 %v4764_v44, %v2119_v2  ;;  %vm6752_vm6 = vmmov %vm6751_vm8 }
 0xb89   :  { %v5826_v58 = vmul.f32 %v2114_v52, %v2029_v11  ;;  %vm6753_vm3 = vmmov %vm6752_vm6 }
 0xb8a   :  { %v2124_v43 = vsel %vm2123_vm0, %v4764_v44, %v2120_v32  ;;  %vm6754_vm12 = vmmov %vm6753_vm3  ;;  %vm6755_vm0 = vnez %v6662_v6 }
 0xb8b   :  { %v2129_v59 = vsel %vm2126_vm1, %v2128_v47, %v2124_v43  ;;  %v2205_v35 = vpack.c.bf16 %v5826_v58, %v5812_v14  ;;  %vm6756_vm1 = vnez %v6664_v9 }
 0xb8c   :  { %v5831_v3 = vmul.f32 %v2129_v59, %v2048_v31 }
 0xb8e   :  { %v4506_v33 = vpack.i.bf16 %v5831_v3, %v5826_v58  ;;  %2216 = vperm.xlu0 %4318, %v2144_v27   ;;  %v2206_v44 = vpack.c.bf16 %v5831_v3, %v5815_v15 }
 0xb90   :  { %4507 = vrot.lane.b32.xlu2 %v4506_v33, %s4955_s8  ;;  %4517 = vrot.lane.b32.xlu1 %v4506_v33, %s4954_s7 }
 0xb96   :  { %2275 = vperm.xlu0 %4318, %v2147_v34  }
 0xb98   :  { %2211 = vperm.xlu2 %4340, %v2143_v62   ;;  %2261 = vperm.xlu1 %4319, %v2145_v63  }
 0xba0   :  { %2266 = vperm.xlu2 %4340, %v2146_v5   ;;  %2280 = vperm.xlu1 %4319, %v2148_v16  }
 0xbea   :  { %v4508_v29 = vpop.permute.xlu2 %4507 }
 0xbeb   :  { %v4510_v50 = vunpack.i.h.bf16 %v4508_v29  ;;  %v4509_v1 = vunpack.i.l.bf16 %v4508_v29 }
 0xbed   :  { %v2194_v37 = vsel %vm6745_vm4, %v4510_v50, 0.0  ;;  %v2188_v20 = vsel %vm6746_vm5, %v4509_v1, %v4510_v50  ;;  %vm6757_vm4 = vcmask 392192  }
 0xbee   :  { %vm6758_vm5 = vmmov %vm6757_vm4 }
 0xbf2   :  { %v2212_v2 = vpop.permute.xlu2 %2211 }
 0xbf8   :  { %v4503_v21 = vpop.permute.xlu1 %4502  ;;  %v4513_v40 = vpop.permute.xlu0 %4512 }
 0xbf9   :  { %v4505_v30 = vunpack.i.h.bf16 %v4503_v21  ;;  %v4504_v7 = vunpack.i.l.bf16 %v4503_v21  ;;  %v4515_v60 = vunpack.i.h.bf16 %v4513_v40  ;;  %v4514_v25 = vunpack.i.l.bf16 %v4513_v40 }
 0xbfa   :  { %v2267_v50 = vpop.permute.xlu2 %2266 }
 0xbfb   :  { %v2193_v0 = vsel %vm6747_vm14, %v4505_v30, 0.0  ;;  %v2187_v61 = vsel %vm6748_vm15, %v4504_v7, %v4505_v30  ;;  %v2171_v46 = vsel %vm6751_vm8, %v4514_v25, %v4515_v60  ;;  %v2177_v51 = vsel %vm6752_vm6, 0.0, %v4514_v25 }
 0xbfc   :  { %v4147_v36 = vpack.c.bf16 %v2194_v37, %v2193_v0  ;;  %v4140_v38 = vpack.c.bf16 %v2188_v20, %v2187_v61 }
 0xbfe   :  { %4141 = vmatpush.bf16.msk.msrb.mxu0 %vm6749_vm9, %v4140_v38  ;;  %4148 = vmatpush.bf16.msk.msrb.mxu1 %vm6750_vm10, %v4147_v36 }
 0xc00   :  { %v2217_v53 = vpop.permute.xlu0 %2216 }
 0xc02   :  { %v4518_v24 = vpop.permute.xlu1 %4517  ;;  %2233 = vmatpush.bf16.msrb.mxu0 %v2205_v35  ;;  %2247 = vmatpush.bf16.msrb.mxu1 %v2206_v44 }
 0xc03   :  { %v4520_v22 = vunpack.i.h.bf16 %v4518_v24  ;;  %v4519_v41 = vunpack.i.l.bf16 %v4518_v24 }
 0xc05   :  { %v2172_v56 = vsel %vm6753_vm3, %v4519_v41, %v4520_v22  ;;  %v2178_v45 = vsel %vm6754_vm12, 0.0, %v4519_v41 }
 0xc06   :  { %v4143_v26 = vpack.c.bf16 %v2178_v45, %v2177_v51  ;;  %v4150_v48 = vpack.c.bf16 %v2172_v56, %v2171_v46 }
 0xc08   :  { %4144 = vmatpush.bf16.msk.msrb.mxu0 %vm6755_vm0, %v4143_v26  ;;  %4151 = vmatpush.bf16.msk.msrb.mxu1 %vm6756_vm1, %v4150_v48  ;;  %v2276_v43 = vpop.permute.xlu0 %2275 }
 0xc0a   :  { %v2262_v47 = vpop.permute.xlu1 %2261 }
 0xc0b   :  { %4145 = vmatmul.msk.bf16.vlgmr.msrb.gmra.mxu0 %vm6757_vm4, %v4293_v49  ;;  %4152 = vmatmul.msk.bf16.vlgmr.msrb.gmra.mxu1 %vm6758_vm5, %v4293_v49 }
 0xc12   :  { %v2281_v30 = vpop.permute.xlu1 %2280 }
 0xc88   :  { %v2236_v10 = vpop.f32.mrf.mxu0  ;;  %v2250_v8 = vpop.f32.mrf.mxu1 }
 0xc89   :  { %v2237_v17 = vadd.f32 %v2236_v10, %v2212_v2  ;;  %v2251_v11 = vadd.f32 %v2250_v8, %v2212_v2 }
 0xc8b   :  { %v2255_v52 = vadd.f32 %v2237_v17, %v5812_v14  ;;  %v2256_v32 = vadd.f32 %v2251_v11, %v5815_v15 }
 0xc8d   :  { %v2269_v6 = vmul.f32 %v2262_v47, %v2255_v52  ;;  %v2270_v31 = vmul.f32 %v2262_v47, %v2256_v32 }
 0xc8f   :  { %v5879_v9 = vadd.f32 %v2276_v43, %v2269_v6  ;;  %v5881_v59 = vadd.f32 %v2276_v43, %v2270_v31 }
 0xc90   :  { %v2238_v27 = vpop.f32.mrf.mxu0  ;;  %v2252_v33 = vpop.f32.mrf.mxu1 }
 0xc91   :  { %v2287_v34 = vmul.f32 -1.702, %v5879_v9  ;;  %v2288_v62 = vmul.f32 -1.702, %v5881_v59  ;;  %v2239_v63 = vadd.f32 %v2238_v27, %v2217_v53  ;;  %v2253_v5 = vadd.f32 %v2252_v33, %v2217_v53 }
 0xc93   :  { %v2291_v16 = vmul.f32 1.442695, %v2287_v34  ;;  %v2293_v14 = vmul.f32 1.442695, %v2288_v62  ;;  %v2257_v15 = vadd.f32 %v2239_v63, %v5826_v58  ;;  %v2258_v29 = vadd.f32 %v2253_v5, %v5831_v3 }
 0xc95   :  { %4765 = vpow2.f32 %v2291_v16  ;;  %v2271_v1 = vmul.f32 %v2267_v50, %v2257_v15  ;;  %v2272_v21 = vmul.f32 %v2267_v50, %v2258_v29 }
 0xc96   :  { %4767 = vpow2.f32 %v2293_v14 }
 0xc97   :  { %v5887_v7 = vadd.f32 %v2281_v30, %v2271_v1  ;;  %v5889_v37 = vadd.f32 %v2281_v30, %v2272_v21 }
 0xc99   :  { %v2289_v20 = vmul.f32 -1.702, %v5887_v7  ;;  %v2290_v0 = vmul.f32 -1.702, %v5889_v37 }
 0xc9b   :  { %v4766_v61 = vpop.eup %4765  ;;  %v2295_v36 = vmul.f32 1.442695, %v2289_v20  ;;  %v2297_v40 = vmul.f32 1.442695, %v2290_v0 }
 0xc9c   :  { %v4768_v38 = vpop.eup %4767  ;;  %v2299_v58 = vadd.f32 1.0, %v4766_v61 }
 0xc9d   :  { %v2300_v3 = vadd.f32 1.0, %v4768_v38  ;;  %4769 = vpow2.f32 %v2295_v36 }
 0xc9e   :  { %4771 = vrcp.f32 %v2299_v58  ;;  %v2312_v56 = vand.u32 2147483647, %v2299_v58  ;;  %v2314_v45 = vand.u32 2147483648, %v2299_v58  ;;  %vm2308_vm9 = vweird.f32 %v2299_v58 }
 0xc9f   :  { %4773 = vrcp.f32 %v2300_v3  ;;  %v2329_v49 = vand.u32 2147483648, %v2300_v3  ;;  %v2327_v2 = vand.u32 2147483647, %v2300_v3  ;;  %vm2323_vm8 = vweird.f32 %v2300_v3 }
 0xca0   :  { %4775 = vpow2.f32 %v2297_v40  ;;  %v2315_v17 = vor.u32 1.1754944e-38, %v2314_v45  ;;  %vm2313_vm6 = vcmp.eq.f32.partialorder %v2312_v56, 8.507059e+37  ;;  %v2150_v40 = vld [vmem:[%s6621_s2 + $0x1d8] sm:$0xff] }
 0xca1   :  { %v2330_v32 = vor.u32 1.1754944e-38, %v2329_v49  ;;  %vm2328_vm12 = vcmp.eq.f32.partialorder %v2327_v2, 8.507059e+37 }
 0xca3   :  { %v4770_v35 = vpop.eup %4769 }
 0xca4   :  { %v4772_v44 = vpop.eup %4771  ;;  %v2301_v60 = vadd.f32 1.0, %v4770_v35 }
 0xca5   :  { %v4774_v25 = vpop.eup %4773  ;;  %v2304_v24 = vmul.f32 %v4772_v44, %v2299_v58  ;;  %vm2309_vm14 = vweird.f32 %v4772_v44 }
 0xca6   :  { %v4776_v22 = vpop.eup %4775  ;;  %v2319_v41 = vmul.f32 %v4774_v25, %v2300_v3  ;;  %4777 = vrcp.f32 %v2301_v60  ;;  %vm2324_vm15 = vweird.f32 %v4774_v25  ;;  %vm2310_vm10 = vmor %vm2308_vm9, %vm2309_vm14  ;;  %v2344_v63 = vand.u32 2147483648, %v2301_v60 }
 0xca7   :  { %v2305_v46 = vsub.f32 1.0, %v2304_v24  ;;  %v2302_v51 = vadd.f32 1.0, %v4776_v22  ;;  %vm2325_vm3 = vmor %vm2323_vm8, %vm2324_vm15  ;;  %v2342_v14 = vand.u32 2147483647, %v2301_v60  ;;  %vm2338_vm1 = vweird.f32 %v2301_v60 }
 0xca8   :  { %v2320_v26 = vsub.f32 1.0, %v2319_v41  ;;  %vm6759_vm8 = vcmask 916480  }
 0xca9   :  { %v2306_v48 = vmul.f32 %v4772_v44, %v2305_v46  ;;  %4779 = vrcp.f32 %v2302_v51  ;;  %v2359_v1 = vand.u32 2147483648, %v2302_v51  ;;  %v2357_v30 = vand.u32 2147483647, %v2302_v51 }
 0xcaa   :  { %v2321_v53 = vmul.f32 %v4774_v25, %v2320_v26  ;;  %vm2343_vm14 = vcmp.eq.f32.partialorder %v2342_v14, 8.507059e+37  ;;  %vm2353_vm15 = vweird.f32 %v2302_v51 }
 0xcab   :  { %v2307_v10 = vadd.f32 %v4772_v44, %v2306_v48  ;;  %v2360_v61 = vor.u32 1.1754944e-38, %v2359_v1 }
 0xcac   :  { %v4778_v8 = vpop.eup %4777  ;;  %v2322_v11 = vadd.f32 %v4774_v25, %v2321_v53 }
 0xcad   :  { %v2311_v52 = vsel %vm2310_vm10, %v4772_v44, %v2307_v10  ;;  %v2334_v47 = vmul.f32 %v4778_v8, %v2301_v60  ;;  %vm2339_vm0 = vweird.f32 %v4778_v8  ;;  %vm2358_vm10 = vcmp.eq.f32.partialorder %v2357_v30, 8.507059e+37  ;;  %v2149_v44 = vld [vmem:[%s6621_s2 + $0x1d0] sm:$0xff]  ;;  %v2152_v60 = vld [vmem:[%s6621_s2 + $0x1e8] sm:$0xff] }
 0xcae   :  { %v2316_v6 = vsel %vm2313_vm6, %v2315_v17, %v2311_v52  ;;  %v2326_v31 = vsel %vm2325_vm3, %v4774_v25, %v2322_v11  ;;  %vm2340_vm4 = vmor %vm2338_vm1, %vm2339_vm0  ;;  %v2154_v25 = vld [vmem:[%s6621_s2 + $0x1f8] sm:$0xff]  ;;  %vm6763_vm0 = vnez %v6678_v19  ;;  %vm6764_vm1 = vnez %v6680_v13 }
 0xcaf   :  { %v4780_v43 = vpop.eup %4779  ;;  %v5894_v27 = vmul.f32 %v2316_v6, %v5879_v9  ;;  %v2331_v33 = vsel %vm2328_vm12, %v2330_v32, %v2326_v31  ;;  %v2335_v34 = vsub.f32 1.0, %v2334_v47  ;;  %v2345_v9 = vor.u32 1.1754944e-38, %v2344_v63  ;;  %vm6760_vm6 = vmmov %vm6759_vm8  ;;  %v4294_v63 = vld [vmem:[%s6622_s3 + $0x68] sm:$0xff] }
 0xcb0   :  { %v5897_v62 = vmul.f32 %v2331_v33, %v5881_v59  ;;  %v2349_v5 = vmul.f32 %v4780_v43, %v2302_v51  ;;  %vm2354_vm5 = vweird.f32 %v4780_v43  ;;  %vm6761_vm3 = vmmov %vm6760_vm6 }
 0xcb1   :  { %v2336_v16 = vmul.f32 %v4778_v8, %v2335_v34  ;;  %vm2355_vm9 = vmor %vm2353_vm15, %vm2354_vm5 }
 0xcb2   :  { %v2350_v15 = vsub.f32 1.0, %v2349_v5  ;;  %v4531_v29 = vpack.i.bf16 %v5897_v62, %v5894_v27  ;;  %vm6762_vm12 = vmmov %vm6761_vm3 }
 0xcb3   :  { %v2337_v50 = vadd.f32 %v4778_v8, %v2336_v16 }
 0xcb4   :  { %v2351_v21 = vmul.f32 %v4780_v43, %v2350_v15  ;;  %4532 = vrot.lane.b32.xlu1 %v4531_v29, %s4958_s14  ;;  %4522 = vrot.lane.b32.xlu2 %v4531_v29, %s4959_s15 }
 0xcb5   :  { %v2341_v59 = vsel %vm2340_vm4, %v4778_v8, %v2337_v50  ;;  %vm6765_vm4 = vcmask 130048  }
 0xcb6   :  { %v2346_v20 = vsel %vm2343_vm14, %v2345_v9, %v2341_v59  ;;  %v2352_v0 = vadd.f32 %v4780_v43, %v2351_v21  ;;  %vm6766_vm5 = vmmov %vm6765_vm4 }
 0xcb7   :  { %v5904_v36 = vmul.f32 %v2346_v20, %v5887_v7  ;;  %v2153_v7 = vld [vmem:[%s6621_s2 + $0x1f0] sm:$0xff]  ;;  %vm6767_vm14 = vmmov %vm6765_vm4 }
 0xcb8   :  { %v2356_v38 = vsel %vm2355_vm9, %v4780_v43, %v2352_v0  ;;  %vm6768_vm15 = vmmov %vm6765_vm4  ;;  %vm6769_vm9 = vnez %v6684_v42 }
 0xcb9   :  { %v2361_v58 = vsel %vm2358_vm10, %v2360_v61, %v2356_v38  ;;  %v2413_v47 = vpack.c.bf16 %v5904_v36, %v5894_v27  ;;  %vm6770_vm10 = vnez %v6688_v39 }
 0xcba   :  { %v5910_v3 = vmul.f32 %v2361_v58, %v5889_v37  ;;  %v2151_v37 = vld [vmem:[%s6621_s2 + $0x1e0] sm:$0xff] }
 0xcbc   :  { %v4526_v35 = vpack.i.bf16 %v5910_v3, %v5904_v36  ;;  %2424 = vperm.xlu1 %4319, %v2150_v40   ;;  %v2414_v6 = vpack.c.bf16 %v5910_v3, %v5897_v62 }
 0xcbe   :  { %4527 = vrot.lane.b32.xlu0 %v4526_v35, %s4959_s15  ;;  %4537 = vrot.lane.b32.xlu2 %v4526_v35, %s4958_s14 }
 0xcc4   :  { %2483 = vperm.xlu1 %4319, %v2153_v7  }
 0xcc6   :  { %2419 = vperm.xlu0 %4318, %v2149_v44   ;;  %2469 = vperm.xlu2 %4340, %v2151_v37  }
 0xcce   :  { %2474 = vperm.xlu0 %4318, %v2152_v60   ;;  %2488 = vperm.xlu2 %4340, %v2154_v25  }
 0xd0e   :  { %v4523_v24 = vpop.permute.xlu2 %4522 }
 0xd0f   :  { %v4525_v22 = vunpack.i.h.bf16 %v4523_v24  ;;  %v4524_v41 = vunpack.i.l.bf16 %v4523_v24 }
 0xd11   :  { %v2401_v26 = vsel %vm6759_vm8, %v4525_v22, 0.0  ;;  %v2395_v48 = vsel %vm6760_vm6, %v4524_v41, %v4525_v22  ;;  %vm6771_vm8 = vcmask 392192  }
 0xd12   :  { %vm6772_vm6 = vmmov %vm6771_vm8 }
 0xd18   :  { %v4538_v2 = vpop.permute.xlu2 %4537 }
 0xd19   :  { %v4540_v52 = vunpack.i.h.bf16 %v4538_v2  ;;  %v4539_v32 = vunpack.i.l.bf16 %v4538_v2 }
 0xd1b   :  { %v2380_v19 = vsel %vm6767_vm14, %v4539_v32, %v4540_v52  ;;  %v2386_v33 = vsel %vm6768_vm15, 0.0, %v4539_v32 }
 0xd20   :  { %v2470_v21 = vpop.permute.xlu2 %2469 }
 0xd26   :  { %v4533_v45 = vpop.permute.xlu1 %4532 }
 0xd27   :  { %v4535_v17 = vunpack.i.h.bf16 %v4533_v45  ;;  %v4534_v11 = vunpack.i.l.bf16 %v4533_v45 }
 0xd28   :  { %v2489_v24 = vpop.permute.xlu2 %2488 }
 0xd29   :  { %v2379_v31 = vsel %vm6765_vm4, %v4534_v11, %v4535_v17  ;;  %v2385_v43 = vsel %vm6766_vm5, 0.0, %v4534_v11 }
 0xd2a   :  { %v4161_v13 = vpack.c.bf16 %v2386_v33, %v2385_v43  ;;  %v4168_v34 = vpack.c.bf16 %v2380_v19, %v2379_v31 }
 0xd2e   :  { %v2425_v5 = vpop.permute.xlu1 %2424 }
 0xd30   :  { %v4528_v46 = vpop.permute.xlu0 %4527 }
 0xd31   :  { %v4530_v51 = vunpack.i.h.bf16 %v4528_v46  ;;  %v4529_v56 = vunpack.i.l.bf16 %v4528_v46 }
 0xd33   :  { %v2402_v49 = vsel %vm6761_vm3, %v4530_v51, 0.0  ;;  %v2396_v53 = vsel %vm6762_vm12, %v4529_v56, %v4530_v51 }
 0xd34   :  { %v4158_v10 = vpack.c.bf16 %v2396_v53, %v2395_v48  ;;  %v4165_v8 = vpack.c.bf16 %v2402_v49, %v2401_v26 }
 0xd36   :  { %4159 = vmatpush.bf16.msk.msra.mxu0 %vm6763_vm0, %v4158_v10  ;;  %4166 = vmatpush.bf16.msk.msra.mxu1 %vm6764_vm1, %v4165_v8  ;;  %v2484_v59 = vpop.permute.xlu1 %2483 }
 0xd38   :  { %v2420_v16 = vpop.permute.xlu0 %2419 }
 0xd3a   :  { %2441 = vmatpush.bf16.msra.mxu0 %v2413_v47  ;;  %2455 = vmatpush.bf16.msra.mxu1 %v2414_v6 }
 0xd3e   :  { %4162 = vmatpush.bf16.msk.msra.mxu0 %vm6769_vm9, %v4161_v13  ;;  %4169 = vmatpush.bf16.msk.msra.mxu1 %vm6770_vm10, %v4168_v34 }
 0xd40   :  { %v2475_v37 = vpop.permute.xlu0 %2474 }
 0xd41   :  { %4163 = vmatmul.msk.bf16.vlgmr.msra.gmra.mxu0 %vm6771_vm8, %v4294_v63  ;;  %4170 = vmatmul.msk.bf16.vlgmr.msra.gmra.mxu1 %vm6772_vm6, %v4294_v63 }
 0xdbe   :  { %v2444_v14 = vpop.f32.mrf.mxu0  ;;  %v2458_v15 = vpop.f32.mrf.mxu1 }
 0xdbf   :  { %v2445_v29 = vadd.f32 %v2444_v14, %v2420_v16  ;;  %v2459_v50 = vadd.f32 %v2458_v15, %v2420_v16 }
 0xdc1   :  { %v2463_v1 = vadd.f32 %v2445_v29, %v5894_v27  ;;  %v2464_v9 = vadd.f32 %v2459_v50, %v5897_v62 }
 0xdc3   :  { %v2477_v42 = vmul.f32 %v2470_v21, %v2463_v1  ;;  %v2478_v30 = vmul.f32 %v2470_v21, %v2464_v9 }
 0xdc5   :  { %v5958_v39 = vadd.f32 %v2484_v59, %v2477_v42  ;;  %v5960_v20 = vadd.f32 %v2484_v59, %v2478_v30 }
 0xdc6   :  { %v2446_v0 = vpop.f32.mrf.mxu0  ;;  %v2460_v61 = vpop.f32.mrf.mxu1 }
 0xdc7   :  { %v2495_v38 = vmul.f32 -1.702, %v5958_v39  ;;  %v2496_v58 = vmul.f32 -1.702, %v5960_v20  ;;  %v2447_v40 = vadd.f32 %v2446_v0, %v2425_v5  ;;  %v2461_v35 = vadd.f32 %v2460_v61, %v2425_v5 }
 0xdc9   :  { %v2499_v7 = vmul.f32 1.442695, %v2495_v38  ;;  %v2501_v27 = vmul.f32 1.442695, %v2496_v58  ;;  %v2465_v62 = vadd.f32 %v2447_v40, %v5904_v36  ;;  %v2466_v44 = vadd.f32 %v2461_v35, %v5910_v3 }
 0xdcb   :  { %4781 = vpow2.f32 %v2499_v7  ;;  %v2479_v60 = vmul.f32 %v2475_v37, %v2465_v62  ;;  %v2480_v25 = vmul.f32 %v2475_v37, %v2466_v44 }
 0xdcc   :  { %4783 = vpow2.f32 %v2501_v27 }
 0xdcd   :  { %v5966_v22 = vadd.f32 %v2489_v24, %v2479_v60  ;;  %v5968_v41 = vadd.f32 %v2489_v24, %v2480_v25 }
 0xdcf   :  { %v2497_v46 = vmul.f32 -1.702, %v5966_v22  ;;  %v2498_v51 = vmul.f32 -1.702, %v5968_v41 }
 0xdd1   :  { %v4782_v56 = vpop.eup %4781  ;;  %v2503_v45 = vmul.f32 1.442695, %v2497_v46  ;;  %v2505_v48 = vmul.f32 1.442695, %v2498_v51 }
 0xdd2   :  { %v4784_v26 = vpop.eup %4783  ;;  %v2507_v36 = vadd.f32 1.0, %v4782_v56  ;;  %v2158_v56 = vld [vmem:[%s6621_s2 + $0x218] sm:$0xff] }
 0xdd3   :  { %v2508_v3 = vadd.f32 1.0, %v4784_v26  ;;  %4785 = vpow2.f32 %v2503_v45 }
 0xdd4   :  { %4787 = vrcp.f32 %v2507_v36  ;;  %v2520_v47 = vand.u32 2147483647, %v2507_v36  ;;  %v2522_v6 = vand.u32 2147483648, %v2507_v36  ;;  %vm2516_vm0 = vweird.f32 %v2507_v36 }
 0xdd5   :  { %4789 = vrcp.f32 %v2508_v3  ;;  %v2537_v19 = vand.u32 2147483648, %v2508_v3  ;;  %v2535_v13 = vand.u32 2147483647, %v2508_v3  ;;  %vm2531_vm4 = vweird.f32 %v2508_v3 }
 0xdd6   :  { %4791 = vpow2.f32 %v2505_v48  ;;  %v2523_v5 = vor.u32 1.1754944e-38, %v2522_v6  ;;  %vm2521_vm5 = vcmp.eq.f32.partialorder %v2520_v47, 8.507059e+37 }
 0xdd7   :  { %v2538_v15 = vor.u32 1.1754944e-38, %v2537_v19  ;;  %vm2536_vm15 = vcmp.eq.f32.partialorder %v2535_v13, 8.507059e+37 }
 0xdd9   :  { %v4786_v49 = vpop.eup %4785 }
 0xdda   :  { %v4788_v53 = vpop.eup %4787  ;;  %v2509_v2 = vadd.f32 1.0, %v4786_v49 }
 0xddb   :  { %v4790_v10 = vpop.eup %4789  ;;  %v2512_v8 = vmul.f32 %v4788_v53, %v2507_v36  ;;  %vm2517_vm3 = vweird.f32 %v4788_v53 }
 0xddc   :  { %v4792_v17 = vpop.eup %4791  ;;  %4793 = vrcp.f32 %v2509_v2  ;;  %v2527_v11 = vmul.f32 %v4790_v10, %v2508_v3  ;;  %vm2532_vm12 = vweird.f32 %v4790_v10  ;;  %vm2518_vm1 = vmor %vm2516_vm0, %vm2517_vm3  ;;  %v2552_v0 = vand.u32 2147483648, %v2509_v2  ;;  %v2155_v3 = vld [vmem:[%s6621_s2 + $0x200] sm:$0xff] }
 0xddd   :  { %v2510_v52 = vadd.f32 1.0, %v4792_v17  ;;  %v2513_v32 = vsub.f32 1.0, %v2512_v8  ;;  %vm2533_vm14 = vmor %vm2531_vm4, %vm2532_vm12  ;;  %v2550_v58 = vand.u32 2147483647, %v2509_v2  ;;  %vm2546_vm10 = vweird.f32 %v2509_v2 }
 0xdde   :  { %v2528_v31 = vsub.f32 1.0, %v2527_v11  ;;  %vm6773_vm4 = vcmask 1039360  }
 0xddf   :  { %4795 = vrcp.f32 %v2510_v52  ;;  %v2514_v43 = vmul.f32 %v4788_v53, %v2513_v32  ;;  %v2567_v27 = vand.u32 2147483648, %v2510_v52  ;;  %v2565_v62 = vand.u32 2147483647, %v2510_v52 }
 0xde0   :  { %v2529_v33 = vmul.f32 %v4790_v10, %v2528_v31  ;;  %vm2551_vm3 = vcmp.eq.f32.partialorder %v2550_v58, 8.507059e+37  ;;  %vm2561_vm12 = vweird.f32 %v2510_v52 }
 0xde1   :  { %v2515_v34 = vadd.f32 %v4788_v53, %v2514_v43  ;;  %v2568_v25 = vor.u32 1.1754944e-38, %v2567_v27 }
 0xde2   :  { %v4794_v63 = vpop.eup %4793  ;;  %v2530_v16 = vadd.f32 %v4790_v10, %v2529_v33 }
 0xde3   :  { %v2519_v14 = vsel %vm2518_vm1, %v4788_v53, %v2515_v34  ;;  %v2542_v29 = vmul.f32 %v4794_v63, %v2509_v2  ;;  %vm2547_vm9 = vweird.f32 %v4794_v63  ;;  %vm2566_vm1 = vcmp.eq.f32.partialorder %v2565_v62, 8.507059e+37 }
 0xde4   :  { %v2524_v50 = vsel %vm2521_vm5, %v2523_v5, %v2519_v14  ;;  %v2534_v1 = vsel %vm2533_vm14, %v4790_v10, %v2530_v16  ;;  %vm2548_vm8 = vmor %vm2546_vm10, %vm2547_vm9  ;;  %vm6777_vm9 = vcmask 7168  }
 0xde5   :  { %v4796_v9 = vpop.eup %4795  ;;  %v2539_v21 = vsel %vm2536_vm15, %v2538_v15, %v2534_v1  ;;  %v5973_v42 = vmul.f32 %v2524_v50, %v5958_v39  ;;  %v2543_v30 = vsub.f32 1.0, %v2542_v29  ;;  %v2553_v39 = vor.u32 1.1754944e-38, %v2552_v0  ;;  %vm6774_vm5 = vmmov %vm6773_vm4  ;;  %v4295_v1 = vld [vmem:[%s6622_s3 + $0x70] sm:$0xff] }
 0xde6   :  { %v5976_v59 = vmul.f32 %v2539_v21, %v5960_v20  ;;  %v2557_v61 = vmul.f32 %v4796_v9, %v2510_v52  ;;  %vm2562_vm6 = vweird.f32 %v4796_v9  ;;  %vm6775_vm14 = vmmov %vm6773_vm4 }
 0xde7   :  { %v2544_v38 = vmul.f32 %v4794_v63, %v2543_v30  ;;  %vm2563_vm0 = vmor %vm2561_vm12, %vm2562_vm6 }
 0xde8   :  { %v4551_v40 = vpack.i.bf16 %v5976_v59, %v5973_v42  ;;  %v2558_v35 = vsub.f32 1.0, %v2557_v61  ;;  %vm6776_vm15 = vmmov %vm6773_vm4 }
 0xde9   :  { %v2545_v7 = vadd.f32 %v4794_v63, %v2544_v38  ;;  %vm6778_vm10 = vmmov %vm6777_vm9 }
 0xdea   :  { %4552 = vrot.lane.b32.xlu2 %v4551_v40, %s4956_s23  ;;  %4542 = vrot.lane.b32.xlu0 %v4551_v40, %s4957_s24  ;;  %v2559_v20 = vmul.f32 %v4796_v9, %v2558_v35 }
 0xdeb   :  { %v2549_v44 = vsel %vm2548_vm8, %v4794_v63, %v2545_v7  ;;  %vm6779_vm8 = vmmov %vm6777_vm9 }
 0xdec   :  { %v2554_v37 = vsel %vm2551_vm3, %v2553_v39, %v2549_v44  ;;  %v2560_v60 = vadd.f32 %v4796_v9, %v2559_v20  ;;  %vm6780_vm6 = vmmov %vm6779_vm8  ;;  %vm6781_vm3 = vcmask 392192  }
 0xded   :  { %v2573_v24 = vmul.f32 %v2554_v37, %v5966_v22  ;;  %v2157_v22 = vld [vmem:[%s6621_s2 + $0x210] sm:$0xff]  ;;  %vm6782_vm12 = vmmov %vm6781_vm3 }
 0xdee   :  { %v2564_v46 = vsel %vm2563_vm0, %v4796_v9, %v2560_v60  ;;  %v4296_v9 = vld [vmem:[%s6622_s3 + $0x78] sm:$0xff]  ;;  %vm6783_vm0 = vmmov %vm6781_vm3 }
 0xdef   :  { %v2569_v51 = vsel %vm2566_vm1, %v2568_v25, %v2564_v46  ;;  %v2621_v45 = vpack.c.bf16 %v2573_v24, %v5973_v42  ;;  %vm6784_vm1 = vmmov %vm6783_vm0 }
 0xdf0   :  { %v2574_v26 = vmul.f32 %v2569_v51, %v5968_v41  ;;  %v2156_v41 = vld [vmem:[%s6621_s2 + $0x208] sm:$0xff] }
 0xdf2   :  { %v4546_v36 = vpack.i.bf16 %v2574_v26, %v2573_v24  ;;  %2642 = vperm.xlu2 %4340, %v2158_v56   ;;  %v2622_v48 = vpack.c.bf16 %v2574_v26, %v5976_v59 }
 0xdf4   :  { %4547 = vrot.lane.b32.xlu1 %v4546_v36, %s4957_s24  ;;  %4557 = vrot.lane.b32.xlu0 %v4546_v36, %s4956_s23 }
 0xdfc   :  { %2637 = vperm.xlu1 %4319, %v2157_v22   ;;  %2627 = vperm.xlu0 %4318, %v2155_v3  }
 0xe04   :  { %2632 = vperm.xlu1 %4319, %v2156_v41  }
 0xe44   :  { %v4553_v31 = vpop.permute.xlu2 %4552 }
 0xe45   :  { %v4555_v34 = vunpack.i.h.bf16 %v4553_v31  ;;  %v4554_v63 = vunpack.i.l.bf16 %v4553_v31 }
 0xe47   :  { %v2587_v14 = vsel %vm6779_vm8, %v4554_v63, %v4555_v34  ;;  %v2593_v15 = vsel %vm6780_vm6, 0.0, %v4554_v63 }
 0xe4c   :  { %v2643_v20 = vpop.permute.xlu2 %2642 }
 0xe5c   :  { %v4543_v49 = vpop.permute.xlu0 %4542 }
 0xe5d   :  { %v4545_v53 = vunpack.i.h.bf16 %v4543_v49  ;;  %v4544_v2 = vunpack.i.l.bf16 %v4543_v49 }
 0xe5f   :  { %v2609_v52 = vsel %vm6773_vm4, %v4545_v53, 0.0  ;;  %v2603_v32 = vsel %vm6774_vm5, %v4544_v2, %v4545_v53 }
 0xe66   :  { %v4548_v10 = vpop.permute.xlu1 %4547  ;;  %v4558_v11 = vpop.permute.xlu0 %4557 }
 0xe67   :  { %v4550_v8 = vunpack.i.h.bf16 %v4548_v10  ;;  %v4549_v17 = vunpack.i.l.bf16 %v4548_v10  ;;  %v4560_v33 = vunpack.i.h.bf16 %v4558_v11  ;;  %v4559_v13 = vunpack.i.l.bf16 %v4558_v11 }
 0xe69   :  { %v2610_v47 = vsel %vm6775_vm14, %v4550_v8, 0.0  ;;  %v2604_v6 = vsel %vm6776_vm15, %v4549_v17, %v4550_v8  ;;  %v2588_v5 = vsel %vm6777_vm9, %v4559_v13, %v4560_v33  ;;  %v2594_v16 = vsel %vm6778_vm10, 0.0, %v4559_v13 }
 0xe6a   :  { %v4180_v43 = vpack.c.bf16 %v2604_v6, %v2603_v32  ;;  %v4188_v19 = vpack.c.bf16 %v2610_v47, %v2609_v52  ;;  %v4183_v29 = vpack.c.bf16 %v2594_v16, %v2593_v15  ;;  %v4191_v50 = vpack.c.bf16 %v2588_v5, %v2587_v14 }
 0xe6c   :  { %4181 = vmatpush.bf16.msk.msrb.mxu2 %vm5260_vm7, %v4180_v43  ;;  %4189 = vmatpush.bf16.msk.msrb.mxu3 %vm5268_vm11, %v4188_v19 }
 0xe6e   :  { %v2638_v0 = vpop.permute.xlu1 %2637  ;;  %v2628_v43 = vpop.permute.xlu0 %2627 }
 0xe70   :  { %2667 = vmatpush.bf16.msrb.mxu2 %v2621_v45  ;;  %2686 = vmatpush.bf16.msrb.mxu3 %v2622_v48 }
 0xe74   :  { %4184 = vmatpush.bf16.msk.msrb.mxu2 %vm5280_vm13, %v4183_v29  ;;  %4192 = vmatpush.bf16.msk.msrb.mxu3 %vm5286_vm2, %v4191_v50 }
 0xe77   :  { %4185 = vmatmul.msk.bf16.vlgmr.msrb.gmra.mxu2 %vm6781_vm3, %v4295_v1  ;;  %4193 = vmatmul.msk.bf16.vlgmr.msrb.gmra.mxu3 %vm6782_vm12, %v4295_v1 }
 0xe87   :  { %4186 = vmatmul.msk.bf16.gmra.mxu2 %vm6783_vm0, %v4296_v9  ;;  %4194 = vmatmul.msk.bf16.gmra.mxu3 %vm6784_vm1, %v4296_v9 }
 0xefa   :  { %v2670_v21 = vpop.f32.mrf.mxu2  ;;  %v6026_v42 = vpop.f32.mrf.mxu3 }
 0xefb   :  { %v2671_v13 = vadd.f32 %v2670_v21, %v2628_v43  ;;  %v2690_v15 = vadd.f32 %v6026_v42, %v2628_v43 }
 0xf02   :  { %v6028_v30 = vpop.f32.mrf.mxu2  ;;  %v6030_v59 = vpop.f32.mrf.mxu3 }
 0xf0a   :  { %v2675_v61 = vpop.f32.mrf.mxu2  ;;  %v2694_v38 = vpop.f32.mrf.mxu3 }
 0xf0b   :  { %v2676_v58 = vadd.f32 %v2675_v61, %v2638_v0  ;;  %v2695_v40 = vadd.f32 %v2694_v38, %v2638_v0 }
 0xf0d   :  { %v2699_v35 = vsub.f32 0.0, %v2676_v58  ;;  %v2700_v7 = vsub.f32 0.0, %v2695_v40 }
 0xf0f   :  { %v2703_v27 = vmul.f32 1.442695, %v2699_v35  ;;  %v2705_v39 = vmul.f32 1.442695, %v2700_v7 }
 0xf11   :  { %4797 = vpow2.f32 %v2703_v27 }
 0xf12   :  { %4799 = vpow2.f32 %v2705_v39  ;;  %v2677_v62 = vpop.f32.mrf.mxu2  ;;  %v2696_v44 = vpop.f32.mrf.mxu3 }
 0xf13   :  { %v2678_v37 = vadd.f32 %v2677_v62, %v2643_v20  ;;  %v2697_v60 = vadd.f32 %v2696_v44, %v2643_v20 }
 0xf15   :  { %v2701_v25 = vsub.f32 0.0, %v2678_v37  ;;  %v2702_v24 = vsub.f32 0.0, %v2697_v60  ;;  %v2633_v37 = vpop.permute.xlu1 %2632 }
 0xf17   :  { %v4798_v46 = vpop.eup %4797  ;;  %v2707_v51 = vmul.f32 1.442695, %v2701_v25  ;;  %v2709_v26 = vmul.f32 1.442695, %v2702_v24  ;;  %v2673_v25 = vadd.f32 %v6028_v30, %v2633_v37 }
 0xf18   :  { %v4800_v56 = vpop.eup %4799  ;;  %v2711_v45 = vadd.f32 1.0, %v4798_v46 }
 0xf19   :  { %v2712_v36 = vadd.f32 1.0, %v4800_v56  ;;  %4801 = vpow2.f32 %v2707_v51  ;;  %v2692_v56 = vadd.f32 %v6030_v59, %v2633_v37  ;;  %v2791_v59 = vld [vmem:[%s6621_s2 + $0x240] sm:$0xff] }
 0xf1a   :  { %4803 = vrcp.f32 %v2711_v45  ;;  %v2726_v17 = vand.u32 2147483648, %v2711_v45  ;;  %v2724_v52 = vand.u32 2147483647, %v2711_v45  ;;  %vm2720_vm14 = vweird.f32 %v2711_v45 }
 0xf1b   :  { %4805 = vrcp.f32 %v2712_v36  ;;  %v2741_v47 = vand.u32 2147483648, %v2712_v36  ;;  %v2739_v31 = vand.u32 2147483647, %v2712_v36  ;;  %vm2735_vm9 = vweird.f32 %v2712_v36 }
 0xf1c   :  { %4807 = vpow2.f32 %v2709_v26  ;;  %v2727_v34 = vor.u32 1.1754944e-38, %v2726_v17  ;;  %vm2725_vm8 = vcmp.eq.f32.partialorder %v2724_v52, 8.507059e+37 }
 0xf1d   :  { %v2742_v5 = vor.u32 1.1754944e-38, %v2741_v47  ;;  %vm2740_vm6 = vcmp.eq.f32.partialorder %v2739_v31, 8.507059e+37 }
 0xf1f   :  { %v4802_v48 = vpop.eup %4801 }
 0xf20   :  { %v4804_v22 = vpop.eup %4803  ;;  %v2713_v3 = vadd.f32 1.0, %v4802_v48  ;;  %v2788_v48 = vld [vmem:[%s6621_s2 + $0x228] sm:$0xff] }
 0xf21   :  { %v4806_v41 = vpop.eup %4805  ;;  %v2716_v49 = vmul.f32 %v4804_v22, %v2711_v45  ;;  %vm2721_vm4 = vweird.f32 %v4804_v22 }
 0xf22   :  { %v4808_v53 = vpop.eup %4807  ;;  %v2731_v2 = vmul.f32 %v4806_v41, %v2712_v36  ;;  %4809 = vrcp.f32 %v2713_v3  ;;  %vm2736_vm5 = vweird.f32 %v4806_v41  ;;  %vm2722_vm15 = vmor %vm2720_vm14, %vm2721_vm4  ;;  %v2756_v21 = vand.u32 2147483648, %v2713_v3 }
 0xf23   :  { %v2717_v10 = vsub.f32 1.0, %v2716_v49  ;;  %v6032_v8 = vadd.f32 1.0, %v4808_v53  ;;  %vm2737_vm10 = vmor %vm2735_vm9, %vm2736_vm5  ;;  %v2754_v35 = vand.u32 2147483647, %v2713_v3  ;;  %vm2750_vm12 = vweird.f32 %v2713_v3  ;;  %v2790_v49 = vld [vmem:[%s6621_s2 + $0x238] sm:$0xff]  ;;  %v2792_v53 = vld [vmem:[%s6621_s2 + $0x248] sm:$0xff] }
 0xf24   :  { %v2732_v11 = vsub.f32 1.0, %v2731_v2  ;;  %v2757_v20 = vor.u32 1.1754944e-38, %v2756_v21  ;;  %vm6785_vm9 = vcmask 1039360  }
 0xf25   :  { %v2718_v32 = vmul.f32 %v4804_v22, %v2717_v10  ;;  %4811 = vrcp.f32 %v6032_v8  ;;  %v2771_v27 = vand.u32 2147483648, %v6032_v8  ;;  %v2769_v44 = vand.u32 2147483647, %v6032_v8 }
 0xf26   :  { %v2733_v6 = vmul.f32 %v4806_v41, %v2732_v11  ;;  %vm2755_vm4 = vcmp.eq.f32.partialorder %v2754_v35, 8.507059e+37  ;;  %vm2765_vm5 = vweird.f32 %v6032_v8 }
 0xf27   :  { %v2719_v19 = vadd.f32 %v4804_v22, %v2718_v32  ;;  %v2772_v51 = vor.u32 1.1754944e-38, %v2771_v27 }
 0xf28   :  { %v4810_v33 = vpop.eup %4809  ;;  %v2734_v63 = vadd.f32 %v4806_v41, %v2733_v6 }
 0xf29   :  { %v2746_v16 = vmul.f32 %v4810_v33, %v2713_v3  ;;  %v2723_v14 = vsel %vm2722_vm15, %v4804_v22, %v2719_v19  ;;  %vm2751_vm3 = vweird.f32 %v4810_v33  ;;  %vm2770_vm15 = vcmp.eq.f32.partialorder %v2769_v44, 8.507059e+37  ;;  %v2787_v3 = vld [vmem:[%s6621_s2 + $0x220] sm:$0xff] }
 0xf2a   :  { %v2728_v29 = vsel %vm2725_vm8, %v2727_v34, %v2723_v14  ;;  %v2738_v50 = vsel %vm2737_vm10, %v4806_v41, %v2734_v63  ;;  %vm2752_vm0 = vmor %vm2750_vm12, %vm2751_vm3  ;;  %v2789_v41 = vld [vmem:[%s6621_s2 + $0x230] sm:$0xff]  ;;  %vm6789_vm3 = vcmask 7168  }
 0xf2b   :  { %v4812_v1 = vpop.eup %4811  ;;  %v2747_v9 = vsub.f32 1.0, %v2746_v16  ;;  %v2743_v0 = vsel %vm2740_vm6, %v2742_v5, %v2738_v50  ;;  %v6036_v61 = vmul.f32 %v2728_v29, %v2671_v13  ;;  %vm6786_vm10 = vmmov %vm6785_vm9 }
 0xf2c   :  { %v2761_v38 = vmul.f32 %v4812_v1, %v6032_v8  ;;  %v6039_v58 = vmul.f32 %v2743_v0, %v2690_v15  ;;  %vm2766_vm1 = vweird.f32 %v4812_v1  ;;  %vm6787_vm8 = vmmov %vm6785_vm9 }
 0xf2d   :  { %v2748_v40 = vmul.f32 %v4810_v33, %v2747_v9  ;;  %vm2767_vm14 = vmor %vm2765_vm5, %vm2766_vm1 }
 0xf2e   :  { %v2762_v7 = vsub.f32 1.0, %v2761_v38  ;;  %v4571_v42 = vpack.i.bf16 %v6039_v58, %v6036_v61  ;;  %vm6788_vm6 = vmmov %vm6787_vm8  ;;  %v4297_v38 = vld [vmem:[%s6622_s3 + $0x80] sm:$0xff] }
 0xf2f   :  { %v2749_v39 = vadd.f32 %v4810_v33, %v2748_v40  ;;  %vm6790_vm12 = vmmov %vm6789_vm3 }
 0xf30   :  { %v2763_v62 = vmul.f32 %v4812_v1, %v2762_v7  ;;  %4572 = vrot.lane.b32.xlu1 %v4571_v42, %s4956_s23  ;;  %4562 = vrot.lane.b32.xlu2 %v4571_v42, %s4957_s24 }
 0xf31   :  { %v2753_v60 = vsel %vm2752_vm0, %v4810_v33, %v2749_v39  ;;  %vm6791_vm0 = vmmov %vm6789_vm3 }
 0xf32   :  { %v2758_v24 = vsel %vm2755_vm4, %v2757_v20, %v2753_v60  ;;  %v2764_v46 = vadd.f32 %v4812_v1, %v2763_v62  ;;  %vm6792_vm1 = vmmov %vm6791_vm0  ;;  %vm6793_vm4 = vcmask 392192  }
 0xf33   :  { %v6050_v26 = vmul.f32 %v2758_v24, %v2673_v25  ;;  %vm6794_vm5 = vmmov %vm6793_vm4 }
 0xf34   :  { %v2768_v45 = vsel %vm2767_vm14, %v4812_v1, %v2764_v46 }
 0xf35   :  { %v2773_v36 = vsel %vm2770_vm15, %v2772_v51, %v2768_v45  ;;  %v2849_v14 = vpack.c.bf16 %v6050_v26, %v6036_v61 }
 0xf36   :  { %v6055_v22 = vmul.f32 %v2773_v36, %v2692_v56 }
 0xf38   :  { %v4566_v30 = vpack.i.bf16 %v6055_v22, %v6050_v26  ;;  %2860 = vperm.xlu1 %4319, %v2788_v48   ;;  %v2850_v15 = vpack.c.bf16 %v6055_v22, %v6039_v58 }
 0xf3a   :  { %4567 = vrot.lane.b32.xlu0 %v4566_v30, %s4957_s24  ;;  %4577 = vrot.lane.b32.xlu2 %v4566_v30, %s4956_s23 }
 0xf40   :  { %2919 = vperm.xlu1 %4319, %v2791_v59  }
 0xf42   :  { %2855 = vperm.xlu0 %4318, %v2787_v3   ;;  %2905 = vperm.xlu2 %4340, %v2789_v41  }
 0xf4a   :  { %2910 = vperm.xlu0 %4318, %v2790_v49   ;;  %2924 = vperm.xlu2 %4340, %v2792_v53  }
 0xf8a   :  { %v4563_v2 = vpop.permute.xlu2 %4562 }
 0xf8b   :  { %v4565_v10 = vunpack.i.h.bf16 %v4563_v2  ;;  %v4564_v8 = vunpack.i.l.bf16 %v4563_v2 }
 0xf8d   :  { %v2837_v47 = vsel %vm6785_vm9, %v4565_v10, 0.0  ;;  %v2831_v6 = vsel %vm6786_vm10, %v4564_v8, %v4565_v10 }
 0xf94   :  { %v4578_v19 = vpop.permute.xlu2 %4577 }
 0xf95   :  { %v4580_v5 = vunpack.i.h.bf16 %v4578_v19  ;;  %v4579_v16 = vunpack.i.l.bf16 %v4578_v19 }
 0xf97   :  { %v2816_v1 = vsel %vm6791_vm0, %v4579_v16, %v4580_v5  ;;  %v2822_v9 = vsel %vm6792_vm1, 0.0, %v4579_v16 }
 0xf9c   :  { %v2906_v44 = vpop.permute.xlu2 %2905 }
 0xfa2   :  { %v4573_v32 = vpop.permute.xlu1 %4572 }
 0xfa3   :  { %v4575_v34 = vunpack.i.h.bf16 %v4573_v32  ;;  %v4574_v63 = vunpack.i.l.bf16 %v4573_v32 }
 0xfa4   :  { %v2925_v2 = vpop.permute.xlu2 %2924 }
 0xfa5   :  { %v2815_v29 = vsel %vm6789_vm3, %v4574_v63, %v4575_v34  ;;  %v2821_v50 = vsel %vm6790_vm12, 0.0, %v4574_v63 }
 0xfa6   :  { %v4203_v0 = vpack.c.bf16 %v2822_v9, %v2821_v50  ;;  %v4210_v21 = vpack.c.bf16 %v2816_v1, %v2815_v29 }
 0xfaa   :  { %v2861_v40 = vpop.permute.xlu1 %2860 }
 0xfac   :  { %v4568_v17 = vpop.permute.xlu0 %4567 }
 0xfad   :  { %v4570_v11 = vunpack.i.h.bf16 %v4568_v17  ;;  %v4569_v52 = vunpack.i.l.bf16 %v4568_v17 }
 0xfaf   :  { %v2838_v31 = vsel %vm6787_vm8, %v4570_v11, 0.0  ;;  %v2832_v43 = vsel %vm6788_vm6, %v4569_v52, %v4570_v11 }
 0xfb0   :  { %v4200_v33 = vpack.c.bf16 %v2832_v43, %v2831_v6  ;;  %v4207_v13 = vpack.c.bf16 %v2838_v31, %v2837_v47 }
 0xfb2   :  { %4201 = vmatpush.bf16.msk.msrb.mxu0 %vm5260_vm7, %v4200_v33  ;;  %4208 = vmatpush.bf16.msk.msrb.mxu1 %vm5268_vm11, %v4207_v13  ;;  %v2920_v25 = vpop.permute.xlu1 %2919 }
 0xfb4   :  { %v2856_v35 = vpop.permute.xlu0 %2855 }
 0xfb6   :  { %2877 = vmatpush.bf16.msrb.mxu0 %v2849_v14  ;;  %2891 = vmatpush.bf16.msrb.mxu1 %v2850_v15 }
 0xfba   :  { %4204 = vmatpush.bf16.msk.msrb.mxu0 %vm5280_vm13, %v4203_v0  ;;  %4211 = vmatpush.bf16.msk.msrb.mxu1 %vm5286_vm2, %v4210_v21 }
 0xfbc   :  { %v2911_v41 = vpop.permute.xlu0 %2910 }
 0xfbd   :  { %4205 = vmatmul.msk.bf16.vlgmr.msrb.gmra.mxu0 %vm6793_vm4, %v4297_v38  ;;  %4212 = vmatmul.msk.bf16.vlgmr.msrb.gmra.mxu1 %vm6794_vm5, %v4297_v38 }
0x103a   :  { %v2880_v7 = vpop.f32.mrf.mxu0  ;;  %v2894_v42 = vpop.f32.mrf.mxu1 }
0x103b   :  { %v2881_v27 = vadd.f32 %v2880_v7, %v2856_v35  ;;  %v2895_v39 = vadd.f32 %v2894_v42, %v2856_v35 }
0x103d   :  { %v2899_v20 = vadd.f32 %v2881_v27, %v6036_v61  ;;  %v2900_v62 = vadd.f32 %v2895_v39, %v6039_v58 }
0x103f   :  { %v2913_v37 = vmul.f32 %v2906_v44, %v2899_v20  ;;  %v2914_v60 = vmul.f32 %v2906_v44, %v2900_v62 }
0x1041   :  { %v6103_v24 = vadd.f32 %v2920_v25, %v2913_v37  ;;  %v6105_v46 = vadd.f32 %v2920_v25, %v2914_v60 }
0x1042   :  { %v2882_v51 = vpop.f32.mrf.mxu0  ;;  %v2896_v56 = vpop.f32.mrf.mxu1 }
0x1043   :  { %v2931_v45 = vmul.f32 -1.702, %v6103_v24  ;;  %v2932_v36 = vmul.f32 -1.702, %v6105_v46  ;;  %v2883_v48 = vadd.f32 %v2882_v51, %v2861_v40  ;;  %v2897_v30 = vadd.f32 %v2896_v56, %v2861_v40 }
0x1045   :  { %v2935_v59 = vmul.f32 1.442695, %v2931_v45  ;;  %v2937_v61 = vmul.f32 1.442695, %v2932_v36  ;;  %v2901_v58 = vadd.f32 %v2883_v48, %v6050_v26  ;;  %v2902_v3 = vadd.f32 %v2897_v30, %v6055_v22 }
0x1047   :  { %4813 = vpow2.f32 %v2935_v59  ;;  %v2915_v49 = vmul.f32 %v2911_v41, %v2901_v58  ;;  %v2916_v53 = vmul.f32 %v2911_v41, %v2902_v3 }
0x1048   :  { %4815 = vpow2.f32 %v2937_v61 }
0x1049   :  { %v6111_v10 = vadd.f32 %v2925_v2, %v2915_v49  ;;  %v6113_v8 = vadd.f32 %v2925_v2, %v2916_v53 }
0x104b   :  { %v2933_v17 = vmul.f32 -1.702, %v6111_v10  ;;  %v2934_v11 = vmul.f32 -1.702, %v6113_v8 }
0x104d   :  { %v4814_v52 = vpop.eup %4813  ;;  %v2939_v32 = vmul.f32 1.442695, %v2933_v17  ;;  %v2941_v6 = vmul.f32 1.442695, %v2934_v11 }
0x104e   :  { %v4816_v47 = vpop.eup %4815  ;;  %v2943_v26 = vadd.f32 1.0, %v4814_v52  ;;  %v2794_v52 = vld [vmem:[%s6621_s2 + $0x258] sm:$0xff] }
0x104f   :  { %v2944_v22 = vadd.f32 1.0, %v4816_v47  ;;  %4817 = vpow2.f32 %v2939_v32 }
0x1050   :  { %4819 = vrcp.f32 %v2943_v26  ;;  %v2956_v14 = vand.u32 2147483647, %v2943_v26  ;;  %v2958_v15 = vand.u32 2147483648, %v2943_v26  ;;  %vm2952_vm9 = vweird.f32 %v2943_v26 }
0x1051   :  { %4821 = vrcp.f32 %v2944_v22  ;;  %v2973_v1 = vand.u32 2147483648, %v2944_v22  ;;  %v2971_v0 = vand.u32 2147483647, %v2944_v22  ;;  %vm2967_vm8 = vweird.f32 %v2944_v22 }
0x1052   :  { %4823 = vpow2.f32 %v2941_v6  ;;  %v2959_v40 = vor.u32 1.1754944e-38, %v2958_v15  ;;  %vm2957_vm6 = vcmp.eq.f32.partialorder %v2956_v14, 8.507059e+37  ;;  %v2796_v6 = vld [vmem:[%s6621_s2 + $0x268] sm:$0xff] }
0x1053   :  { %v2974_v42 = vor.u32 1.1754944e-38, %v2973_v1  ;;  %vm2972_vm12 = vcmp.eq.f32.partialorder %v2971_v0, 8.507059e+37 }
0x1055   :  { %v4818_v31 = vpop.eup %4817 }
0x1056   :  { %v4820_v43 = vpop.eup %4819  ;;  %v2945_v19 = vadd.f32 1.0, %v4818_v31 }
0x1057   :  { %v4822_v33 = vpop.eup %4821  ;;  %v2948_v13 = vmul.f32 %v4820_v43, %v2943_v26  ;;  %vm2953_vm14 = vweird.f32 %v4820_v43  ;;  %v2793_v26 = vld [vmem:[%s6621_s2 + $0x250] sm:$0xff] }
0x1058   :  { %v4824_v34 = vpop.eup %4823  ;;  %v2963_v63 = vmul.f32 %v4822_v33, %v2944_v22  ;;  %4825 = vrcp.f32 %v2945_v19  ;;  %vm2968_vm15 = vweird.f32 %v4822_v33  ;;  %vm2954_vm10 = vmor %vm2952_vm9, %vm2953_vm14  ;;  %v2988_v51 = vand.u32 2147483648, %v2945_v19  ;;  %v2798_v22 = vld [vmem:[%s6621_s2 + $0x278] sm:$0xff] }
0x1059   :  { %v2949_v5 = vsub.f32 1.0, %v2948_v13  ;;  %v2946_v16 = vadd.f32 1.0, %v4824_v34  ;;  %vm2969_vm3 = vmor %vm2967_vm8, %vm2968_vm15  ;;  %v2986_v36 = vand.u32 2147483647, %v2945_v19  ;;  %vm2982_vm1 = vweird.f32 %v2945_v19 }
0x105a   :  { %v2964_v29 = vsub.f32 1.0, %v2963_v63  ;;  %vm6795_vm8 = vcmask 1031168  }
0x105b   :  { %v2950_v50 = vmul.f32 %v4820_v43, %v2949_v5  ;;  %4827 = vrcp.f32 %v2946_v16  ;;  %v3003_v61 = vand.u32 2147483648, %v2946_v16  ;;  %v3001_v3 = vand.u32 2147483647, %v2946_v16 }
0x105c   :  { %v2965_v9 = vmul.f32 %v4822_v33, %v2964_v29  ;;  %vm2987_vm14 = vcmp.eq.f32.partialorder %v2986_v36, 8.507059e+37  ;;  %vm2997_vm15 = vweird.f32 %v2946_v16 }
0x105d   :  { %v2951_v21 = vadd.f32 %v4820_v43, %v2950_v50  ;;  %v3004_v53 = vor.u32 1.1754944e-38, %v3003_v61 }
0x105e   :  { %v4826_v38 = vpop.eup %4825  ;;  %v2966_v35 = vadd.f32 %v4822_v33, %v2965_v9 }
0x105f   :  { %v2955_v7 = vsel %vm2954_vm10, %v4820_v43, %v2951_v21  ;;  %v2978_v27 = vmul.f32 %v4826_v38, %v2945_v19  ;;  %vm2983_vm0 = vweird.f32 %v4826_v38  ;;  %vm3002_vm10 = vcmp.eq.f32.partialorder %v3001_v3, 8.507059e+37 }
0x1060   :  { %v2960_v39 = vsel %vm2957_vm6, %v2959_v40, %v2955_v7  ;;  %v2970_v20 = vsel %vm2969_vm3, %v4822_v33, %v2966_v35  ;;  %vm2984_vm4 = vmor %vm2982_vm1, %vm2983_vm0  ;;  %vm6799_vm0 = vnez %v6714_v57  ;;  %vm6800_vm1 = vnez %v6716_v23 }
0x1061   :  { %v4828_v62 = vpop.eup %4827  ;;  %v6118_v44 = vmul.f32 %v2960_v39, %v6103_v24  ;;  %v2975_v37 = vsel %vm2972_vm12, %v2974_v42, %v2970_v20  ;;  %v2979_v60 = vsub.f32 1.0, %v2978_v27  ;;  %v2989_v24 = vor.u32 1.1754944e-38, %v2988_v51  ;;  %vm6796_vm6 = vmmov %vm6795_vm8  ;;  %v4298_v20 = vld [vmem:[%s6622_s3 + $0x88] sm:$0xff] }
0x1062   :  { %v6121_v25 = vmul.f32 %v2975_v37, %v6105_v46  ;;  %v2993_v56 = vmul.f32 %v4828_v62, %v2946_v16  ;;  %vm2998_vm5 = vweird.f32 %v4828_v62  ;;  %vm6797_vm3 = vmmov %vm6796_vm6 }
0x1063   :  { %v2980_v45 = vmul.f32 %v4826_v38, %v2979_v60  ;;  %vm2999_vm9 = vmor %vm2997_vm15, %vm2998_vm5 }
0x1064   :  { %v2994_v48 = vsub.f32 1.0, %v2993_v56  ;;  %v4591_v30 = vpack.i.bf16 %v6121_v25, %v6118_v44  ;;  %vm6798_vm12 = vmmov %vm6797_vm3 }
0x1065   :  { %v2981_v59 = vadd.f32 %v4826_v38, %v2980_v45 }
0x1066   :  { %v2995_v58 = vmul.f32 %v4828_v62, %v2994_v48  ;;  %4592 = vrot.lane.b32.xlu2 %v4591_v30, %s4960_s21  ;;  %4582 = vrot.lane.b32.xlu0 %v4591_v30, %s4961_s22 }
0x1067   :  { %v2985_v46 = vsel %vm2984_vm4, %v4826_v38, %v2981_v59  ;;  %vm6801_vm4 = vcmask 15360  }
0x1068   :  { %v2990_v41 = vsel %vm2987_vm14, %v2989_v24, %v2985_v46  ;;  %v2996_v49 = vadd.f32 %v4828_v62, %v2995_v58  ;;  %vm6802_vm5 = vmmov %vm6801_vm4 }
0x1069   :  { %v6128_v2 = vmul.f32 %v2990_v41, %v6111_v10  ;;  %v2797_v10 = vld [vmem:[%s6621_s2 + $0x270] sm:$0xff]  ;;  %vm6803_vm14 = vmmov %vm6801_vm4 }
0x106a   :  { %v3000_v17 = vsel %vm2999_vm9, %v4828_v62, %v2996_v49  ;;  %vm6804_vm15 = vmmov %vm6801_vm4  ;;  %vm6805_vm9 = vnez %v6718_v54 }
0x106b   :  { %v3005_v11 = vsel %vm3002_vm10, %v3004_v53, %v3000_v17  ;;  %v3057_v40 = vpack.c.bf16 %v6128_v2, %v6118_v44  ;;  %vm6806_vm10 = vnez %v6720_v55 }
0x106c   :  { %v6134_v32 = vmul.f32 %v3005_v11, %v6113_v8  ;;  %v2795_v8 = vld [vmem:[%s6621_s2 + $0x260] sm:$0xff] }
0x106e   :  { %v4586_v47 = vpack.i.bf16 %v6134_v32, %v6128_v2  ;;  %3068 = vperm.xlu2 %4340, %v2794_v52   ;;  %v3058_v35 = vpack.c.bf16 %v6134_v32, %v6121_v25 }
0x1070   :  { %4587 = vrot.lane.b32.xlu1 %v4586_v47, %s4961_s22  ;;  %4597 = vrot.lane.b32.xlu0 %v4586_v47, %s4960_s21 }
0x1076   :  { %3127 = vperm.xlu2 %4340, %v2797_v10  }
0x1078   :  { %3063 = vperm.xlu1 %4319, %v2793_v26   ;;  %3113 = vperm.xlu0 %4318, %v2795_v8  }
0x1080   :  { %3118 = vperm.xlu1 %4319, %v2796_v6   ;;  %3132 = vperm.xlu0 %4318, %v2798_v22  }
0x10c0   :  { %v4593_v29 = vpop.permute.xlu2 %4592 }
0x10c1   :  { %v4595_v21 = vunpack.i.h.bf16 %v4593_v29  ;;  %v4594_v38 = vunpack.i.l.bf16 %v4593_v29 }
0x10c3   :  { %v3023_v57 = vsel %vm6803_vm14, %v4594_v38, %v4595_v21  ;;  %v3029_v27 = vsel %vm6804_vm15, 0.0, %v4594_v38 }
0x10c8   :  { %v3069_v62 = vpop.permute.xlu2 %3068 }
0x10d0   :  { %v3128_v61 = vpop.permute.xlu2 %3127 }
0x10d8   :  { %v4583_v31 = vpop.permute.xlu0 %4582 }
0x10d9   :  { %v4585_v43 = vunpack.i.h.bf16 %v4583_v31  ;;  %v4584_v19 = vunpack.i.l.bf16 %v4583_v31 }
0x10db   :  { %v3045_v5 = vsel %vm6795_vm8, %v4585_v43, 0.0  ;;  %v3039_v16 = vsel %vm6796_vm6, %v4584_v19, %v4585_v43  ;;  %vm6807_vm8 = vcmask 392192  }
0x10dc   :  { %vm6808_vm6 = vmmov %vm6807_vm8 }
0x10e2   :  { %v4588_v33 = vpop.permute.xlu1 %4587  ;;  %v4598_v63 = vpop.permute.xlu0 %4597 }
0x10e3   :  { %v4590_v13 = vunpack.i.h.bf16 %v4588_v33  ;;  %v4589_v34 = vunpack.i.l.bf16 %v4588_v33  ;;  %v4600_v9 = vunpack.i.h.bf16 %v4598_v63  ;;  %v4599_v0 = vunpack.i.l.bf16 %v4598_v63 }
0x10e5   :  { %v3046_v14 = vsel %vm6797_vm3, %v4590_v13, 0.0  ;;  %v3040_v15 = vsel %vm6798_vm12, %v4589_v34, %v4590_v13  ;;  %v3024_v7 = vsel %vm6801_vm4, %v4599_v0, %v4600_v9  ;;  %v3030_v42 = vsel %vm6802_vm5, 0.0, %v4599_v0 }
0x10e6   :  { %v4218_v50 = vpack.c.bf16 %v3040_v15, %v3039_v16  ;;  %v4225_v1 = vpack.c.bf16 %v3046_v14, %v3045_v5  ;;  %v4221_v23 = vpack.c.bf16 %v3030_v42, %v3029_v27  ;;  %v4228_v39 = vpack.c.bf16 %v3024_v7, %v3023_v57 }
0x10e8   :  { %4219 = vmatpush.bf16.msk.msra.mxu0 %vm6799_vm0, %v4218_v50  ;;  %4226 = vmatpush.bf16.msk.msra.mxu1 %vm6800_vm1, %v4225_v1 }
0x10ea   :  { %v3064_v37 = vpop.permute.xlu1 %3063  ;;  %v3114_v30 = vpop.permute.xlu0 %3113 }
0x10ec   :  { %3085 = vmatpush.bf16.msra.mxu0 %v3057_v40  ;;  %3099 = vmatpush.bf16.msra.mxu1 %v3058_v35 }
0x10f0   :  { %4222 = vmatpush.bf16.msk.msra.mxu0 %vm6805_vm9, %v4221_v23  ;;  %4229 = vmatpush.bf16.msk.msra.mxu1 %vm6806_vm10, %v4228_v39 }
0x10f2   :  { %v3119_v52 = vpop.permute.xlu1 %3118  ;;  %v3133_v26 = vpop.permute.xlu0 %3132 }
0x10f3   :  { %4223 = vmatmul.msk.bf16.vlgmr.msra.gmra.mxu0 %vm6807_vm8, %v4298_v20  ;;  %4230 = vmatmul.msk.bf16.vlgmr.msra.gmra.mxu1 %vm6808_vm6, %v4298_v20 }
0x1170   :  { %v3088_v60 = vpop.f32.mrf.mxu0  ;;  %v3102_v51 = vpop.f32.mrf.mxu1 }
0x1171   :  { %v3089_v56 = vadd.f32 %v3088_v60, %v3064_v37  ;;  %v3103_v45 = vadd.f32 %v3102_v51, %v3064_v37 }
0x1173   :  { %v3107_v36 = vadd.f32 %v3089_v56, %v6118_v44  ;;  %v3108_v48 = vadd.f32 %v3103_v45, %v6121_v25 }
0x1175   :  { %v3121_v54 = vmul.f32 %v3114_v30, %v3107_v36  ;;  %v3122_v59 = vmul.f32 %v3114_v30, %v3108_v48 }
0x1177   :  { %v6182_v55 = vadd.f32 %v3128_v61, %v3121_v54  ;;  %v6184_v24 = vadd.f32 %v3128_v61, %v3122_v59 }
0x1178   :  { %v3090_v58 = vpop.f32.mrf.mxu0  ;;  %v3104_v3 = vpop.f32.mrf.mxu1 }
0x1179   :  { %v3139_v46 = vmul.f32 -1.702, %v6182_v55  ;;  %v3140_v41 = vmul.f32 -1.702, %v6184_v24  ;;  %v3091_v49 = vadd.f32 %v3090_v58, %v3069_v62  ;;  %v3105_v53 = vadd.f32 %v3104_v3, %v3069_v62 }
0x117b   :  { %v3143_v17 = vmul.f32 1.442695, %v3139_v46  ;;  %v3145_v44 = vmul.f32 1.442695, %v3140_v41  ;;  %v3109_v25 = vadd.f32 %v3091_v49, %v6128_v2  ;;  %v3110_v11 = vadd.f32 %v3105_v53, %v6134_v32 }
0x117d   :  { %4829 = vpow2.f32 %v3143_v17  ;;  %v3123_v47 = vmul.f32 %v3119_v52, %v3109_v25  ;;  %v3124_v10 = vmul.f32 %v3119_v52, %v3110_v11 }
0x117e   :  { %4831 = vpow2.f32 %v3145_v44 }
0x117f   :  { %v6190_v8 = vadd.f32 %v3133_v26, %v3123_v47  ;;  %v6192_v6 = vadd.f32 %v3133_v26, %v3124_v10  ;;  %v2802_v10 = vld [vmem:[%s6621_s2 + $0x298] sm:$0xff] }
0x1181   :  { %v3141_v22 = vmul.f32 -1.702, %v6190_v8  ;;  %v3142_v31 = vmul.f32 -1.702, %v6192_v6 }
0x1183   :  { %v4830_v43 = vpop.eup %4829  ;;  %v3147_v19 = vmul.f32 1.442695, %v3141_v22  ;;  %v3149_v13 = vmul.f32 1.442695, %v3142_v31 }
0x1184   :  { %v4832_v33 = vpop.eup %4831  ;;  %v3151_v2 = vadd.f32 1.0, %v4830_v43 }
0x1185   :  { %v3152_v32 = vadd.f32 1.0, %v4832_v33  ;;  %4833 = vpow2.f32 %v3147_v19  ;;  %v2801_v19 = vld [vmem:[%s6621_s2 + $0x290] sm:$0xff]  ;;  %v3424_v33 = vld [vmem:[%s6621_s2 + $0x2a8] sm:$0xff] }
0x1186   :  { %4835 = vrcp.f32 %v3151_v2  ;;  %v3164_v9 = vand.u32 2147483647, %v3151_v2  ;;  %v3166_v0 = vand.u32 2147483648, %v3151_v2  ;;  %vm3160_vm0 = vweird.f32 %v3151_v2 }
0x1187   :  { %4837 = vrcp.f32 %v3152_v32  ;;  %v3181_v40 = vand.u32 2147483648, %v3152_v32  ;;  %v3179_v7 = vand.u32 2147483647, %v3152_v32  ;;  %vm3175_vm4 = vweird.f32 %v3152_v32 }
0x1188   :  { %4839 = vpow2.f32 %v3149_v13  ;;  %v3167_v27 = vor.u32 1.1754944e-38, %v3166_v0  ;;  %vm3165_vm5 = vcmp.eq.f32.partialorder %v3164_v9, 8.507059e+37  ;;  %v3426_v13 = vld [vmem:[%s6621_s2 + $0x2b8] sm:$0xff] }
0x1189   :  { %v3182_v20 = vor.u32 1.1754944e-38, %v3181_v40  ;;  %vm3180_vm15 = vcmp.eq.f32.partialorder %v3179_v7, 8.507059e+37 }
0x118b   :  { %v4834_v34 = vpop.eup %4833 }
0x118c   :  { %v4836_v63 = vpop.eup %4835  ;;  %v3153_v5 = vadd.f32 1.0, %v4834_v34  ;;  %v3423_v34 = vld [vmem:[%s6621_s2 + $0x2a0] sm:$0xff] }
0x118d   :  { %v4838_v16 = vpop.eup %4837  ;;  %v3156_v14 = vmul.f32 %v4836_v63, %v3151_v2  ;;  %vm3161_vm3 = vweird.f32 %v4836_v63  ;;  %v2800_v2 = vld [vmem:[%s6621_s2 + $0x288] sm:$0xff] }
0x118e   :  { %v4840_v15 = vpop.eup %4839  ;;  %4841 = vrcp.f32 %v3153_v5  ;;  %v3171_v29 = vmul.f32 %v4838_v16, %v3152_v32  ;;  %vm3176_vm12 = vweird.f32 %v4838_v16  ;;  %vm3162_vm1 = vmor %vm3160_vm0, %vm3161_vm3  ;;  %v3196_v30 = vand.u32 2147483648, %v3153_v5  ;;  %v3429_v32 = vld [vmem:[%s6621_s2 + $0x2d0] sm:$0xff] }
0x118f   :  { %v3154_v50 = vadd.f32 1.0, %v4840_v15  ;;  %v3157_v1 = vsub.f32 1.0, %v3156_v14  ;;  %vm3177_vm14 = vmor %vm3175_vm4, %vm3176_vm12  ;;  %v3194_v61 = vand.u32 2147483647, %v3153_v5  ;;  %vm3190_vm10 = vweird.f32 %v3153_v5 }
0x1190   :  { %v3172_v21 = vsub.f32 1.0, %v3171_v29  ;;  %vm6809_vm4 = vcmask 1039360  }
0x1191   :  { %4843 = vrcp.f32 %v3154_v50  ;;  %v3158_v38 = vmul.f32 %v4836_v63, %v3157_v1  ;;  %v3211_v41 = vand.u32 2147483648, %v3154_v50  ;;  %v3209_v49 = vand.u32 2147483647, %v3154_v50 }
0x1192   :  { %v3173_v35 = vmul.f32 %v4838_v16, %v3172_v21  ;;  %vm3195_vm3 = vcmp.eq.f32.partialorder %v3194_v61, 8.507059e+37  ;;  %vm3205_vm12 = vweird.f32 %v3154_v50 }
0x1193   :  { %v3159_v42 = vadd.f32 %v4836_v63, %v3158_v38  ;;  %v3212_v25 = vor.u32 1.1754944e-38, %v3211_v41 }
0x1194   :  { %v4842_v57 = vpop.eup %4841  ;;  %v3174_v23 = vadd.f32 %v4838_v16, %v3173_v35 }
0x1195   :  { %v3163_v39 = vsel %vm3162_vm1, %v4836_v63, %v3159_v42  ;;  %v3186_v62 = vmul.f32 %v4842_v57, %v3153_v5  ;;  %vm3191_vm9 = vweird.f32 %v4842_v57  ;;  %vm3210_vm1 = vcmp.eq.f32.partialorder %v3209_v49, 8.507059e+37  ;;  %v3427_v63 = vld [vmem:[%s6621_s2 + $0x2c0] sm:$0xff]  ;;  %v3428_v5 = vld [vmem:[%s6621_s2 + $0x2c8] sm:$0xff] }
0x1196   :  { %v3168_v37 = vsel %vm3165_vm5, %v3167_v27, %v3163_v39  ;;  %v3178_v60 = vsel %vm3177_vm14, %v4838_v16, %v3174_v23  ;;  %vm3192_vm8 = vmor %vm3190_vm10, %vm3191_vm9  ;;  %v3430_v16 = vld [vmem:[%s6621_s2 + $0x2d8] sm:$0xff]  ;;  %vm6813_vm9 = vcmask 7168  }
0x1197   :  { %v4844_v51 = vpop.eup %4843  ;;  %v3183_v56 = vsel %vm3180_vm15, %v3182_v20, %v3178_v60  ;;  %v6197_v45 = vmul.f32 %v3168_v37, %v6182_v55  ;;  %v3187_v36 = vsub.f32 1.0, %v3186_v62  ;;  %v3197_v55 = vor.u32 1.1754944e-38, %v3196_v30  ;;  %vm6810_vm5 = vmmov %vm6809_vm4 }
0x1198   :  { %v6200_v48 = vmul.f32 %v3183_v56, %v6184_v24  ;;  %v3201_v54 = vmul.f32 %v4844_v51, %v3154_v50  ;;  %vm3206_vm6 = vweird.f32 %v4844_v51  ;;  %vm6811_vm14 = vmmov %vm6809_vm4 }
0x1199   :  { %v3188_v59 = vmul.f32 %v4842_v57, %v3187_v36  ;;  %vm3207_vm0 = vmor %vm3205_vm12, %vm3206_vm6 }
0x119a   :  { %v4611_v58 = vpack.i.bf16 %v6200_v48, %v6197_v45  ;;  %v3202_v3 = vsub.f32 1.0, %v3201_v54  ;;  %vm6812_vm15 = vmmov %vm6809_vm4 }
0x119b   :  { %v3189_v46 = vadd.f32 %v4842_v57, %v3188_v59  ;;  %vm6814_vm10 = vmmov %vm6813_vm9 }
0x119c   :  { %4612 = vrot.lane.b32.xlu0 %v4611_v58, %s4956_s23  ;;  %4602 = vrot.lane.b32.xlu1 %v4611_v58, %s4957_s24  ;;  %v3203_v24 = vmul.f32 %v4844_v51, %v3202_v3 }
0x119d   :  { %v3193_v53 = vsel %vm3192_vm8, %v4842_v57, %v3189_v46  ;;  %vm6815_vm8 = vmmov %vm6813_vm9 }
0x119e   :  { %v3198_v17 = vsel %vm3195_vm3, %v3197_v55, %v3193_v53  ;;  %v3204_v44 = vadd.f32 %v4844_v51, %v3203_v24  ;;  %vm6816_vm6 = vmmov %vm6815_vm8 }
0x119f   :  { %v3217_v11 = vmul.f32 %v3198_v17, %v6190_v8  ;;  %v3425_v8 = vld [vmem:[%s6621_s2 + $0x2b0] sm:$0xff] }
0x11a0   :  { %v3208_v52 = vsel %vm3207_vm0, %v4844_v51, %v3204_v44 }
0x11a1   :  { %v3213_v47 = vsel %vm3210_vm1, %v3212_v25, %v3208_v52  ;;  %v3265_v26 = vpack.c.bf16 %v3217_v11, %v6197_v45  ;;  %v4300_v45 = vld [vmem:[%s6622_s3 + $0x98] sm:$0xff] }
0x11a2   :  { %v3218_v22 = vmul.f32 %v3213_v47, %v6192_v6  ;;  %v2799_v6 = vld [vmem:[%s6621_s2 + $0x280] sm:$0xff] }
0x11a4   :  { %v4606_v31 = vpack.i.bf16 %v3218_v22, %v3217_v11  ;;  %3286 = vperm.xlu0 %4318, %v2802_v10   ;;  %v3266_v43 = vpack.c.bf16 %v3218_v22, %v6200_v48 }
0x11a6   :  { %4607 = vrot.lane.b32.xlu2 %v4606_v31, %s4957_s24  ;;  %4617 = vrot.lane.b32.xlu1 %v4606_v31, %s4956_s23  ;;  %s3929_s24 = sshll.u32 %s6625_s6, 4  ;;  %s3930_s24 = int_to_ptr.hbm [resolvable:$true] %s3929_s24 }
0x11ac   :  { %3449 = vperm.xlu0 %4318, %v3425_v8  }
0x11ae   :  { %3281 = vperm.xlu2 %4340, %v2801_v19   ;;  %3271 = vperm.xlu1 %4319, %v2799_v6  }
0x11b4   :  { %3444 = vperm.xlu0 %4318, %v3424_v33  }
0x11b6   :  { %3276 = vperm.xlu2 %4340, %v2800_v2   ;;  %3454 = vperm.xlu1 %4319, %v3426_v13  }
0x11bc   :  { %3691 = vperm.xlu0 %4318, %v3429_v32  }
0x11be   :  { %3439 = vperm.xlu2 %4340, %v3423_v34   ;;  %3681 = vperm.xlu1 %4319, %v3427_v63  }
0x11c6   :  { %3686 = vperm.xlu2 %4340, %v3428_v5   ;;  %3696 = vperm.xlu1 %4319, %v3430_v16  }
0x1200   :  { %v4608_v14 = vpop.permute.xlu2 %4607 }
0x1201   :  { %v4610_v15 = vunpack.i.h.bf16 %v4608_v14  ;;  %v4609_v29 = vunpack.i.l.bf16 %v4608_v14 }
0x1203   :  { %v3254_v0 = vsel %vm6809_vm4, %v4610_v15, 0.0  ;;  %v3248_v21 = vsel %vm6810_vm5, %v4609_v29, %v4610_v15 }
0x1208   :  { %v3282_v18 = vpop.permute.xlu2 %3281 }
0x120e   :  { %v4603_v50 = vpop.permute.xlu1 %4602  ;;  %v4613_v42 = vpop.permute.xlu0 %4612 }
0x120f   :  { %v4605_v1 = vunpack.i.h.bf16 %v4603_v50  ;;  %v4604_v9 = vunpack.i.l.bf16 %v4603_v50  ;;  %v4615_v57 = vunpack.i.h.bf16 %v4613_v42  ;;  %v4614_v27 = vunpack.i.l.bf16 %v4613_v42 }
0x1211   :  { %v3253_v38 = vsel %vm6811_vm14, %v4605_v1, 0.0  ;;  %v3247_v40 = vsel %vm6812_vm15, %v4604_v9, %v4605_v1  ;;  %v3231_v62 = vsel %vm6813_vm9, %v4614_v27, %v4615_v57  ;;  %v3237_v37 = vsel %vm6814_vm10, 0.0, %v4614_v27 }
0x1212   :  { %v4248_v35 = vpack.c.bf16 %v3254_v0, %v3253_v38  ;;  %v4240_v7 = vpack.c.bf16 %v3248_v21, %v3247_v40 }
0x1214   :  { %4241 = vmatpush.bf16.msk.msra.mxu2 %vm5260_vm7, %v4240_v7  ;;  %4249 = vmatpush.bf16.msk.msra.mxu3 %vm5268_vm11, %v4248_v35  ;;  %vm6817_vm7 = vcmask 392192  }
0x1215   :  { %vm6818_vm11 = vmmov %vm6817_vm7 }
0x1216   :  { %vm6819_vm3 = vmmov %vm6817_vm7  ;;  %v3287_v24 = vpop.permute.xlu0 %3286 }
0x1217   :  { %vm6820_vm12 = vmmov %vm6819_vm3 }
0x1218   :  { %v4618_v23 = vpop.permute.xlu1 %4617  ;;  %3311 = vmatpush.bf16.msra.mxu2 %v3265_v26  ;;  %3330 = vmatpush.bf16.msra.mxu3 %v3266_v43 }
0x1219   :  { %v4620_v39 = vunpack.i.h.bf16 %v4618_v23  ;;  %v4619_v20 = vunpack.i.l.bf16 %v4618_v23 }
0x121b   :  { %v3232_v60 = vsel %vm6815_vm8, %v4619_v20, %v4620_v39  ;;  %v3238_v51 = vsel %vm6816_vm6, 0.0, %v4619_v20 }
0x121c   :  { %v4243_v4 = vpack.c.bf16 %v3238_v51, %v3237_v37  ;;  %v4251_v56 = vpack.c.bf16 %v3232_v60, %v3231_v62 }
0x121e   :  { %4244 = vmatpush.bf16.msk.msra.mxu2 %vm5280_vm13, %v4243_v4  ;;  %4252 = vmatpush.bf16.msk.msra.mxu3 %vm5286_vm2, %v4251_v56 }
0x1220   :  { %v3272_v15 = vpop.permute.xlu1 %3271 }
0x1221   :  { %4245 = vmatmul.msk.bf16.vlgmr.msra.gmra.mxu2 %vm6817_vm7, %v4299_v12  ;;  %4253 = vmatmul.msk.bf16.vlgmr.msra.gmra.mxu3 %vm6818_vm11, %v4299_v12 }
0x1231   :  { %4246 = vmatmul.msk.bf16.gmra.mxu2 %vm6819_vm3, %v4300_v45  ;;  %4254 = vmatmul.msk.bf16.gmra.mxu3 %vm6820_vm12, %v4300_v45  ;;  %v3277_v45 = vpop.permute.xlu2 %3276 }
0x12a4   :  { %v3314_v36 = vpop.f32.mrf.mxu2  ;;  %v6274_v48 = vpop.f32.mrf.mxu3 }
0x12a5   :  { %v3315_v1 = vadd.f32 %v3314_v36, %v3272_v15 }
0x12ac   :  { %v6276_v28 = vpop.f32.mrf.mxu2  ;;  %v6278_v30 = vpop.f32.mrf.mxu3 }
0x12b4   :  { %v3319_v54 = vpop.f32.mrf.mxu2  ;;  %v3338_v59 = vpop.f32.mrf.mxu3 }
0x12b5   :  { %v3320_v61 = vadd.f32 %v3319_v54, %v3282_v18  ;;  %v3339_v58 = vadd.f32 %v3338_v59, %v3282_v18  ;;  %v3317_v59 = vadd.f32 %v6276_v28, %v3277_v45 }
0x12b7   :  { %v3343_v3 = vsub.f32 0.0, %v3320_v61  ;;  %v3344_v46 = vsub.f32 0.0, %v3339_v58 }
0x12b9   :  { %v3347_v41 = vmul.f32 1.442695, %v3343_v3  ;;  %v3349_v55 = vmul.f32 1.442695, %v3344_v46 }
0x12bb   :  { %4845 = vpow2.f32 %v3347_v41 }
0x12bc   :  { %4847 = vpow2.f32 %v3349_v55  ;;  %v3321_v49 = vpop.f32.mrf.mxu2  ;;  %v3340_v53 = vpop.f32.mrf.mxu3 }
0x12bd   :  { %v3322_v17 = vadd.f32 %v3321_v49, %v3287_v24  ;;  %v3341_v44 = vadd.f32 %v3340_v53, %v3287_v24  ;;  %v3334_v53 = vadd.f32 %v6274_v48, %v3272_v15  ;;  %v4302_v48 = vld [vmem:[%s6623_s4 + $0x8] sm:$0xff] }
0x12bf   :  { %v3345_v25 = vsub.f32 0.0, %v3322_v17  ;;  %v3346_v11 = vsub.f32 0.0, %v3341_v44  ;;  %v3336_v17 = vadd.f32 %v6278_v30, %v3277_v45  ;;  %v3450_v30 = vpop.permute.xlu0 %3449 }
0x12c1   :  { %v4846_v52 = vpop.eup %4845  ;;  %v3351_v47 = vmul.f32 1.442695, %v3345_v25  ;;  %v3353_v22 = vmul.f32 1.442695, %v3346_v11 }
0x12c2   :  { %v4848_v10 = vpop.eup %4847  ;;  %v3355_v26 = vadd.f32 1.0, %v4846_v52 }
0x12c3   :  { %v6280_v31 = vadd.f32 1.0, %v4848_v10  ;;  %4849 = vpow2.f32 %v3351_v47  ;;  %v4301_v47 = vld [vmem:[%s6623_s4] sm:$0xff] }
0x12c4   :  { %4851 = vrcp.f32 %v3355_v26  ;;  %vm3364_vm2 = vweird.f32 %v3355_v26  ;;  %v3368_v9 = vand.u32 2147483647, %v3355_v26  ;;  %v3370_v0 = vand.u32 2147483648, %v3355_v26 }
0x12c5   :  { %4853 = vrcp.f32 %v6280_v31  ;;  %vm3379_vm0 = vweird.f32 %v6280_v31  ;;  %v3383_v35 = vand.u32 2147483647, %v6280_v31  ;;  %v3385_v27 = vand.u32 2147483648, %v6280_v31 }
0x12c6   :  { %4855 = vpow2.f32 %v3353_v22  ;;  %vm3369_vm14 = vcmp.eq.f32.partialorder %v3368_v9, 8.507059e+37  ;;  %v3371_v37 = vor.u32 1.1754944e-38, %v3370_v0 }
0x12c7   :  { %v3386_v58 = vor.u32 1.1754944e-38, %v3385_v27  ;;  %vm3384_vm7 = vcmp.eq.f32.partialorder %v3383_v35, 8.507059e+37 }
0x12c9   :  { %v4850_v43 = vpop.eup %4849 }
0x12ca   :  { %v4852_v8 = vpop.eup %4851  ;;  %v3357_v19 = vadd.f32 1.0, %v4850_v43 }
0x12cb   :  { %v4854_v6 = vpop.eup %4853  ;;  %v3360_v33 = vmul.f32 %v4852_v8, %v3355_v26  ;;  %vm3365_vm13 = vweird.f32 %v4852_v8  ;;  %v3440_v26 = vpop.permute.xlu2 %3439 }
0x12cc   :  { %v4856_v2 = vpop.eup %4855  ;;  %v3375_v13 = vmul.f32 %v4854_v6, %v6280_v31  ;;  %4857 = vrcp.f32 %v3357_v19  ;;  %v3400_v40 = vand.u32 2147483648, %v3357_v19  ;;  %vm6286_vm1 = vmor %vm3364_vm2, %vm3365_vm13  ;;  %vm3380_vm4 = vweird.f32 %v4854_v6 }
0x12cd   :  { %v3361_v32 = vsub.f32 1.0, %v3360_v33  ;;  %v3358_v34 = vadd.f32 1.0, %v4856_v2  ;;  %v3398_v20 = vand.u32 2147483647, %v3357_v19  ;;  %vm3394_vm15 = vweird.f32 %v3357_v19  ;;  %vm6295_vm9 = vmor %vm3379_vm0, %vm3380_vm4  ;;  %v3445_v33 = vpop.permute.xlu0 %3444 }
0x12ce   :  { %v3376_v63 = vsub.f32 1.0, %v3375_v13  ;;  %v3401_v51 = vor.u32 1.1754944e-38, %v3400_v40  ;;  %vm6825_vm13 = vcmask 130048  }
0x12cf   :  { %v3362_v5 = vmul.f32 %v4852_v8, %v3361_v32  ;;  %4859 = vrcp.f32 %v3358_v34  ;;  %v3413_v56 = vand.u32 2147483647, %v3358_v34  ;;  %v3415_v12 = vand.u32 2147483648, %v3358_v34  ;;  %vm6826_vm2 = vmmov %vm6825_vm13 }
0x12d0   :  { %v3377_v14 = vmul.f32 %v4854_v6, %v3376_v63  ;;  %vm3399_vm6 = vcmp.eq.f32.partialorder %v3398_v20, 8.507059e+37  ;;  %vm3409_vm11 = vweird.f32 %v3358_v34  ;;  %vm6827_vm0 = vmmov %vm6826_vm2 }
0x12d1   :  { %v3363_v50 = vadd.f32 %v4852_v8, %v3362_v5  ;;  %v3416_v49 = vor.u32 1.1754944e-38, %v3415_v12  ;;  %vm3414_vm12 = vcmp.eq.f32.partialorder %v3413_v56, 8.507059e+37 }
0x12d2   :  { %v4858_v16 = vpop.eup %4857  ;;  %v3378_v57 = vadd.f32 %v4854_v6, %v3377_v14 }
0x12d3   :  { %v3390_v29 = vmul.f32 %v4858_v16, %v3357_v19  ;;  %v3367_v39 = vsel %vm6286_vm1, %v4852_v8, %v3363_v50  ;;  %vm3395_vm5 = vweird.f32 %v4858_v16  ;;  %vm6828_vm1 = vmmov %vm6827_vm0 }
0x12d4   :  { %v3372_v18 = vsel %vm3369_vm14, %v3371_v37, %v3367_v39  ;;  %vm3396_vm10 = vmor %vm3394_vm15, %vm3395_vm5  ;;  %v3382_v54 = vsel %vm6295_vm9, %v4854_v6, %v3378_v57 }
0x12d5   :  { %v4860_v21 = vpop.eup %4859  ;;  %v3391_v38 = vsub.f32 1.0, %v3390_v29  ;;  %v3419_v41 = vmul.f32 %v3372_v18, %v3315_v1  ;;  %v3387_v24 = vsel %vm3384_vm7, %v3386_v58, %v3382_v54 }
0x12d6   :  { %v3405_v7 = vmul.f32 %v4860_v21, %v3358_v34  ;;  %vm3410_vm8 = vweird.f32 %v4860_v21  ;;  %v3420_v11 = vmul.f32 %v3387_v24, %v3334_v53 }
0x12d7   :  { %v3392_v23 = vmul.f32 %v4858_v16, %v3391_v38  ;;  %vm3411_vm3 = vmor %vm3409_vm11, %vm3410_vm8 }
0x12d8   :  { %v3406_v62 = vsub.f32 1.0, %v3405_v7 }
0x12d9   :  { %v3393_v60 = vadd.f32 %v4858_v16, %v3392_v23  ;;  %v3455_v23 = vpop.permute.xlu1 %3454 }
0x12da   :  { %v3407_v36 = vmul.f32 %v4860_v21, %v3406_v62 }
0x12db   :  { %v3397_v61 = vsel %vm3396_vm10, %v4858_v16, %v3393_v60 }
0x12dc   :  { %v3402_v3 = vsel %vm3399_vm6, %v3401_v51, %v3397_v61  ;;  %v3408_v46 = vadd.f32 %v4860_v21, %v3407_v36 }
0x12dd   :  { %v3421_v55 = vmul.f32 %v3402_v3, %v3317_v59 }
0x12de   :  { %v3412_v44 = vsel %vm3411_vm3, %v4860_v21, %v3408_v46 }
0x12df   :  { %v3435_v25 = vpack.c.bf16 %v3421_v55, %v3419_v41  ;;  %v3417_v28 = vsel %vm3414_vm12, %v3416_v49, %v3412_v44 }
0x12e0   :  { %v3422_v52 = vmul.f32 %v3417_v28, %v3336_v17 }
0x12e1   :  { %3480 = vmatpush.bf16.msrb.mxu0 %v3435_v25 }
0x12e2   :  { %v3436_v10 = vpack.c.bf16 %v3422_v52, %v3420_v11 }
0x12e4   :  { %3499 = vmatpush.bf16.msrb.mxu1 %v3436_v10  ;;  %4263 = vmatmul.msk.bf16.vlgmr.msrb.gmra.mxu0 %vm6825_vm13, %v4301_v47 }
0x12e7   :  { %4265 = vmatmul.msk.bf16.vlgmr.msrb.gmra.mxu1 %vm6826_vm2, %v4301_v47 }
0x12f4   :  { %4264 = vmatmul.msk.bf16.gmra.mxu0 %vm6827_vm0, %v4302_v48 }
0x12f7   :  { %4266 = vmatmul.msk.bf16.gmra.mxu1 %vm6828_vm1, %v4302_v48 }
0x1361   :  { %v3482_v22 = vpop.f32.mrf.mxu0 }
0x1362   :  { %v6314_v31 = vadd.f32 %v3482_v22, %v3440_v26 }
0x1364   :  { %v3511_v43 = vmul.f32 -1.702, %v6314_v31  ;;  %v3501_v8 = vpop.f32.mrf.mxu1 }
0x1365   :  { %v6317_v19 = vadd.f32 %v3501_v8, %v3440_v26 }
0x1366   :  { %v3519_v6 = vmul.f32 1.442695, %v3511_v43 }
0x1367   :  { %v3512_v2 = vmul.f32 -1.702, %v6317_v19 }
0x1368   :  { %4861 = vpow2.f32 %v3519_v6 }
0x1369   :  { %v3484_v13 = vpop.f32.mrf.mxu0  ;;  %v3521_v5 = vmul.f32 1.442695, %v3512_v2 }
0x136a   :  { %v6320_v32 = vadd.f32 %v3484_v13, %v3445_v33 }
0x136c   :  { %v3513_v34 = vmul.f32 -1.702, %v6320_v32  ;;  %v3503_v63 = vpop.f32.mrf.mxu1 }
0x136d   :  { %v6323_v16 = vadd.f32 %v3503_v63, %v3445_v33 }
0x136e   :  { %v3523_v14 = vmul.f32 1.442695, %v3513_v34  ;;  %v4862_v29 = vpop.eup %4861 }
0x136f   :  { %v3514_v15 = vmul.f32 -1.702, %v6323_v16  ;;  %v6328_v0 = vadd.f32 1.0, %v4862_v29 }
0x1370   :  { %4863 = vpow2.f32 %v3523_v14 }
0x1371   :  { %4865 = vpow2.f32 %v3521_v5  ;;  %v3487_v50 = vpop.f32.mrf.mxu0  ;;  %v3525_v1 = vmul.f32 1.442695, %v3514_v15  ;;  %v3552_v17 = vand.u32 2147483647, %v6328_v0  ;;  %v3554_v52 = vand.u32 2147483648, %v6328_v0 }
0x1372   :  { %v6326_v9 = vadd.f32 %v3487_v50, %v3450_v30  ;;  %vm3548_vm4 = vweird.f32 %v6328_v0 }
0x1373   :  { %4867 = vpow2.f32 %v3525_v1  ;;  %vm6381_vm14 = vcmp.eq.f32.partialorder %v3552_v17, 8.507059e+37  ;;  %v3555_v13 = vor.u32 1.1754944e-38, %v3554_v52 }
0x1374   :  { %v3506_v21 = vpop.f32.mrf.mxu1  ;;  %v3515_v38 = vmul.f32 -1.702, %v6326_v9  ;;  %4869 = vrcp.f32 %v6328_v0 }
0x1375   :  { %v6331_v40 = vadd.f32 %v3506_v21, %v3450_v30 }
0x1376   :  { %v4864_v35 = vpop.eup %4863  ;;  %v3527_v57 = vmul.f32 1.442695, %v3515_v38 }
0x1377   :  { %v4866_v7 = vpop.eup %4865  ;;  %v6334_v42 = vadd.f32 1.0, %v4864_v35  ;;  %v3516_v27 = vmul.f32 -1.702, %v6331_v40 }
0x1378   :  { %v6337_v20 = vadd.f32 1.0, %v4866_v7  ;;  %4871 = vpow2.f32 %v3527_v57 }
0x1379   :  { %v3489_v39 = vpop.f32.mrf.mxu0  ;;  %v3529_v62 = vmul.f32 1.442695, %v3516_v27  ;;  %v4868_v60 = vpop.eup %4867  ;;  %4873 = vrcp.f32 %v6334_v42  ;;  %v3582_v22 = vand.u32 2147483647, %v6334_v42  ;;  %v3584_v63 = vand.u32 2147483648, %v6334_v42 }
0x137a   :  { %v6339_v37 = vadd.f32 %v3489_v39, %v3455_v23  ;;  %v6343_v56 = vpop.eup %4869  ;;  %v6345_v12 = vadd.f32 1.0, %v4868_v60  ;;  %v3567_v14 = vand.u32 2147483647, %v6337_v20  ;;  %v3569_v15 = vand.u32 2147483648, %v6337_v20 }
0x137b   :  { %4875 = vpow2.f32 %v3529_v62  ;;  %v3544_v59 = vmul.f32 %v6343_v56, %v6328_v0  ;;  %vm3549_vm5 = vweird.f32 %v6343_v56  ;;  %vm3578_vm9 = vweird.f32 %v6334_v42 }
0x137c   :  { %v3517_v51 = vmul.f32 -1.702, %v6339_v37  ;;  %v3508_v4 = vpop.f32.mrf.mxu1  ;;  %4877 = vrcp.f32 %v6337_v20  ;;  %vm6405_vm15 = vmor %vm3548_vm4, %vm3549_vm5  ;;  %vm6411_vm10 = vcmp.eq.f32.partialorder %v3582_v22, 8.507059e+37  ;;  %vm3593_vm7 = vweird.f32 %v6345_v12 }
0x137d   :  { %v6347_v45 = vadd.f32 %v3508_v4, %v3455_v23  ;;  %4879 = vrcp.f32 %v6345_v12  ;;  %v3545_v55 = vsub.f32 1.0, %v3544_v59  ;;  %v3585_v23 = vor.u32 1.1754944e-38, %v3584_v63 }
0x137e   :  { %v3531_v36 = vmul.f32 1.442695, %v3517_v51  ;;  %v4872_v54 = vpop.eup %4871  ;;  %v3597_v60 = vand.u32 2147483647, %v6345_v12  ;;  %v3599_v51 = vand.u32 2147483648, %v6345_v12  ;;  %vm3563_vm3 = vweird.f32 %v6337_v20 }
0x137f   :  { %v3518_v18 = vmul.f32 -1.702, %v6347_v45  ;;  %v6353_v61 = vpop.eup %4873  ;;  %v6356_v58 = vadd.f32 1.0, %v4872_v54  ;;  %v3546_v28 = vmul.f32 %v6343_v56, %v3545_v55 }
0x1380   :  { %4881 = vpow2.f32 %v3531_v36  ;;  %v3574_v49 = vmul.f32 %v6353_v61, %v6334_v42  ;;  %vm3579_vm8 = vweird.f32 %v6353_v61 }
0x1381   :  { %v4876_v3 = vpop.eup %4875  ;;  %4883 = vrcp.f32 %v6356_v58  ;;  %v3533_v46 = vmul.f32 1.442695, %v3518_v18  ;;  %v3547_v8 = vadd.f32 %v6343_v56, %v3546_v28  ;;  %v3612_v0 = vand.u32 2147483647, %v6356_v58  ;;  %vm6443_vm12 = vmor %vm3578_vm9, %vm3579_vm8 }
0x1382   :  { %v6359_v41 = vpop.eup %4877  ;;  %v6361_v24 = vadd.f32 1.0, %v4876_v3  ;;  %v3575_v47 = vsub.f32 1.0, %v3574_v49  ;;  %v3614_v39 = vand.u32 2147483648, %v6356_v58  ;;  %vm3608_vm2 = vweird.f32 %v6356_v58 }
0x1383   :  { %v6366_v53 = vpop.eup %4879  ;;  %v3559_v44 = vmul.f32 %v6359_v41, %v6337_v20  ;;  %v3551_v7 = vsel %vm6405_vm15, %v6343_v56, %v3547_v8  ;;  %vm3564_vm6 = vweird.f32 %v6359_v41  ;;  %vm6450_vm0 = vcmp.eq.f32.partialorder %v3612_v0, 8.507059e+37 }
0x1384   :  { %4885 = vrcp.f32 %v6361_v24  ;;  %v3589_v6 = vmul.f32 %v6366_v53, %v6345_v12  ;;  %v3576_v34 = vmul.f32 %v6353_v61, %v3575_v47  ;;  %v6431_v56 = vsel %vm6381_vm14, %v3555_v13, %v3551_v7 }
0x1385   :  { %4887 = vpow2.f32 %v3533_v46  ;;  %v3560_v26 = vsub.f32 1.0, %v3559_v44  ;;  %vm3594_vm13 = vweird.f32 %v6366_v53  ;;  %v3615_v49 = vor.u32 1.1754944e-38, %v3614_v39  ;;  %v3687_v46 = vpop.permute.xlu2 %3686 }
0x1386   :  { %v4882_v25 = vpop.eup %4881  ;;  %v3590_v57 = vsub.f32 1.0, %v3589_v6  ;;  %v3577_v27 = vadd.f32 %v6353_v61, %v3576_v34  ;;  %vm3623_vm4 = vweird.f32 %v6361_v24  ;;  %vm6468_vm14 = vcmp.eq.f32.partialorder %v3597_v60, 8.507059e+37 }
0x1387   :  { %v6372_v11 = vpop.eup %4883  ;;  %v6378_v48 = vadd.f32 1.0, %v4882_v25  ;;  %v3561_v21 = vmul.f32 %v6359_v41, %v3560_v26  ;;  %v3627_v26 = vand.u32 2147483647, %v6361_v24  ;;  %v3629_v22 = vand.u32 2147483648, %v6361_v24 }
0x1388   :  { %v3604_v10 = vmul.f32 %v6372_v11, %v6356_v58  ;;  %vm3609_vm11 = vweird.f32 %v6372_v11  ;;  %v3591_v3 = vmul.f32 %v6366_v53, %v3590_v57  ;;  %v3581_v55 = vsel %vm6443_vm12, %v6353_v61, %v3577_v27 }
0x1389   :  { %4889 = vrcp.f32 %v6378_v48  ;;  %v6434_v36 = vadd.f32 %v6359_v41, %v3561_v21  ;;  %vm6457_vm1 = vmor %vm3608_vm2, %vm3609_vm11  ;;  %v3642_v44 = vand.u32 2147483647, %v6378_v48  ;;  %v3644_v28 = vand.u32 2147483648, %v6378_v48 }
0x138a   :  { %v6386_v43 = vpop.eup %4885  ;;  %v3605_v33 = vsub.f32 1.0, %v3604_v10  ;;  %v3586_v30 = vsel %vm6411_vm10, %v3585_v23, %v3581_v55  ;;  %vm3638_vm8 = vweird.f32 %v6378_v48  ;;  %vm6492_vm10 = vmor %vm3593_vm7, %vm3594_vm13  ;;  %v3630_v21 = vor.u32 1.1754944e-38, %v3629_v22 }
0x138b   :  { %v4888_v2 = vpop.eup %4887  ;;  %v3619_v5 = vmul.f32 %v6386_v43, %v6361_v24  ;;  %vm3624_vm5 = vweird.f32 %v6386_v43  ;;  %vm3643_vm11 = vcmp.eq.f32.partialorder %v3642_v44, 8.507059e+37  ;;  %v3645_v13 = vor.u32 1.1754944e-38, %v3644_v28  ;;  %vm6506_vm7 = vmor %vm3563_vm3, %vm3564_vm6 }
0x138c   :  { %v3606_v29 = vmul.f32 %v6372_v11, %v3605_v33  ;;  %v6399_v50 = vadd.f32 1.0, %v4888_v2  ;;  %vm6479_vm9 = vmor %vm3623_vm4, %vm3624_vm5  ;;  %v3600_v57 = vor.u32 1.1754944e-38, %v3599_v51  ;;  %v3665_v23 = vmul.f32 %v3586_v30, %v6320_v32 }
0x138d   :  { %v3620_v35 = vsub.f32 1.0, %v3619_v5  ;;  %v3663_v60 = vmul.f32 %v6431_v56, %v6314_v31  ;;  %vm3568_vm3 = vcmp.eq.f32.partialorder %v3567_v14, 8.507059e+37  ;;  %vm3709_vm4 = vcmask 261120  }
0x138e   :  { %4891 = vrcp.f32 %v6399_v50  ;;  %v3607_v4 = vadd.f32 %v6372_v11, %v3606_v29  ;;  %v3657_v34 = vand.u32 2147483647, %v6399_v50  ;;  %v3659_v63 = vand.u32 2147483648, %v6399_v50 }
0x138f   :  { %v4890_v62 = vpop.eup %4889  ;;  %v3621_v18 = vmul.f32 %v6386_v43, %v3620_v35  ;;  %vm3653_vm13 = vweird.f32 %v6399_v50 }
0x1390   :  { %v3634_v54 = vmul.f32 %v4890_v62, %v6378_v48  ;;  %v3611_v58 = vsel %vm6457_vm1, %v6372_v11, %v3607_v4  ;;  %vm3639_vm15 = vweird.f32 %v4890_v62  ;;  %v3592_v11 = vadd.f32 %v6366_v53, %v3591_v3 }
0x1391   :  { %v3622_v52 = vadd.f32 %v6386_v43, %v3621_v18  ;;  %v3616_v2 = vsel %vm6450_vm0, %v3615_v49, %v3611_v58  ;;  %vm3640_vm12 = vmor %vm3638_vm8, %vm3639_vm15  ;;  %vm3628_vm0 = vcmp.eq.f32.partialorder %v3627_v26, 8.507059e+37  ;;  %v3660_v27 = vor.u32 1.1754944e-38, %v3659_v63  ;;  %v4303_v18 = vld [vmem:[%s6624_s5] sm:$0xff] }
0x1392   :  { %v3635_v17 = vsub.f32 1.0, %v3634_v54  ;;  %v3596_v1 = vsel %vm6492_vm10, %v6366_v53, %v3592_v11  ;;  %v3566_v53 = vsel %vm6506_vm7, %v6359_v41, %v6434_v36  ;;  %vm3658_vm6 = vcmp.eq.f32.partialorder %v3657_v34, 8.507059e+37 }
0x1393   :  { %v3626_v48 = vsel %vm6479_vm9, %v6386_v43, %v3622_v52  ;;  %v3667_v43 = vmul.f32 %v3616_v2, %v6326_v9  ;;  %v3570_v9 = vor.u32 1.1754944e-38, %v3569_v15  ;;  %v3675_v15 = vpack.c.bf16 %v3665_v23, %v3663_v60 }
0x1394   :  { %v4892_v25 = vpop.eup %4891  ;;  %v3636_v47 = vmul.f32 %v4890_v62, %v3635_v17  ;;  %v3631_v0 = vsel %vm3628_vm0, %v3630_v21, %v3626_v48 }
0x1395   :  { %v3649_v10 = vmul.f32 %v4892_v25, %v6399_v50  ;;  %vm3654_vm2 = vweird.f32 %v4892_v25  ;;  %v3668_v41 = vmul.f32 %v3631_v0, %v6331_v40  ;;  %v3571_v51 = vsel %vm3568_vm3, %v3570_v9, %v3566_v53  ;;  %v4304_v40 = vld [vmem:[%s6624_s5 + $0x8] sm:$0xff]  ;;  %s4962_s5 = smov [#allocation2]  }
0x1396   :  { %v3637_v6 = vadd.f32 %v4890_v62, %v3636_v47  ;;  %vm3655_vm1 = vmor %vm3653_vm13, %vm3654_vm2  ;;  %v3664_v54 = vmul.f32 %v3571_v51, %v6317_v19  ;;  %v3692_v47 = vpop.permute.xlu0 %3691  ;;  %s3927_s19 = sshll.u32 %s4962_s5, 4  ;;  %s3928_s19 = int_to_ptr.vmem [resolvable:$true] %s3927_s19 }
0x1397   :  { %v3650_v33 = vsub.f32 1.0, %v3649_v10 }
0x1398   :  { %v3641_v5 = vsel %vm3640_vm12, %v4890_v62, %v3637_v6 }
0x1399   :  { %v3651_v29 = vmul.f32 %v4892_v25, %v3650_v33  ;;  %v3646_v38 = vsel %vm3643_vm11, %v3645_v13, %v3641_v5 }
0x139a   :  { %v3669_v35 = vmul.f32 %v3646_v38, %v6339_v37  ;;  %v3601_v37 = vsel %vm6468_vm14, %v3600_v57, %v3596_v1 }
0x139b   :  { %v3652_v7 = vadd.f32 %v4892_v25, %v3651_v29  ;;  %v3666_v4 = vmul.f32 %v3601_v37, %v6323_v16  ;;  %v3682_v16 = vpop.permute.xlu1 %3681 }
0x139c   :  { %v3677_v39 = vpack.c.bf16 %v3669_v35, %v3667_v43 }
0x139d   :  { %v3656_v62 = vsel %vm3655_vm1, %v4892_v25, %v3652_v7  ;;  %v3676_v31 = vpack.c.bf16 %v3666_v4, %v3664_v54 }
0x139e   :  { %v3661_v50 = vsel %vm3658_vm6, %v3660_v27, %v3656_v62  ;;  %3722 = vmatpush.bf16.msrb.mxu2 %v3677_v39 }
0x139f   :  { %v3670_v32 = vmul.f32 %v3661_v50, %v6347_v45 }
0x13a1   :  { %v3678_v36 = vpack.c.bf16 %v3670_v32, %v3668_v41 }
0x13a2   :  { %3723 = vmatpush.bf16.msrb.mxu2 %v3675_v15 }
0x13a3   :  { %3741 = vmatpush.bf16.msrb.mxu3 %v3678_v36  ;;  %v3697_v21 = vpop.permute.xlu1 %3696 }
0x13a5   :  { %4275 = vmatmul.msk.bf16.vlgmr.msrb.gmra.mxu2 %vm3709_vm4, %v4303_v18 }
0x13a7   :  { %3742 = vmatpush.bf16.msrb.mxu3 %v3676_v31 }
0x13aa   :  { %4277 = vmatmul.msk.bf16.vlgmr.msrb.gmra.mxu3 %vm3709_vm4, %v4303_v18 }
0x13b5   :  { %4276 = vmatmul.msk.bf16.gmra.mxu2 %vm3709_vm4, %v4304_v40 }
0x13ba   :  { %4278 = vmatmul.msk.bf16.gmra.mxu3 %vm3709_vm4, %v4304_v40 }
0x1428   :  { %v3725_v20 = vpop.f32.mrf.mxu2 }
0x1429   :  { %v6536_v45 = vadd.f32 %v3725_v20, %v3682_v16 }
0x142b   :  { %v3754_v14 = vmul.f32 -1.702, %v6536_v45 }
0x142d   :  { %v3744_v19 = vpop.f32.mrf.mxu3  ;;  %v3762_v56 = vmul.f32 1.442695, %v3754_v14 }
0x142e   :  { %v6539_v59 = vadd.f32 %v3744_v19, %v3682_v16 }
0x142f   :  { %4893 = vpow2.f32 %v3762_v56 }
0x1430   :  { %v3755_v3 = vmul.f32 -1.702, %v6539_v59  ;;  %v3727_v55 = vpop.f32.mrf.mxu2 }
0x1431   :  { %v6542_v49 = vadd.f32 %v3727_v55, %v3687_v46 }
0x1432   :  { %v3764_v42 = vmul.f32 1.442695, %v3755_v3 }
0x1433   :  { %v3756_v17 = vmul.f32 -1.702, %v6542_v49 }
0x1434   :  { %4895 = vpow2.f32 %v3764_v42 }
0x1435   :  { %v3746_v44 = vpop.f32.mrf.mxu3  ;;  %v4894_v25 = vpop.eup %4893  ;;  %v3766_v58 = vmul.f32 1.442695, %v3756_v17 }
0x1436   :  { %v6545_v28 = vadd.f32 %v3746_v44, %v3687_v46  ;;  %v3778_v61 = vadd.f32 1.0, %v4894_v25 }
0x1437   :  { %4897 = vpow2.f32 %v3766_v58 }
0x1438   :  { %v3757_v52 = vmul.f32 -1.702, %v6545_v28  ;;  %4899 = vrcp.f32 %v3778_v61  ;;  %v3730_v10 = vpop.f32.mrf.mxu2  ;;  %v3795_v5 = vand.u32 2147483647, %v3778_v61  ;;  %v3797_v12 = vand.u32 2147483648, %v3778_v61 }
0x1439   :  { %v6548_v26 = vadd.f32 %v3730_v10, %v3692_v47  ;;  %vm3791_vm14 = vweird.f32 %v3778_v61 }
0x143a   :  { %v4896_v30 = vpop.eup %4895  ;;  %v3768_v11 = vmul.f32 1.442695, %v3757_v52  ;;  %vm6561_vm15 = vcmp.eq.f32.partialorder %v3795_v5, 8.507059e+37  ;;  %v3798_v37 = vor.u32 1.1754944e-38, %v3797_v12 }
0x143b   :  { %v3779_v22 = vadd.f32 1.0, %v4896_v30  ;;  %v3758_v8 = vmul.f32 -1.702, %v6548_v26 }
0x143c   :  { %4901 = vpow2.f32 %v3768_v11 }
0x143d   :  { %4903 = vrcp.f32 %v3779_v22  ;;  %v3749_v6 = vpop.f32.mrf.mxu3  ;;  %v4898_v33 = vpop.eup %4897  ;;  %v3770_v2 = vmul.f32 1.442695, %v3758_v8  ;;  %v3810_v23 = vand.u32 2147483647, %v3779_v22  ;;  %vm3806_vm9 = vweird.f32 %v3779_v22 }
0x143e   :  { %v6551_v13 = vadd.f32 %v3749_v6, %v3692_v47  ;;  %v4900_v34 = vpop.eup %4899  ;;  %v6553_v63 = vadd.f32 1.0, %v4898_v33  ;;  %v3812_v41 = vand.u32 2147483648, %v3779_v22 }
0x143f   :  { %v3787_v24 = vmul.f32 %v4900_v34, %v3778_v61  ;;  %4905 = vpow2.f32 %v3770_v2  ;;  %vm3792_vm5 = vweird.f32 %v4900_v34  ;;  %vm6574_vm12 = vcmp.eq.f32.partialorder %v3810_v23, 8.507059e+37 }
0x1440   :  { %v3759_v48 = vmul.f32 -1.702, %v6551_v13  ;;  %4907 = vrcp.f32 %v6553_v63  ;;  %v3732_v29 = vpop.f32.mrf.mxu2  ;;  %vm3793_vm8 = vmor %vm3791_vm14, %vm3792_vm5  ;;  %v3825_v40 = vand.u32 2147483647, %v6553_v63  ;;  %v3827_v56 = vand.u32 2147483648, %v6553_v63 }
0x1441   :  { %v3788_v38 = vsub.f32 1.0, %v3787_v24  ;;  %v6559_v53 = vadd.f32 %v3732_v29, %v3697_v21  ;;  %v3813_v46 = vor.u32 1.1754944e-38, %v3812_v41  ;;  %vm3821_vm0 = vweird.f32 %v6553_v63 }
0x1442   :  { %v4902_v1 = vpop.eup %4901  ;;  %v3772_v43 = vmul.f32 1.442695, %v3759_v48  ;;  %vm6590_vm7 = vcmp.eq.f32.partialorder %v3825_v40, 8.507059e+37  ;;  %v3828_v10 = vor.u32 1.1754944e-38, %v3827_v56 }
0x1443   :  { %v4904_v35 = vpop.eup %4903  ;;  %v6557_v7 = vadd.f32 1.0, %v4902_v1  ;;  %v3789_v57 = vmul.f32 %v4900_v34, %v3788_v38  ;;  %v3760_v51 = vmul.f32 -1.702, %v6559_v53 }
0x1444   :  { %v3802_v0 = vmul.f32 %v4904_v35, %v3779_v22  ;;  %4909 = vpow2.f32 %v3772_v43  ;;  %vm3807_vm11 = vweird.f32 %v4904_v35 }
0x1445   :  { %4911 = vrcp.f32 %v6557_v7  ;;  %v3751_v39 = vpop.f32.mrf.mxu3  ;;  %v4906_v62 = vpop.eup %4905  ;;  %v3790_v9 = vadd.f32 %v4900_v34, %v3789_v57  ;;  %vm3808_vm10 = vmor %vm3806_vm9, %vm3807_vm11  ;;  %v3774_v42 = vmul.f32 1.442695, %v3760_v51  ;;  %v3840_v22 = vand.u32 2147483647, %v6557_v7 }
0x1446   :  { %v3803_v50 = vsub.f32 1.0, %v3802_v0  ;;  %v4908_v60 = vpop.eup %4907  ;;  %v6566_v32 = vadd.f32 1.0, %v4906_v62  ;;  %v6569_v4 = vadd.f32 %v3751_v39, %v3697_v21  ;;  %v3842_v8 = vand.u32 2147483648, %v6557_v7 }
0x1447   :  { %v3794_v36 = vsel %vm3793_vm8, %v4900_v34, %v3790_v9  ;;  %v3817_v18 = vmul.f32 %v4908_v60, %v6553_v63  ;;  %vm3822_vm2 = vweird.f32 %v4908_v60  ;;  %vm3836_vm6 = vweird.f32 %v6557_v7 }
0x1448   :  { %v3804_v15 = vmul.f32 %v4904_v35, %v3803_v50  ;;  %v3799_v54 = vsel %vm6561_vm15, %v3798_v37, %v3794_v36  ;;  %4913 = vrcp.f32 %v6566_v32  ;;  %v3761_v17 = vmul.f32 -1.702, %v6569_v4  ;;  %vm3823_vm13 = vmor %vm3821_vm0, %vm3822_vm2 }
0x1449   :  { %v3906_v20 = vmul.f32 %v3799_v54, %v6536_v45  ;;  %v3818_v19 = vsub.f32 1.0, %v3817_v18  ;;  %vm3841_vm4 = vcmp.eq.f32.partialorder %v3840_v22, 8.507059e+37  ;;  %v3843_v29 = vor.u32 1.1754944e-38, %v3842_v8 }
0x144a   :  { %v4910_v16 = vpop.eup %4909  ;;  %v3805_v14 = vadd.f32 %v4904_v35, %v3804_v15  ;;  %v3776_v6 = vmul.f32 1.442695, %v3761_v17  ;;  %v3855_v1 = vand.u32 2147483647, %v6566_v32  ;;  %v3857_v21 = vand.u32 2147483648, %v6566_v32 }
0x144b   :  { %v4912_v3 = vpop.eup %4911  ;;  %v6583_v55 = vadd.f32 1.0, %v4910_v16  ;;  %3914 = vst [vmem:[#allocation2] sm:$0xff] %v3906_v20  ;;  %v3819_v25 = vmul.f32 %v4908_v60, %v3818_v19  ;;  %vm3851_vm14 = vweird.f32 %v6566_v32 }
0x144c   :  { %v3809_v44 = vsel %vm3808_vm10, %v4904_v35, %v3805_v14  ;;  %v3832_v58 = vmul.f32 %v4912_v3, %v6557_v7  ;;  %vm3837_vm1 = vweird.f32 %v4912_v3  ;;  %vm3856_vm9 = vcmp.eq.f32.partialorder %v3855_v1, 8.507059e+37 }
0x144d   :  { %v3814_v45 = vsel %vm6574_vm12, %v3813_v46, %v3809_v44  ;;  %4915 = vrcp.f32 %v6583_v55  ;;  %v3820_v47 = vadd.f32 %v4908_v60, %v3819_v25  ;;  %vm3838_vm3 = vmor %vm3836_vm6, %vm3837_vm1  ;;  %v3858_v39 = vor.u32 1.1754944e-38, %v3857_v21 }
0x144e   :  { %v3907_v52 = vmul.f32 %v3814_v45, %v6539_v59  ;;  %v3833_v30 = vsub.f32 1.0, %v3832_v58  ;;  %v4914_v11 = vpop.eup %4913  ;;  %4917 = vpow2.f32 %v3774_v42  ;;  %v3870_v62 = vand.u32 2147483647, %v6583_v55 }
0x144f   :  { %v3824_v33 = vsel %vm3823_vm13, %v4908_v60, %v3820_v47  ;;  %v3847_v34 = vmul.f32 %v4914_v11, %v6566_v32  ;;  %4919 = vpow2.f32 %v3776_v6  ;;  %vm3852_vm5 = vweird.f32 %v4914_v11 }
0x1450   :  { %3919 = vst [vmem:[#allocation2 + $0x20] sm:$0xff] %v3907_v52  ;;  %v3834_v2 = vmul.f32 %v4912_v3, %v3833_v30  ;;  %v3829_v59 = vsel %vm6590_vm7, %v3828_v10, %v3824_v33  ;;  %vm3853_vm15 = vmor %vm3851_vm14, %vm3852_vm5  ;;  %v3872_v9 = vand.u32 2147483648, %v6583_v55  ;;  %vm3866_vm11 = vweird.f32 %v6583_v55 }
0x1451   :  { %v3908_v63 = vmul.f32 %v3829_v59, %v6542_v49  ;;  %v3848_v48 = vsub.f32 1.0, %v3847_v34  ;;  %vm3871_vm10 = vcmp.eq.f32.partialorder %v3870_v62, 8.507059e+37 }
0x1452   :  { %v3835_v24 = vadd.f32 %v4912_v3, %v3834_v2  ;;  %v3873_v51 = vor.u32 1.1754944e-38, %v3872_v9 }
0x1453   :  { %v4916_v5 = vpop.eup %4915  ;;  %3915 = vst [vmem:[#allocation2 + $0x8] sm:$0xff] %v3908_v63  ;;  %v3849_v12 = vmul.f32 %v4914_v11, %v3848_v48 }
0x1454   :  { %v3839_v38 = vsel %vm3838_vm3, %v4912_v3, %v3835_v24  ;;  %v3862_v43 = vmul.f32 %v4916_v5, %v6583_v55  ;;  %v4918_v35 = vpop.eup %4917  ;;  %vm3867_vm8 = vweird.f32 %v4916_v5 }
0x1455   :  { %v3844_v49 = vsel %vm3841_vm4, %v3843_v29, %v3839_v38  ;;  %v3850_v57 = vadd.f32 %v4914_v11, %v3849_v12  ;;  %v3784_v27 = vadd.f32 1.0, %v4918_v35  ;;  %v4920_v23 = vpop.eup %4919  ;;  %vm3868_vm12 = vmor %vm3866_vm11, %vm3867_vm8 }
0x1456   :  { %v3909_v7 = vmul.f32 %v3844_v49, %v6545_v28  ;;  %v3863_v0 = vsub.f32 1.0, %v3862_v43  ;;  %v3785_v41 = vadd.f32 1.0, %v4920_v23 }
0x1457   :  { %v3854_v37 = vsel %vm3853_vm15, %v4914_v11, %v3850_v57  ;;  %4921 = vrcp.f32 %v3784_v27  ;;  %v3887_v20 = vand.u32 2147483648, %v3784_v27  ;;  %v3885_v19 = vand.u32 2147483647, %v3784_v27 }
0x1458   :  { %3920 = vst [vmem:[#allocation2 + $0x28] sm:$0xff] %v3909_v7  ;;  %v3864_v50 = vmul.f32 %v4916_v5, %v3863_v0  ;;  %v3859_v60 = vsel %vm3856_vm9, %v3858_v39, %v3854_v37  ;;  %4923 = vrcp.f32 %v3785_v41  ;;  %vm3881_vm0 = vweird.f32 %v3784_v27 }
0x1459   :  { %v3910_v28 = vmul.f32 %v3859_v60, %v6548_v26  ;;  %v3902_v46 = vand.u32 2147483648, %v3785_v41  ;;  %v3888_v55 = vor.u32 1.1754944e-38, %v3887_v20  ;;  %v3900_v17 = vand.u32 2147483647, %v3785_v41 }
0x145a   :  { %v3865_v32 = vadd.f32 %v4916_v5, %v3864_v50  ;;  %vm3886_vm1 = vcmp.eq.f32.partialorder %v3885_v19, 8.507059e+37  ;;  %vm3896_vm6 = vweird.f32 %v3785_v41 }
0x145b   :  { %3916 = vst [vmem:[#allocation2 + $0x10] sm:$0xff] %v3910_v28  ;;  %v3903_v45 = vor.u32 1.1754944e-38, %v3902_v46  ;;  %vm3901_vm4 = vcmp.eq.f32.partialorder %v3900_v17, 8.507059e+37 }
0x145c   :  { %v3869_v36 = vsel %vm3868_vm12, %v4916_v5, %v3865_v32 }
0x145d   :  { %v3874_v15 = vsel %vm3871_vm10, %v3873_v51, %v3869_v36  ;;  %v4922_v18 = vpop.eup %4921 }
0x145e   :  { %v3911_v54 = vmul.f32 %v3874_v15, %v6551_v13  ;;  %v3877_v31 = vmul.f32 %v4922_v18, %v3784_v27  ;;  %v4924_v40 = vpop.eup %4923  ;;  %vm3882_vm2 = vweird.f32 %v4922_v18 }
0x145f   :  { %v3892_v14 = vmul.f32 %v4924_v40, %v3785_v41  ;;  %vm3883_vm7 = vmor %vm3881_vm0, %vm3882_vm2  ;;  %vm3897_vm13 = vweird.f32 %v4924_v40 }
0x1460   :  { %3921 = vst [vmem:[#allocation2 + $0x30] sm:$0xff] %v3911_v54  ;;  %v3878_v16 = vsub.f32 1.0, %v3877_v31  ;;  %vm3898_vm3 = vmor %vm3896_vm6, %vm3897_vm13 }
0x1461   :  { %v3893_v56 = vsub.f32 1.0, %v3892_v14 }
0x1462   :  { %v3879_v26 = vmul.f32 %v4922_v18, %v3878_v16 }
0x1463   :  { %v3894_v42 = vmul.f32 %v4924_v40, %v3893_v56 }
0x1464   :  { %v3880_v3 = vadd.f32 %v4922_v18, %v3879_v26 }
0x1465   :  { %v3895_v25 = vadd.f32 %v4924_v40, %v3894_v42 }
0x1466   :  { %v3884_v44 = vsel %vm3883_vm7, %v4922_v18, %v3880_v3 }
0x1467   :  { %v3889_v13 = vsel %vm3886_vm1, %v3888_v55, %v3884_v44  ;;  %v3899_v61 = vsel %vm3898_vm3, %v4924_v40, %v3895_v25 }
0x1468   :  { %v3912_v58 = vmul.f32 %v3889_v13, %v6559_v53  ;;  %v3904_v52 = vsel %vm3901_vm4, %v3903_v45, %v3899_v61 }
0x1469   :  { %v3913_v47 = vmul.f32 %v3904_v52, %v6569_v4 }
0x146a   :  { %3917 = vst [vmem:[#allocation2 + $0x18] sm:$0xff] %v3912_v58 }
0x146b   :  { %3922 = vst [vmem:[#allocation2 + $0x38] sm:$0xff] %v3913_v47 }
0x146c   :  { %3935 = dma.vmem_to_hbm [thread:$0]  %s3928_s19, 1024, %s3930_s24, [#allocation3], %s4963_s25, %s4963_s25, %s4954_s7  }
0x146d   :  { %4949 = dma.done.wait [#allocation3], 1024  }
0x146e   :  { %4950 = vsyncadd [#allocation3], 4294966272 }
0x146f   :  { %3940 = vsyncpa [#allocation3], 1 }

</bundles_post_ra>
